<compile_context>
chip_gen: v7x
topology: tpu7x:2x2x1
jax: 0.10.0
libtpu: 0.0.40
codegen_flags: <defaults>
</compile_context>

<pallas_src>
import functools
import math

import jax
import jax.numpy as jnp
from jax.experimental import pallas as pl
from jax.experimental.pallas import tpu as pltpu

# Whole-array, resident-in-VMEM operand (no per-grid-step DMA, single-buffered).
VMEM_SPEC = pl.BlockSpec(memory_space=pltpu.MemorySpace.VMEM)


# ----------------------- GRU (SingleStrokeEncoder) -----------------------

def gru_kernel(x_ref, wih_ref, whh_ref, bih_ref, bhh_ref, out_ref, *, L, H, Din):
    """Single-layer batch_first GRU, h0 = 0.

    x_ref:   (BN, L, Din) f32   (batch-major, no wrapper transposes)
    whh_ref: (H, 3H)      bf16  (recurrence matmul in bf16, f32 accumulation)
    out_ref: (BN, L, H)   f32
    """
    BN = x_ref.shape[0]
    h = jnp.zeros((BN, H), jnp.float32)
    for t in range(L):                                   # fully unrolled (L static)
        xt = x_ref[:, t, :]                              # (BN, Din) f32
        # Input projection as Din broadcast multiply-adds (Din is tiny; no
        # zero-padded K=128 MXU pass, no gi scratch roundtrip).
        gi = jnp.zeros((BN, 3 * H), jnp.float32) + bih_ref[...]
        for d in range(Din):
            gi = gi + xt[:, d:d + 1] * wih_ref[d:d + 1, :]
        gh = jnp.dot(h.astype(jnp.bfloat16), whh_ref[...],
                     preferred_element_type=jnp.float32) + bhh_ref[...]
        r = jax.nn.sigmoid(gi[:, 0:H] + gh[:, 0:H])
        z = jax.nn.sigmoid(gi[:, H:2 * H] + gh[:, H:2 * H])
        n = jnp.tanh(gi[:, 2 * H:3 * H] + r * gh[:, 2 * H:3 * H])
        h = (1.0 - z) * n + z * h
        out_ref[:, t, :] = h


def gru_forward(x, w_ih, w_hh, b_ih, b_hh):
    """Single-layer batch_first GRU, h0=0.  x: (BN, L, Din) -> (BN, L, H)."""
    BN, L, Din = x.shape
    H = w_hh.shape[1]
    # TODO(synk): tile over BN blocks for very large batch*stroke counts (the whole
    # activation currently lives in VMEM); fine at the sizes used here.
    cost = pl.CostEstimate(
        flops=int(BN * L * (2 * H * 3 * H + 2 * Din * 3 * H + 12 * H)),
        transcendentals=int(BN * L * 3 * H),
        bytes_accessed=int(4 * BN * L * (Din + H) + 4 * 3 * H * (Din + H + 2)))
    kernel = functools.partial(gru_kernel, L=L, H=H, Din=Din)
    return pl.pallas_call(
        kernel,
        out_shape=jax.ShapeDtypeStruct((BN, L, H), jnp.float32),
        in_specs=[VMEM_SPEC] * 5,
        out_specs=VMEM_SPEC,
        cost_estimate=cost,
    )(x, w_ih.T, w_hh.T.astype(jnp.bfloat16),
      b_ih.reshape(1, -1), b_hh.reshape(1, -1))


# --------------- Fused MultiStrokeEncoder (conv/pool stack + transformer) ---------------

def multi_encoder_kernel(x_ref, cw1_ref, cb1_ref, cw2_ref, cb2_ref,
                         wqkv_ref, bqkv_ref, wo_ref, bo_ref,
                         wf1_ref, bf1_ref, wf2_ref, bf2_ref,
                         g1_ref, be1_ref, g2_ref, be2_ref,
                         o_ref, xp_ref, y1_ref, p1_ref, y2_ref,
                         *, Bb, T0, nhead, num_tf_layers):
    Dm = x_ref.shape[1]
    C1 = cw1_ref.shape[2]
    C2 = cw2_ref.shape[2]
    T1, T2, T3, T4 = T0 // 2, T0 // 4, T0 // 8, T0 // 16
    M0, M1, M2, M3, M4 = Bb * T0, Bb * T1, Bb * T2, Bb * T3, Bb * T4

    # ---- conv1: Conv1d(Dm -> C1, k=3, s=2, p=1) over the flattened (Bb*T0, Dm)
    # block as 3 stride-2 shifted matmuls.  A single zero pad row is staged; the
    # per-batch-row left padding is recovered by zeroing the k=0 tap's
    # contribution at every batch-row start (output rows j % T1 == 0).
    xp_ref[0:1, :] = jnp.zeros((1, Dm), jnp.float32)     # only the pad row is zeroed
    xp_ref[pl.ds(1, M0), :] = x_ref[...]
    keep1 = (jax.lax.broadcasted_iota(jnp.int32, (M1, 1), 0) % T1) != 0
    acc1 = jnp.zeros((M1, C1), jnp.float32) + cb1_ref[...]
    for k in range(3):
        xk = xp_ref[pl.ds(k, M1, stride=2), :].astype(jnp.bfloat16)
        ck = jnp.dot(xk, cw1_ref[k], preferred_element_type=jnp.float32)
        if k == 0:
            ck = jnp.where(keep1, ck, 0.0)               # per-row left zero padding
        acc1 = acc1 + ck
    y1_ref[...] = acc1

    # ---- pool1: MaxPool1d(2) (pairs never straddle a batch row).
    p1_ref[0:1, :] = jnp.zeros((1, C1), jnp.float32)
    p1 = jnp.maximum(y1_ref[pl.ds(0, M2, stride=2), :],
                     y1_ref[pl.ds(1, M2, stride=2), :])
    p1_ref[pl.ds(1, M2), :] = p1

    # ---- conv2: Conv1d(C1 -> C2, k=3, s=2, p=1).
    keep3 = (jax.lax.broadcasted_iota(jnp.int32, (M3, 1), 0) % T3) != 0
    acc2 = jnp.zeros((M3, C2), jnp.float32) + cb2_ref[...]
    for k in range(3):
        pk = p1_ref[pl.ds(k, M3, stride=2), :].astype(jnp.bfloat16)
        ck = jnp.dot(pk, cw2_ref[k], preferred_element_type=jnp.float32)
        if k == 0:
            ck = jnp.where(keep3, ck, 0.0)
        acc2 = acc2 + ck
    y2_ref[...] = acc2

    # ---- pool2: MaxPool1d(2) -> (Bb*T4, C2) transformer tokens, kept flat so
    # every QKV/WO/FFN matmul sees M = Bb*T4 rows.
    y = jnp.maximum(y2_ref[pl.ds(0, M4, stride=2), :],
                    y2_ref[pl.ds(1, M4, stride=2), :])

    # ---- TransformerEncoderLayer x num_tf_layers (post-norm, ReLU, eval).
    if num_tf_layers > 0:
        D = C2
        dh = D // nhead
        scale = 1.0 / math.sqrt(dh)
        # Head-column masks and the block-diagonal attention bias, hoisted out
        # of the unrolled layer/head loops (JAX does not CSE iota/compare chains).
        col = jax.lax.broadcasted_iota(jnp.int32, (1, D), 1)
        hmask = [(col >= h * dh) & (col < (h + 1) * dh) for h in range(nhead)]
        rg = jax.lax.broadcasted_iota(jnp.int32, (M4, M4), 0) // T4
        cg = jax.lax.broadcasted_iota(jnp.int32, (M4, M4), 1) // T4
        bias = jnp.where(rg == cg, 0.0, -1e30).astype(jnp.float32)

        for l in range(num_tf_layers):
            yb = y.astype(jnp.bfloat16)
            qkv = jnp.dot(yb, wqkv_ref[l],
                          preferred_element_type=jnp.float32) + bqkv_ref[l]
            q = qkv[:, 0:D] * scale
            kmat = qkv[:, D:2 * D].astype(jnp.bfloat16)
            v = qkv[:, 2 * D:3 * D]
            attn = jnp.zeros((M4, D), jnp.float32)
            for h in range(nhead):      # masked-column head trick (no head reshapes)
                qh = jnp.where(hmask[h], q, 0.0).astype(jnp.bfloat16)
                vh = jnp.where(hmask[h], v, 0.0).astype(jnp.bfloat16)
                s = jax.lax.dot_general(qh, kmat, (((1,), (1,)), ((), ())),
                                        preferred_element_type=jnp.float32) + bias
                s = s - jnp.max(s, axis=-1, keepdims=True)
                p = jnp.exp(s)
                p = p / jnp.sum(p, axis=-1, keepdims=True)     # exact softmax norm
                attn = attn + jnp.dot(p.astype(jnp.bfloat16), vh,
                                      preferred_element_type=jnp.float32)
            attn = jnp.dot(attn.astype(jnp.bfloat16), wo_ref[l],
                           preferred_element_type=jnp.float32) + bo_ref[l]

            z = y + attn                                  # residual + LayerNorm1 (f32)
            mu = jnp.mean(z, axis=-1, keepdims=True)
            var = jnp.mean((z - mu) ** 2, axis=-1, keepdims=True)
            z = (z - mu) * jax.lax.rsqrt(var + 1e-5) * g1_ref[l] + be1_ref[l]

            h1 = jnp.maximum(jnp.dot(z.astype(jnp.bfloat16), wf1_ref[l],
                                     preferred_element_type=jnp.float32)
                             + bf1_ref[l], 0.0).astype(jnp.bfloat16)
            h2 = jnp.dot(h1, wf2_ref[l],
                         preferred_element_type=jnp.float32) + bf2_ref[l]
            u = z + h2                                    # residual + LayerNorm2 (f32)
            mu2 = jnp.mean(u, axis=-1, keepdims=True)
            var2 = jnp.mean((u - mu2) ** 2, axis=-1, keepdims=True)
            y = (u - mu2) * jax.lax.rsqrt(var2 + 1e-5) * g2_ref[l] + be2_ref[l]

    o_ref[...] = y


def _choose_batch_block(B, T4, row_target=256):
    """Rows per grid step = Bb*T4.  Bb must divide B and (unless it covers the
    whole batch) Bb*T4 must be a multiple of 8 so the flattened in/out
    BlockSpecs are sublane-aligned.  Target up to ~256 rows to fill a v6e/v7x
    MXU pass (>=128 for v5e), but prefer >=2 grid steps when possible so the
    'parallel' axis can feed both v7x TensorCores."""
    divs = [d for d in range(1, B + 1)
            if B % d == 0 and (d == B or (d * T4) % 8 == 0)]
    cands = [d for d in divs if d * T4 <= row_target]
    bb = max(cands) if cands else min(divs)
    if bb == B and B >= 2:
        smaller = [d for d in divs if d < B and (d * T4 >= 64 or B * T4 < 128)]
        if smaller:
            bb = max(smaller)
    return bb


def multi_encoder_forward(x, conv1_p, conv2_p, tf_layers, nhead, num_tf_layers):
    """Fused conv1 -> pool -> conv2 -> pool -> transformer stack.  x: (B, T0, Dm)."""
    B, T0, Dm = x.shape
    T1, T2, T3, T4 = T0 // 2, T0 // 4, T0 // 8, T0 // 16
    assert T0 % 16 == 0 and T4 >= 1, "fused conv/pool stack assumes T0 % 16 == 0"
    # TODO(synk): general (non multiple-of-16) sequence lengths need the exact
    # per-stage PyTorch floor formulas; N*L here is a multiple of 16.
    assert conv1_p['w'].shape[-1] == 3, "kernel assumes kernel_size=3, padding=1"

    # conv1: (Cout1, Dm, K) -> (K, Dm, C1) bf16, output channels zero-padded lane-dense.
    cw1 = jnp.transpose(conv1_p['w'], (2, 1, 0))
    Cout1 = cw1.shape[-1]
    C1 = ((Cout1 + 127) // 128) * 128
    cw1 = jnp.pad(cw1, ((0, 0), (0, 0), (0, C1 - Cout1))).astype(jnp.bfloat16)
    cb1 = jnp.pad(conv1_p['b'], (0, C1 - Cout1)).reshape(1, C1)
    # conv2: (C2, Cout1, K) -> (K, C1, C2) bf16 (zero rows for the padded channels).
    cw2 = jnp.transpose(conv2_p['w'], (2, 1, 0))
    C2 = cw2.shape[-1]
    cw2 = jnp.pad(cw2, ((0, 0), (0, C1 - Cout1), (0, 0))).astype(jnp.bfloat16)
    cb2 = conv2_p['b'].reshape(1, C2)

    # Stack transformer layer weights so all layers run inside one kernel.
    def stk(name, transpose=False, cast=False):
        mats = [lp[name].T if transpose else lp[name].reshape(1, -1)
                for lp in tf_layers]
        out = jnp.stack(mats)
        return out.astype(jnp.bfloat16) if cast else out

    wqkv = stk('wqkv', transpose=True, cast=True)     # (Lyr, D, 3D) bf16
    bqkv = stk('bqkv')                                # (Lyr, 1, 3D) f32
    wo = stk('wo', transpose=True, cast=True)
    bo = stk('bo')
    wf1 = stk('w1', transpose=True, cast=True)        # (Lyr, D, F) bf16
    bf1 = stk('b1')
    wf2 = stk('w2', transpose=True, cast=True)        # (Lyr, F, D) bf16
    bf2 = stk('b2')
    g1, be1 = stk('g1'), stk('be1')
    g2, be2 = stk('g2'), stk('be2')
    weights = (cw1, cb1, cw2, cb2, wqkv, bqkv, wo, bo,
               wf1, bf1, wf2, bf2, g1, be1, g2, be2)

    Bb = _choose_batch_block(B, T4)
    n_blocks = B // Bb
    M0, M4 = Bb * T0, Bb * T4
    D, F = C2, wf2.shape[1]

    # Advisory cost estimate (FFN matmuls dominate the FLOPs).
    flops = (2 * 3 * (B * T1 * Dm * C1 + B * T3 * C1 * C2)
             + n_blocks * num_tf_layers * (2 * M4 * D * 3 * D
                                           + nhead * 4 * M4 * M4 * D
                                           + 2 * M4 * D * D
                                           + 4 * M4 * D * F))
    cost = pl.CostEstimate(
        flops=int(flops),
        transcendentals=int(n_blocks * num_tf_layers * nhead * M4 * M4),
        bytes_accessed=int(4 * x.size + 4 * B * T4 * C2
                           + sum(w.size * w.dtype.itemsize for w in weights)))

    kernel = functools.partial(multi_encoder_kernel, Bb=Bb, T0=T0, nhead=nhead,
                               num_tf_layers=num_tf_layers)
    out = pl.pallas_call(
        kernel,
        out_shape=jax.ShapeDtypeStruct((B * T4, C2), jnp.float32),
        grid=(n_blocks,),
        in_specs=[pl.BlockSpec((M0, Dm), lambda b: (b, 0))]      # batch-blocked input
                 + [VMEM_SPEC] * len(weights),                   # weights: resident, single-buffered
        out_specs=pl.BlockSpec((M4, C2), lambda b: (b, 0)),
        scratch_shapes=[pltpu.VMEM((M0 + 1, Dm), jnp.float32),       # zero-padded conv1 input
                        pltpu.VMEM((Bb * T1, C1), jnp.float32),      # conv1 out
                        pltpu.VMEM((Bb * T2 + 1, C1), jnp.float32),  # zero-padded conv2 input
                        pltpu.VMEM((Bb * T3, C2), jnp.float32)],     # conv2 out
        compiler_params=pltpu.CompilerParams(
            dimension_semantics=("parallel",)),
        cost_estimate=cost,
        # NOTE: vmem_limit_bytes left at the scoped default; resident weights
        # (~3.5 MiB bf16) + per-block activations stay far below the 16/32 MiB
        # defaults here.  Re-derive with headroom when scaling layers /
        # dim_feedforward / T0 (v7x physical cap is 64 MiB).
    )(x.reshape(B * T0, Dm), *weights)
    return out.reshape(B, T4, C2)


# ----------------------- StrokeEncoder forward -----------------------

def stroke_encoder_forward(params, stroke, mode='tf', nhead=4):
    if stroke.ndim == 3:
        stroke = stroke[:, None, :, :]
    B, N, L, d = stroke.shape

    # SingleStrokeEncoder: mask=None => every stroke valid with full length L.
    # TODO(synk): ragged pack_padded_sequence / mask path not implemented (mask=None only).
    x = stroke.reshape(B * N, L, d)
    embeds = gru_forward(x, params['gru']['w_ih'], params['gru']['w_hh'],
                         params['gru']['b_ih'], params['gru']['b_hh'])   # (B*N, L, Dm)
    Dm = embeds.shape[-1]
    embeds = embeds.reshape(B, N * L, Dm)   # free reshape: GRU output layout matches

    if N > 1:
        # TODO(synk): mode='rnn' (MultiStrokeEncoder's 3-layer GRU) not wired; 'tf'/'neither' only.
        # TODO(synk): optionally fuse the GRU into this kernel to save one HBM round trip.
        num_tf = len(params['tf_layers']) if mode == 'tf' else 0
        embeds = multi_encoder_forward(embeds, params['conv1'], params['conv2'],
                                       params['tf_layers'], nhead, num_tf)
    return embeds


# ----------------------- deterministic parameter init -----------------------

def init_params(key, input_dim=2, d_model=128, nhead=4, num_layers=3,
                num_filters=64, kernel_size=3, dim_feedforward=2048):
    keys = iter(jax.random.split(key, 64))

    def u(shape, scale):
        return jax.random.uniform(next(keys), shape, jnp.float32, -scale, scale)

    H = d_model
    params = {}
    s = 1.0 / math.sqrt(H)
    params['gru'] = dict(w_ih=u((3 * H, input_dim), s), w_hh=u((3 * H, H), s),
                         b_ih=u((3 * H,), s), b_hh=u((3 * H,), s))
    s1 = 1.0 / math.sqrt(d_model * kernel_size)
    params['conv1'] = dict(w=u((num_filters, d_model, kernel_size), s1),
                           b=u((num_filters,), s1))
    s2 = 1.0 / math.sqrt(num_filters * kernel_size)
    params['conv2'] = dict(w=u((2 * num_filters, num_filters, kernel_size), s2),
                           b=u((2 * num_filters,), s2))
    D = 2 * num_filters  # 128 == d_model of the transformer
    layers = []
    for _ in range(num_layers):
        sd = 1.0 / math.sqrt(D)
        sf = 1.0 / math.sqrt(dim_feedforward)
        layers.append(dict(
            wqkv=u((3 * D, D), sd), bqkv=u((3 * D,), sd),
            wo=u((D, D), sd), bo=u((D,), sd),
            w1=u((dim_feedforward, D), sd), b1=u((dim_feedforward,), sd),
            w2=u((D, dim_feedforward), sf), b2=u((D,), sf),
            g1=jnp.ones((D,), jnp.float32), be1=jnp.zeros((D,), jnp.float32),
            g2=jnp.ones((D,), jnp.float32), be2=jnp.zeros((D,), jnp.float32)))
    params['tf_layers'] = layers
    return params


if __name__ == "__main__":
    key = jax.random.PRNGKey(0)
    kp, kx = jax.random.split(key)
    params = init_params(kp)

    # stroke: (B, N, L, d) = (2, 4, 8, 2)  -> output (2, 2, 128)
    B, N, L, d = 2, 4, 8, 2
    stroke = jax.random.normal(kx, (B, N, L, d), jnp.float32)

    out = stroke_encoder_forward(params, stroke, mode='tf', nhead=4)
    out = jax.block_until_ready(out)
    assert out.shape == (2, 2, 128), out.shape
    assert bool(jnp.all(jnp.isfinite(out)))
    print("KERNEL_OK")
</pallas_src>

<mosaic_0001>
module attributes {stable_mosaic.version = 11 : i64} {
  func.func @gru_kernel(%arg0: memref<8x8x2xf32, #tpu.memory_space<vmem>>, %arg1: memref<2x384xf32, #tpu.memory_space<vmem>>, %arg2: memref<128x384xbf16, #tpu.memory_space<vmem>>, %arg3: memref<1x384xf32, #tpu.memory_space<vmem>>, %arg4: memref<1x384xf32, #tpu.memory_space<vmem>>, %arg5: memref<8x8x128xf32, #tpu.memory_space<vmem>>) attributes {dimension_semantics = [], scalar_prefetch = 0 : i64, scratch_operands = 0 : i64, tpu.core_type = #tpu.core_type<tc>} {
    %cst = arith.constant 0.000000e+00 : f32
    %0 = vector.broadcast %cst : f32 to vector<8x128xf32>
    %c0 = arith.constant 0 : index
    %c0_0 = arith.constant 0 : index
    %c0_1 = arith.constant 0 : index
    %1 = vector.load %arg0[%c0, %c0_0, %c0_1] : memref<8x8x2xf32, #tpu.memory_space<vmem>>, vector<8x1x2xf32>
    %2 = vector.shape_cast %1 : vector<8x1x2xf32> to vector<8x2xf32>
    %cst_2 = arith.constant 0.000000e+00 : f32
    %3 = vector.broadcast %cst_2 : f32 to vector<8x384xf32>
    %c0_3 = arith.constant 0 : index
    %c0_4 = arith.constant 0 : index
    %4 = vector.load %arg3[%c0_3, %c0_4] : memref<1x384xf32, #tpu.memory_space<vmem>>, vector<1x384xf32>
    %5 = vector.broadcast %4 : vector<1x384xf32> to vector<8x384xf32>
    %6 = arith.addf %3, %5 : vector<8x384xf32>
    %7 = vector.extract_strided_slice %2 {offsets = [0, 0], sizes = [8, 1], strides = [1, 1]} : vector<8x2xf32> to vector<8x1xf32>
    %c0_5 = arith.constant 0 : index
    %c0_6 = arith.constant 0 : index
    %8 = vector.load %arg1[%c0_5, %c0_6] : memref<2x384xf32, #tpu.memory_space<vmem>>, vector<1x384xf32>
    %9 = vector.broadcast %7 : vector<8x1xf32> to vector<8x384xf32>
    %10 = vector.broadcast %8 : vector<1x384xf32> to vector<8x384xf32>
    %11 = arith.mulf %9, %10 : vector<8x384xf32>
    %12 = arith.addf %6, %11 : vector<8x384xf32>
    %13 = vector.extract_strided_slice %2 {offsets = [0, 1], sizes = [8, 1], strides = [1, 1]} : vector<8x2xf32> to vector<8x1xf32>
    %c1 = arith.constant 1 : index
    %c0_7 = arith.constant 0 : index
    %14 = vector.load %arg1[%c1, %c0_7] : memref<2x384xf32, #tpu.memory_space<vmem>>, vector<1x384xf32>
    %15 = vector.broadcast %13 : vector<8x1xf32> to vector<8x384xf32>
    %16 = vector.broadcast %14 : vector<1x384xf32> to vector<8x384xf32>
    %17 = arith.mulf %15, %16 : vector<8x384xf32>
    %18 = arith.addf %12, %17 : vector<8x384xf32>
    %19 = arith.truncf %0 : vector<8x128xf32> to vector<8x128xbf16>
    %c0_8 = arith.constant 0 : index
    %c0_9 = arith.constant 0 : index
    %20 = vector.load %arg2[%c0_8, %c0_9] : memref<128x384xbf16, #tpu.memory_space<vmem>>, vector<128x384xbf16>
    %cst_10 = arith.constant dense<0.000000e+00> : vector<8x384xf32>
    %21 = tpu.matmul %19, %20, %cst_10 {dimension_numbers = #tpu.dot_dimension_numbers<[1], [0], [0], [1], [0, 0, 1, 1], [], []>} : vector<8x128xbf16>, vector<128x384xbf16>, vector<8x384xf32> -> vector<8x384xf32>
    %c0_11 = arith.constant 0 : index
    %c0_12 = arith.constant 0 : index
    %22 = vector.load %arg4[%c0_11, %c0_12] : memref<1x384xf32, #tpu.memory_space<vmem>>, vector<1x384xf32>
    %23 = vector.broadcast %22 : vector<1x384xf32> to vector<8x384xf32>
    %24 = arith.addf %21, %23 : vector<8x384xf32>
    %25 = vector.extract_strided_slice %18 {offsets = [0, 0], sizes = [8, 128], strides = [1, 1]} : vector<8x384xf32> to vector<8x128xf32>
    %26 = vector.extract_strided_slice %24 {offsets = [0, 0], sizes = [8, 128], strides = [1, 1]} : vector<8x384xf32> to vector<8x128xf32>
    %27 = arith.addf %25, %26 : vector<8x128xf32>
    %28 = arith.negf %27 : vector<8x128xf32>
    %29 = math.exp %28 : vector<8x128xf32>
    %cst_13 = arith.constant 1.000000e+00 : f32
    %30 = vector.broadcast %cst_13 : f32 to vector<8x128xf32>
    %31 = arith.addf %30, %29 : vector<8x128xf32>
    %32 = arith.divf %30, %31 : vector<8x128xf32>
    %33 = vector.extract_strided_slice %18 {offsets = [0, 128], sizes = [8, 128], strides = [1, 1]} : vector<8x384xf32> to vector<8x128xf32>
    %34 = vector.extract_strided_slice %24 {offsets = [0, 128], sizes = [8, 128], strides = [1, 1]} : vector<8x384xf32> to vector<8x128xf32>
    %35 = arith.addf %33, %34 : vector<8x128xf32>
    %36 = arith.negf %35 : vector<8x128xf32>
    %37 = math.exp %36 : vector<8x128xf32>
    %cst_14 = arith.constant 1.000000e+00 : f32
    %38 = vector.broadcast %cst_14 : f32 to vector<8x128xf32>
    %39 = arith.addf %38, %37 : vector<8x128xf32>
    %40 = arith.divf %38, %39 : vector<8x128xf32>
    %41 = vector.extract_strided_slice %18 {offsets = [0, 256], sizes = [8, 128], strides = [1, 1]} : vector<8x384xf32> to vector<8x128xf32>
    %42 = vector.extract_strided_slice %24 {offsets = [0, 256], sizes = [8, 128], strides = [1, 1]} : vector<8x384xf32> to vector<8x128xf32>
    %43 = arith.mulf %32, %42 : vector<8x128xf32>
    %44 = arith.addf %41, %43 : vector<8x128xf32>
    %45 = math.tanh %44 : vector<8x128xf32>
    %cst_15 = arith.constant 1.000000e+00 : f32
    %46 = vector.broadcast %cst_15 : f32 to vector<8x128xf32>
    %47 = arith.subf %46, %40 : vector<8x128xf32>
    %48 = arith.mulf %47, %45 : vector<8x128xf32>
    %49 = arith.mulf %40, %0 : vector<8x128xf32>
    %50 = arith.addf %48, %49 : vector<8x128xf32>
    %c0_16 = arith.constant 0 : index
    %c0_17 = arith.constant 0 : index
    %c0_18 = arith.constant 0 : index
    %51 = vector.load %arg5[%c0_16, %c0_17, %c0_18] : memref<8x8x128xf32, #tpu.memory_space<vmem>>, vector<8x1x128xf32>
    %52 = vector.shape_cast %51 : vector<8x1x128xf32> to vector<8x128xf32>
    %53 = vector.shape_cast %50 : vector<8x128xf32> to vector<8x1x128xf32>
    tpu.vector_store %arg5[%c0_16, %c0_17, %c0_18], %53 {strides = array<i32>} : memref<8x8x128xf32, #tpu.memory_space<vmem>>, vector<8x1x128xf32>,
    %c0_19 = arith.constant 0 : index
    %c1_20 = arith.constant 1 : index
    %c0_21 = arith.constant 0 : index
    %54 = vector.load %arg0[%c0_19, %c1_20, %c0_21] : memref<8x8x2xf32, #tpu.memory_space<vmem>>, vector<8x1x2xf32>
    %55 = vector.shape_cast %54 : vector<8x1x2xf32> to vector<8x2xf32>
    %cst_22 = arith.constant 0.000000e+00 : f32
    %56 = vector.broadcast %cst_22 : f32 to vector<8x384xf32>
    %c0_23 = arith.constant 0 : index
    %c0_24 = arith.constant 0 : index
    %57 = vector.load %arg3[%c0_23, %c0_24] : memref<1x384xf32, #tpu.memory_space<vmem>>, vector<1x384xf32>
    %58 = vector.broadcast %57 : vector<1x384xf32> to vector<8x384xf32>
    %59 = arith.addf %56, %58 : vector<8x384xf32>
    %60 = vector.extract_strided_slice %55 {offsets = [0, 0], sizes = [8, 1], strides = [1, 1]} : vector<8x2xf32> to vector<8x1xf32>
    %c0_25 = arith.constant 0 : index
    %c0_26 = arith.constant 0 : index
    %61 = vector.load %arg1[%c0_25, %c0_26] : memref<2x384xf32, #tpu.memory_space<vmem>>, vector<1x384xf32>
    %62 = vector.broadcast %60 : vector<8x1xf32> to vector<8x384xf32>
    %63 = vector.broadcast %61 : vector<1x384xf32> to vector<8x384xf32>
    %64 = arith.mulf %62, %63 : vector<8x384xf32>
    %65 = arith.addf %59, %64 : vector<8x384xf32>
    %66 = vector.extract_strided_slice %55 {offsets = [0, 1], sizes = [8, 1], strides = [1, 1]} : vector<8x2xf32> to vector<8x1xf32>
    %c1_27 = arith.constant 1 : index
    %c0_28 = arith.constant 0 : index
    %67 = vector.load %arg1[%c1_27, %c0_28] : memref<2x384xf32, #tpu.memory_space<vmem>>, vector<1x384xf32>
    %68 = vector.broadcast %66 : vector<8x1xf32> to vector<8x384xf32>
    %69 = vector.broadcast %67 : vector<1x384xf32> to vector<8x384xf32>
    %70 = arith.mulf %68, %69 : vector<8x384xf32>
    %71 = arith.addf %65, %70 : vector<8x384xf32>
    %72 = arith.truncf %50 : vector<8x128xf32> to vector<8x128xbf16>
    %c0_29 = arith.constant 0 : index
    %c0_30 = arith.constant 0 : index
    %73 = vector.load %arg2[%c0_29, %c0_30] : memref<128x384xbf16, #tpu.memory_space<vmem>>, vector<128x384xbf16>
    %cst_31 = arith.constant dense<0.000000e+00> : vector<8x384xf32>
    %74 = tpu.matmul %72, %73, %cst_31 {dimension_numbers = #tpu.dot_dimension_numbers<[1], [0], [0], [1], [0, 0, 1, 1], [], []>} : vector<8x128xbf16>, vector<128x384xbf16>, vector<8x384xf32> -> vector<8x384xf32>
    %c0_32 = arith.constant 0 : index
    %c0_33 = arith.constant 0 : index
    %75 = vector.load %arg4[%c0_32, %c0_33] : memref<1x384xf32, #tpu.memory_space<vmem>>, vector<1x384xf32>
    %76 = vector.broadcast %75 : vector<1x384xf32> to vector<8x384xf32>
    %77 = arith.addf %74, %76 : vector<8x384xf32>
    %78 = vector.extract_strided_slice %71 {offsets = [0, 0], sizes = [8, 128], strides = [1, 1]} : vector<8x384xf32> to vector<8x128xf32>
    %79 = vector.extract_strided_slice %77 {offsets = [0, 0], sizes = [8, 128], strides = [1, 1]} : vector<8x384xf32> to vector<8x128xf32>
    %80 = arith.addf %78, %79 : vector<8x128xf32>
    %81 = arith.negf %80 : vector<8x128xf32>
    %82 = math.exp %81 : vector<8x128xf32>
    %cst_34 = arith.constant 1.000000e+00 : f32
    %83 = vector.broadcast %cst_34 : f32 to vector<8x128xf32>
    %84 = arith.addf %83, %82 : vector<8x128xf32>
    %85 = arith.divf %83, %84 : vector<8x128xf32>
    %86 = vector.extract_strided_slice %71 {offsets = [0, 128], sizes = [8, 128], strides = [1, 1]} : vector<8x384xf32> to vector<8x128xf32>
    %87 = vector.extract_strided_slice %77 {offsets = [0, 128], sizes = [8, 128], strides = [1, 1]} : vector<8x384xf32> to vector<8x128xf32>
    %88 = arith.addf %86, %87 : vector<8x128xf32>
    %89 = arith.negf %88 : vector<8x128xf32>
    %90 = math.exp %89 : vector<8x128xf32>
    %cst_35 = arith.constant 1.000000e+00 : f32
    %91 = vector.broadcast %cst_35 : f32 to vector<8x128xf32>
    %92 = arith.addf %91, %90 : vector<8x128xf32>
    %93 = arith.divf %91, %92 : vector<8x128xf32>
    %94 = vector.extract_strided_slice %71 {offsets = [0, 256], sizes = [8, 128], strides = [1, 1]} : vector<8x384xf32> to vector<8x128xf32>
    %95 = vector.extract_strided_slice %77 {offsets = [0, 256], sizes = [8, 128], strides = [1, 1]} : vector<8x384xf32> to vector<8x128xf32>
    %96 = arith.mulf %85, %95 : vector<8x128xf32>
    %97 = arith.addf %94, %96 : vector<8x128xf32>
    %98 = math.tanh %97 : vector<8x128xf32>
    %cst_36 = arith.constant 1.000000e+00 : f32
    %99 = vector.broadcast %cst_36 : f32 to vector<8x128xf32>
    %100 = arith.subf %99, %93 : vector<8x128xf32>
    %101 = arith.mulf %100, %98 : vector<8x128xf32>
    %102 = arith.mulf %93, %50 : vector<8x128xf32>
    %103 = arith.addf %101, %102 : vector<8x128xf32>
    %c0_37 = arith.constant 0 : index
    %c1_38 = arith.constant 1 : index
    %c0_39 = arith.constant 0 : index
    %104 = vector.load %arg5[%c0_37, %c1_38, %c0_39] : memref<8x8x128xf32, #tpu.memory_space<vmem>>, vector<8x1x128xf32>
    %105 = vector.shape_cast %104 : vector<8x1x128xf32> to vector<8x128xf32>
    %106 = vector.shape_cast %103 : vector<8x128xf32> to vector<8x1x128xf32>
    tpu.vector_store %arg5[%c0_37, %c1_38, %c0_39], %106 {strides = array<i32>} : memref<8x8x128xf32, #tpu.memory_space<vmem>>, vector<8x1x128xf32>,
    %c0_40 = arith.constant 0 : index
    %c2 = arith.constant 2 : index
    %c0_41 = arith.constant 0 : index
    %107 = vector.load %arg0[%c0_40, %c2, %c0_41] : memref<8x8x2xf32, #tpu.memory_space<vmem>>, vector<8x1x2xf32>
    %108 = vector.shape_cast %107 : vector<8x1x2xf32> to vector<8x2xf32>
    %cst_42 = arith.constant 0.000000e+00 : f32
    %109 = vector.broadcast %cst_42 : f32 to vector<8x384xf32>
    %c0_43 = arith.constant 0 : index
    %c0_44 = arith.constant 0 : index
    %110 = vector.load %arg3[%c0_43, %c0_44] : memref<1x384xf32, #tpu.memory_space<vmem>>, vector<1x384xf32>
    %111 = vector.broadcast %110 : vector<1x384xf32> to vector<8x384xf32>
    %112 = arith.addf %109, %111 : vector<8x384xf32>
    %113 = vector.extract_strided_slice %108 {offsets = [0, 0], sizes = [8, 1], strides = [1, 1]} : vector<8x2xf32> to vector<8x1xf32>
    %c0_45 = arith.constant 0 : index
    %c0_46 = arith.constant 0 : index
    %114 = vector.load %arg1[%c0_45, %c0_46] : memref<2x384xf32, #tpu.memory_space<vmem>>, vector<1x384xf32>
    %115 = vector.broadcast %113 : vector<8x1xf32> to vector<8x384xf32>
    %116 = vector.broadcast %114 : vector<1x384xf32> to vector<8x384xf32>
    %117 = arith.mulf %115, %116 : vector<8x384xf32>
    %118 = arith.addf %112, %117 : vector<8x384xf32>
    %119 = vector.extract_strided_slice %108 {offsets = [0, 1], sizes = [8, 1], strides = [1, 1]} : vector<8x2xf32> to vector<8x1xf32>
    %c1_47 = arith.constant 1 : index
    %c0_48 = arith.constant 0 : index
    %120 = vector.load %arg1[%c1_47, %c0_48] : memref<2x384xf32, #tpu.memory_space<vmem>>, vector<1x384xf32>
    %121 = vector.broadcast %119 : vector<8x1xf32> to vector<8x384xf32>
    %122 = vector.broadcast %120 : vector<1x384xf32> to vector<8x384xf32>
    %123 = arith.mulf %121, %122 : vector<8x384xf32>
    %124 = arith.addf %118, %123 : vector<8x384xf32>
    %125 = arith.truncf %103 : vector<8x128xf32> to vector<8x128xbf16>
    %c0_49 = arith.constant 0 : index
    %c0_50 = arith.constant 0 : index
    %126 = vector.load %arg2[%c0_49, %c0_50] : memref<128x384xbf16, #tpu.memory_space<vmem>>, vector<128x384xbf16>
    %cst_51 = arith.constant dense<0.000000e+00> : vector<8x384xf32>
    %127 = tpu.matmul %125, %126, %cst_51 {dimension_numbers = #tpu.dot_dimension_numbers<[1], [0], [0], [1], [0, 0, 1, 1], [], []>} : vector<8x128xbf16>, vector<128x384xbf16>, vector<8x384xf32> -> vector<8x384xf32>
    %c0_52 = arith.constant 0 : index
    %c0_53 = arith.constant 0 : index
    %128 = vector.load %arg4[%c0_52, %c0_53] : memref<1x384xf32, #tpu.memory_space<vmem>>, vector<1x384xf32>
    %129 = vector.broadcast %128 : vector<1x384xf32> to vector<8x384xf32>
    %130 = arith.addf %127, %129 : vector<8x384xf32>
    %131 = vector.extract_strided_slice %124 {offsets = [0, 0], sizes = [8, 128], strides = [1, 1]} : vector<8x384xf32> to vector<8x128xf32>
    %132 = vector.extract_strided_slice %130 {offsets = [0, 0], sizes = [8, 128], strides = [1, 1]} : vector<8x384xf32> to vector<8x128xf32>
    %133 = arith.addf %131, %132 : vector<8x128xf32>
    %134 = arith.negf %133 : vector<8x128xf32>
    %135 = math.exp %134 : vector<8x128xf32>
    %cst_54 = arith.constant 1.000000e+00 : f32
    %136 = vector.broadcast %cst_54 : f32 to vector<8x128xf32>
    %137 = arith.addf %136, %135 : vector<8x128xf32>
    %138 = arith.divf %136, %137 : vector<8x128xf32>
    %139 = vector.extract_strided_slice %124 {offsets = [0, 128], sizes = [8, 128], strides = [1, 1]} : vector<8x384xf32> to vector<8x128xf32>
    %140 = vector.extract_strided_slice %130 {offsets = [0, 128], sizes = [8, 128], strides = [1, 1]} : vector<8x384xf32> to vector<8x128xf32>
    %141 = arith.addf %139, %140 : vector<8x128xf32>
    %142 = arith.negf %141 : vector<8x128xf32>
    %143 = math.exp %142 : vector<8x128xf32>
    %cst_55 = arith.constant 1.000000e+00 : f32
    %144 = vector.broadcast %cst_55 : f32 to vector<8x128xf32>
    %145 = arith.addf %144, %143 : vector<8x128xf32>
    %146 = arith.divf %144, %145 : vector<8x128xf32>
    %147 = vector.extract_strided_slice %124 {offsets = [0, 256], sizes = [8, 128], strides = [1, 1]} : vector<8x384xf32> to vector<8x128xf32>
    %148 = vector.extract_strided_slice %130 {offsets = [0, 256], sizes = [8, 128], strides = [1, 1]} : vector<8x384xf32> to vector<8x128xf32>
    %149 = arith.mulf %138, %148 : vector<8x128xf32>
    %150 = arith.addf %147, %149 : vector<8x128xf32>
    %151 = math.tanh %150 : vector<8x128xf32>
    %cst_56 = arith.constant 1.000000e+00 : f32
    %152 = vector.broadcast %cst_56 : f32 to vector<8x128xf32>
    %153 = arith.subf %152, %146 : vector<8x128xf32>
    %154 = arith.mulf %153, %151 : vector<8x128xf32>
    %155 = arith.mulf %146, %103 : vector<8x128xf32>
    %156 = arith.addf %154, %155 : vector<8x128xf32>
    %c0_57 = arith.constant 0 : index
    %c2_58 = arith.constant 2 : index
    %c0_59 = arith.constant 0 : index
    %157 = vector.load %arg5[%c0_57, %c2_58, %c0_59] : memref<8x8x128xf32, #tpu.memory_space<vmem>>, vector<8x1x128xf32>
    %158 = vector.shape_cast %157 : vector<8x1x128xf32> to vector<8x128xf32>
    %159 = vector.shape_cast %156 : vector<8x128xf32> to vector<8x1x128xf32>
    tpu.vector_store %arg5[%c0_57, %c2_58, %c0_59], %159 {strides = array<i32>} : memref<8x8x128xf32, #tpu.memory_space<vmem>>, vector<8x1x128xf32>,
    %c0_60 = arith.constant 0 : index
    %c3 = arith.constant 3 : index
    %c0_61 = arith.constant 0 : index
    %160 = vector.load %arg0[%c0_60, %c3, %c0_61] : memref<8x8x2xf32, #tpu.memory_space<vmem>>, vector<8x1x2xf32>
    %161 = vector.shape_cast %160 : vector<8x1x2xf32> to vector<8x2xf32>
    %cst_62 = arith.constant 0.000000e+00 : f32
    %162 = vector.broadcast %cst_62 : f32 to vector<8x384xf32>
    %c0_63 = arith.constant 0 : index
    %c0_64 = arith.constant 0 : index
    %163 = vector.load %arg3[%c0_63, %c0_64] : memref<1x384xf32, #tpu.memory_space<vmem>>, vector<1x384xf32>
    %164 = vector.broadcast %163 : vector<1x384xf32> to vector<8x384xf32>
    %165 = arith.addf %162, %164 : vector<8x384xf32>
    %166 = vector.extract_strided_slice %161 {offsets = [0, 0], sizes = [8, 1], strides = [1, 1]} : vector<8x2xf32> to vector<8x1xf32>
    %c0_65 = arith.constant 0 : index
    %c0_66 = arith.constant 0 : index
    %167 = vector.load %arg1[%c0_65, %c0_66] : memref<2x384xf32, #tpu.memory_space<vmem>>, vector<1x384xf32>
    %168 = vector.broadcast %166 : vector<8x1xf32> to vector<8x384xf32>
    %169 = vector.broadcast %167 : vector<1x384xf32> to vector<8x384xf32>
    %170 = arith.mulf %168, %169 : vector<8x384xf32>
    %171 = arith.addf %165, %170 : vector<8x384xf32>
    %172 = vector.extract_strided_slice %161 {offsets = [0, 1], sizes = [8, 1], strides = [1, 1]} : vector<8x2xf32> to vector<8x1xf32>
    %c1_67 = arith.constant 1 : index
    %c0_68 = arith.constant 0 : index
    %173 = vector.load %arg1[%c1_67, %c0_68] : memref<2x384xf32, #tpu.memory_space<vmem>>, vector<1x384xf32>
    %174 = vector.broadcast %172 : vector<8x1xf32> to vector<8x384xf32>
    %175 = vector.broadcast %173 : vector<1x384xf32> to vector<8x384xf32>
    %176 = arith.mulf %174, %175 : vector<8x384xf32>
    %177 = arith.addf %171, %176 : vector<8x384xf32>
    %178 = arith.truncf %156 : vector<8x128xf32> to vector<8x128xbf16>
    %c0_69 = arith.constant 0 : index
    %c0_70 = arith.constant 0 : index
    %179 = vector.load %arg2[%c0_69, %c0_70] : memref<128x384xbf16, #tpu.memory_space<vmem>>, vector<128x384xbf16>
    %cst_71 = arith.constant dense<0.000000e+00> : vector<8x384xf32>
    %180 = tpu.matmul %178, %179, %cst_71 {dimension_numbers = #tpu.dot_dimension_numbers<[1], [0], [0], [1], [0, 0, 1, 1], [], []>} : vector<8x128xbf16>, vector<128x384xbf16>, vector<8x384xf32> -> vector<8x384xf32>
    %c0_72 = arith.constant 0 : index
    %c0_73 = arith.constant 0 : index
    %181 = vector.load %arg4[%c0_72, %c0_73] : memref<1x384xf32, #tpu.memory_space<vmem>>, vector<1x384xf32>
    %182 = vector.broadcast %181 : vector<1x384xf32> to vector<8x384xf32>
    %183 = arith.addf %180, %182 : vector<8x384xf32>
    %184 = vector.extract_strided_slice %177 {offsets = [0, 0], sizes = [8, 128], strides = [1, 1]} : vector<8x384xf32> to vector<8x128xf32>
    %185 = vector.extract_strided_slice %183 {offsets = [0, 0], sizes = [8, 128], strides = [1, 1]} : vector<8x384xf32> to vector<8x128xf32>
    %186 = arith.addf %184, %185 : vector<8x128xf32>
    %187 = arith.negf %186 : vector<8x128xf32>
    %188 = math.exp %187 : vector<8x128xf32>
    %cst_74 = arith.constant 1.000000e+00 : f32
    %189 = vector.broadcast %cst_74 : f32 to vector<8x128xf32>
    %190 = arith.addf %189, %188 : vector<8x128xf32>
    %191 = arith.divf %189, %190 : vector<8x128xf32>
    %192 = vector.extract_strided_slice %177 {offsets = [0, 128], sizes = [8, 128], strides = [1, 1]} : vector<8x384xf32> to vector<8x128xf32>
    %193 = vector.extract_strided_slice %183 {offsets = [0, 128], sizes = [8, 128], strides = [1, 1]} : vector<8x384xf32> to vector<8x128xf32>
    %194 = arith.addf %192, %193 : vector<8x128xf32>
    %195 = arith.negf %194 : vector<8x128xf32>
    %196 = math.exp %195 : vector<8x128xf32>
    %cst_75 = arith.constant 1.000000e+00 : f32
    %197 = vector.broadcast %cst_75 : f32 to vector<8x128xf32>
    %198 = arith.addf %197, %196 : vector<8x128xf32>
    %199 = arith.divf %197, %198 : vector<8x128xf32>
    %200 = vector.extract_strided_slice %177 {offsets = [0, 256], sizes = [8, 128], strides = [1, 1]} : vector<8x384xf32> to vector<8x128xf32>
    %201 = vector.extract_strided_slice %183 {offsets = [0, 256], sizes = [8, 128], strides = [1, 1]} : vector<8x384xf32> to vector<8x128xf32>
    %202 = arith.mulf %191, %201 : vector<8x128xf32>
    %203 = arith.addf %200, %202 : vector<8x128xf32>
    %204 = math.tanh %203 : vector<8x128xf32>
    %cst_76 = arith.constant 1.000000e+00 : f32
    %205 = vector.broadcast %cst_76 : f32 to vector<8x128xf32>
    %206 = arith.subf %205, %199 : vector<8x128xf32>
    %207 = arith.mulf %206, %204 : vector<8x128xf32>
    %208 = arith.mulf %199, %156 : vector<8x128xf32>
    %209 = arith.addf %207, %208 : vector<8x128xf32>
    %c0_77 = arith.constant 0 : index
    %c3_78 = arith.constant 3 : index
    %c0_79 = arith.constant 0 : index
    %210 = vector.load %arg5[%c0_77, %c3_78, %c0_79] : memref<8x8x128xf32, #tpu.memory_space<vmem>>, vector<8x1x128xf32>
    %211 = vector.shape_cast %210 : vector<8x1x128xf32> to vector<8x128xf32>
    %212 = vector.shape_cast %209 : vector<8x128xf32> to vector<8x1x128xf32>
    tpu.vector_store %arg5[%c0_77, %c3_78, %c0_79], %212 {strides = array<i32>} : memref<8x8x128xf32, #tpu.memory_space<vmem>>, vector<8x1x128xf32>,
    %c0_80 = arith.constant 0 : index
    %c4 = arith.constant 4 : index
    %c0_81 = arith.constant 0 : index
    %213 = vector.load %arg0[%c0_80, %c4, %c0_81] : memref<8x8x2xf32, #tpu.memory_space<vmem>>, vector<8x1x2xf32>
    %214 = vector.shape_cast %213 : vector<8x1x2xf32> to vector<8x2xf32>
    %cst_82 = arith.constant 0.000000e+00 : f32
    %215 = vector.broadcast %cst_82 : f32 to vector<8x384xf32>
    %c0_83 = arith.constant 0 : index
    %c0_84 = arith.constant 0 : index
    %216 = vector.load %arg3[%c0_83, %c0_84] : memref<1x384xf32, #tpu.memory_space<vmem>>, vector<1x384xf32>
    %217 = vector.broadcast %216 : vector<1x384xf32> to vector<8x384xf32>
    %218 = arith.addf %215, %217 : vector<8x384xf32>
    %219 = vector.extract_strided_slice %214 {offsets = [0, 0], sizes = [8, 1], strides = [1, 1]} : vector<8x2xf32> to vector<8x1xf32>
    %c0_85 = arith.constant 0 : index
    %c0_86 = arith.constant 0 : index
    %220 = vector.load %arg1[%c0_85, %c0_86] : memref<2x384xf32, #tpu.memory_space<vmem>>, vector<1x384xf32>
    %221 = vector.broadcast %219 : vector<8x1xf32> to vector<8x384xf32>
    %222 = vector.broadcast %220 : vector<1x384xf32> to vector<8x384xf32>
    %223 = arith.mulf %221, %222 : vector<8x384xf32>
    %224 = arith.addf %218, %223 : vector<8x384xf32>
    %225 = vector.extract_strided_slice %214 {offsets = [0, 1], sizes = [8, 1], strides = [1, 1]} : vector<8x2xf32> to vector<8x1xf32>
    %c1_87 = arith.constant 1 : index
    %c0_88 = arith.constant 0 : index
    %226 = vector.load %arg1[%c1_87, %c0_88] : memref<2x384xf32, #tpu.memory_space<vmem>>, vector<1x384xf32>
    %227 = vector.broadcast %225 : vector<8x1xf32> to vector<8x384xf32>
    %228 = vector.broadcast %226 : vector<1x384xf32> to vector<8x384xf32>
    %229 = arith.mulf %227, %228 : vector<8x384xf32>
    %230 = arith.addf %224, %229 : vector<8x384xf32>
    %231 = arith.truncf %209 : vector<8x128xf32> to vector<8x128xbf16>
    %c0_89 = arith.constant 0 : index
    %c0_90 = arith.constant 0 : index
    %232 = vector.load %arg2[%c0_89, %c0_90] : memref<128x384xbf16, #tpu.memory_space<vmem>>, vector<128x384xbf16>
    %cst_91 = arith.constant dense<0.000000e+00> : vector<8x384xf32>
    %233 = tpu.matmul %231, %232, %cst_91 {dimension_numbers = #tpu.dot_dimension_numbers<[1], [0], [0], [1], [0, 0, 1, 1], [], []>} : vector<8x128xbf16>, vector<128x384xbf16>, vector<8x384xf32> -> vector<8x384xf32>
    %c0_92 = arith.constant 0 : index
    %c0_93 = arith.constant 0 : index
    %234 = vector.load %arg4[%c0_92, %c0_93] : memref<1x384xf32, #tpu.memory_space<vmem>>, vector<1x384xf32>
    %235 = vector.broadcast %234 : vector<1x384xf32> to vector<8x384xf32>
    %236 = arith.addf %233, %235 : vector<8x384xf32>
    %237 = vector.extract_strided_slice %230 {offsets = [0, 0], sizes = [8, 128], strides = [1, 1]} : vector<8x384xf32> to vector<8x128xf32>
    %238 = vector.extract_strided_slice %236 {offsets = [0, 0], sizes = [8, 128], strides = [1, 1]} : vector<8x384xf32> to vector<8x128xf32>
    %239 = arith.addf %237, %238 : vector<8x128xf32>
    %240 = arith.negf %239 : vector<8x128xf32>
    %241 = math.exp %240 : vector<8x128xf32>
    %cst_94 = arith.constant 1.000000e+00 : f32
    %242 = vector.broadcast %cst_94 : f32 to vector<8x128xf32>
    %243 = arith.addf %242, %241 : vector<8x128xf32>
    %244 = arith.divf %242, %243 : vector<8x128xf32>
    %245 = vector.extract_strided_slice %230 {offsets = [0, 128], sizes = [8, 128], strides = [1, 1]} : vector<8x384xf32> to vector<8x128xf32>
    %246 = vector.extract_strided_slice %236 {offsets = [0, 128], sizes = [8, 128], strides = [1, 1]} : vector<8x384xf32> to vector<8x128xf32>
    %247 = arith.addf %245, %246 : vector<8x128xf32>
    %248 = arith.negf %247 : vector<8x128xf32>
    %249 = math.exp %248 : vector<8x128xf32>
    %cst_95 = arith.constant 1.000000e+00 : f32
    %250 = vector.broadcast %cst_95 : f32 to vector<8x128xf32>
    %251 = arith.addf %250, %249 : vector<8x128xf32>
    %252 = arith.divf %250, %251 : vector<8x128xf32>
    %253 = vector.extract_strided_slice %230 {offsets = [0, 256], sizes = [8, 128], strides = [1, 1]} : vector<8x384xf32> to vector<8x128xf32>
    %254 = vector.extract_strided_slice %236 {offsets = [0, 256], sizes = [8, 128], strides = [1, 1]} : vector<8x384xf32> to vector<8x128xf32>
    %255 = arith.mulf %244, %254 : vector<8x128xf32>
    %256 = arith.addf %253, %255 : vector<8x128xf32>
    %257 = math.tanh %256 : vector<8x128xf32>
    %cst_96 = arith.constant 1.000000e+00 : f32
    %258 = vector.broadcast %cst_96 : f32 to vector<8x128xf32>
    %259 = arith.subf %258, %252 : vector<8x128xf32>
    %260 = arith.mulf %259, %257 : vector<8x128xf32>
    %261 = arith.mulf %252, %209 : vector<8x128xf32>
    %262 = arith.addf %260, %261 : vector<8x128xf32>
    %c0_97 = arith.constant 0 : index
    %c4_98 = arith.constant 4 : index
    %c0_99 = arith.constant 0 : index
    %263 = vector.load %arg5[%c0_97, %c4_98, %c0_99] : memref<8x8x128xf32, #tpu.memory_space<vmem>>, vector<8x1x128xf32>
    %264 = vector.shape_cast %263 : vector<8x1x128xf32> to vector<8x128xf32>
    %265 = vector.shape_cast %262 : vector<8x128xf32> to vector<8x1x128xf32>
    tpu.vector_store %arg5[%c0_97, %c4_98, %c0_99], %265 {strides = array<i32>} : memref<8x8x128xf32, #tpu.memory_space<vmem>>, vector<8x1x128xf32>,
    %c0_100 = arith.constant 0 : index
    %c5 = arith.constant 5 : index
    %c0_101 = arith.constant 0 : index
    %266 = vector.load %arg0[%c0_100, %c5, %c0_101] : memref<8x8x2xf32, #tpu.memory_space<vmem>>, vector<8x1x2xf32>
    %267 = vector.shape_cast %266 : vector<8x1x2xf32> to vector<8x2xf32>
    %cst_102 = arith.constant 0.000000e+00 : f32
    %268 = vector.broadcast %cst_102 : f32 to vector<8x384xf32>
    %c0_103 = arith.constant 0 : index
    %c0_104 = arith.constant 0 : index
    %269 = vector.load %arg3[%c0_103, %c0_104] : memref<1x384xf32, #tpu.memory_space<vmem>>, vector<1x384xf32>
    %270 = vector.broadcast %269 : vector<1x384xf32> to vector<8x384xf32>
    %271 = arith.addf %268, %270 : vector<8x384xf32>
    %272 = vector.extract_strided_slice %267 {offsets = [0, 0], sizes = [8, 1], strides = [1, 1]} : vector<8x2xf32> to vector<8x1xf32>
    %c0_105 = arith.constant 0 : index
    %c0_106 = arith.constant 0 : index
    %273 = vector.load %arg1[%c0_105, %c0_106] : memref<2x384xf32, #tpu.memory_space<vmem>>, vector<1x384xf32>
    %274 = vector.broadcast %272 : vector<8x1xf32> to vector<8x384xf32>
    %275 = vector.broadcast %273 : vector<1x384xf32> to vector<8x384xf32>
    %276 = arith.mulf %274, %275 : vector<8x384xf32>
    %277 = arith.addf %271, %276 : vector<8x384xf32>
    %278 = vector.extract_strided_slice %267 {offsets = [0, 1], sizes = [8, 1], strides = [1, 1]} : vector<8x2xf32> to vector<8x1xf32>
    %c1_107 = arith.constant 1 : index
    %c0_108 = arith.constant 0 : index
    %279 = vector.load %arg1[%c1_107, %c0_108] : memref<2x384xf32, #tpu.memory_space<vmem>>, vector<1x384xf32>
    %280 = vector.broadcast %278 : vector<8x1xf32> to vector<8x384xf32>
    %281 = vector.broadcast %279 : vector<1x384xf32> to vector<8x384xf32>
    %282 = arith.mulf %280, %281 : vector<8x384xf32>
    %283 = arith.addf %277, %282 : vector<8x384xf32>
    %284 = arith.truncf %262 : vector<8x128xf32> to vector<8x128xbf16>
    %c0_109 = arith.constant 0 : index
    %c0_110 = arith.constant 0 : index
    %285 = vector.load %arg2[%c0_109, %c0_110] : memref<128x384xbf16, #tpu.memory_space<vmem>>, vector<128x384xbf16>
    %cst_111 = arith.constant dense<0.000000e+00> : vector<8x384xf32>
    %286 = tpu.matmul %284, %285, %cst_111 {dimension_numbers = #tpu.dot_dimension_numbers<[1], [0], [0], [1], [0, 0, 1, 1], [], []>} : vector<8x128xbf16>, vector<128x384xbf16>, vector<8x384xf32> -> vector<8x384xf32>
    %c0_112 = arith.constant 0 : index
    %c0_113 = arith.constant 0 : index
    %287 = vector.load %arg4[%c0_112, %c0_113] : memref<1x384xf32, #tpu.memory_space<vmem>>, vector<1x384xf32>
    %288 = vector.broadcast %287 : vector<1x384xf32> to vector<8x384xf32>
    %289 = arith.addf %286, %288 : vector<8x384xf32>
    %290 = vector.extract_strided_slice %283 {offsets = [0, 0], sizes = [8, 128], strides = [1, 1]} : vector<8x384xf32> to vector<8x128xf32>
    %291 = vector.extract_strided_slice %289 {offsets = [0, 0], sizes = [8, 128], strides = [1, 1]} : vector<8x384xf32> to vector<8x128xf32>
    %292 = arith.addf %290, %291 : vector<8x128xf32>
    %293 = arith.negf %292 : vector<8x128xf32>
    %294 = math.exp %293 : vector<8x128xf32>
    %cst_114 = arith.constant 1.000000e+00 : f32
    %295 = vector.broadcast %cst_114 : f32 to vector<8x128xf32>
    %296 = arith.addf %295, %294 : vector<8x128xf32>
    %297 = arith.divf %295, %296 : vector<8x128xf32>
    %298 = vector.extract_strided_slice %283 {offsets = [0, 128], sizes = [8, 128], strides = [1, 1]} : vector<8x384xf32> to vector<8x128xf32>
    %299 = vector.extract_strided_slice %289 {offsets = [0, 128], sizes = [8, 128], strides = [1, 1]} : vector<8x384xf32> to vector<8x128xf32>
    %300 = arith.addf %298, %299 : vector<8x128xf32>
    %301 = arith.negf %300 : vector<8x128xf32>
    %302 = math.exp %301 : vector<8x128xf32>
    %cst_115 = arith.constant 1.000000e+00 : f32
    %303 = vector.broadcast %cst_115 : f32 to vector<8x128xf32>
    %304 = arith.addf %303, %302 : vector<8x128xf32>
    %305 = arith.divf %303, %304 : vector<8x128xf32>
    %306 = vector.extract_strided_slice %283 {offsets = [0, 256], sizes = [8, 128], strides = [1, 1]} : vector<8x384xf32> to vector<8x128xf32>
    %307 = vector.extract_strided_slice %289 {offsets = [0, 256], sizes = [8, 128], strides = [1, 1]} : vector<8x384xf32> to vector<8x128xf32>
    %308 = arith.mulf %297, %307 : vector<8x128xf32>
    %309 = arith.addf %306, %308 : vector<8x128xf32>
    %310 = math.tanh %309 : vector<8x128xf32>
    %cst_116 = arith.constant 1.000000e+00 : f32
    %311 = vector.broadcast %cst_116 : f32 to vector<8x128xf32>
    %312 = arith.subf %311, %305 : vector<8x128xf32>
    %313 = arith.mulf %312, %310 : vector<8x128xf32>
    %314 = arith.mulf %305, %262 : vector<8x128xf32>
    %315 = arith.addf %313, %314 : vector<8x128xf32>
    %c0_117 = arith.constant 0 : index
    %c5_118 = arith.constant 5 : index
    %c0_119 = arith.constant 0 : index
    %316 = vector.load %arg5[%c0_117, %c5_118, %c0_119] : memref<8x8x128xf32, #tpu.memory_space<vmem>>, vector<8x1x128xf32>
    %317 = vector.shape_cast %316 : vector<8x1x128xf32> to vector<8x128xf32>
    %318 = vector.shape_cast %315 : vector<8x128xf32> to vector<8x1x128xf32>
    tpu.vector_store %arg5[%c0_117, %c5_118, %c0_119], %318 {strides = array<i32>} : memref<8x8x128xf32, #tpu.memory_space<vmem>>, vector<8x1x128xf32>,
    %c0_120 = arith.constant 0 : index
    %c6 = arith.constant 6 : index
    %c0_121 = arith.constant 0 : index
    %319 = vector.load %arg0[%c0_120, %c6, %c0_121] : memref<8x8x2xf32, #tpu.memory_space<vmem>>, vector<8x1x2xf32>
    %320 = vector.shape_cast %319 : vector<8x1x2xf32> to vector<8x2xf32>
    %cst_122 = arith.constant 0.000000e+00 : f32
    %321 = vector.broadcast %cst_122 : f32 to vector<8x384xf32>
    %c0_123 = arith.constant 0 : index
    %c0_124 = arith.constant 0 : index
    %322 = vector.load %arg3[%c0_123, %c0_124] : memref<1x384xf32, #tpu.memory_space<vmem>>, vector<1x384xf32>
    %323 = vector.broadcast %322 : vector<1x384xf32> to vector<8x384xf32>
    %324 = arith.addf %321, %323 : vector<8x384xf32>
    %325 = vector.extract_strided_slice %320 {offsets = [0, 0], sizes = [8, 1], strides = [1, 1]} : vector<8x2xf32> to vector<8x1xf32>
    %c0_125 = arith.constant 0 : index
    %c0_126 = arith.constant 0 : index
    %326 = vector.load %arg1[%c0_125, %c0_126] : memref<2x384xf32, #tpu.memory_space<vmem>>, vector<1x384xf32>
    %327 = vector.broadcast %325 : vector<8x1xf32> to vector<8x384xf32>
    %328 = vector.broadcast %326 : vector<1x384xf32> to vector<8x384xf32>
    %329 = arith.mulf %327, %328 : vector<8x384xf32>
    %330 = arith.addf %324, %329 : vector<8x384xf32>
    %331 = vector.extract_strided_slice %320 {offsets = [0, 1], sizes = [8, 1], strides = [1, 1]} : vector<8x2xf32> to vector<8x1xf32>
    %c1_127 = arith.constant 1 : index
    %c0_128 = arith.constant 0 : index
    %332 = vector.load %arg1[%c1_127, %c0_128] : memref<2x384xf32, #tpu.memory_space<vmem>>, vector<1x384xf32>
    %333 = vector.broadcast %331 : vector<8x1xf32> to vector<8x384xf32>
    %334 = vector.broadcast %332 : vector<1x384xf32> to vector<8x384xf32>
    %335 = arith.mulf %333, %334 : vector<8x384xf32>
    %336 = arith.addf %330, %335 : vector<8x384xf32>
    %337 = arith.truncf %315 : vector<8x128xf32> to vector<8x128xbf16>
    %c0_129 = arith.constant 0 : index
    %c0_130 = arith.constant 0 : index
    %338 = vector.load %arg2[%c0_129, %c0_130] : memref<128x384xbf16, #tpu.memory_space<vmem>>, vector<128x384xbf16>
    %cst_131 = arith.constant dense<0.000000e+00> : vector<8x384xf32>
    %339 = tpu.matmul %337, %338, %cst_131 {dimension_numbers = #tpu.dot_dimension_numbers<[1], [0], [0], [1], [0, 0, 1, 1], [], []>} : vector<8x128xbf16>, vector<128x384xbf16>, vector<8x384xf32> -> vector<8x384xf32>
    %c0_132 = arith.constant 0 : index
    %c0_133 = arith.constant 0 : index
    %340 = vector.load %arg4[%c0_132, %c0_133] : memref<1x384xf32, #tpu.memory_space<vmem>>, vector<1x384xf32>
    %341 = vector.broadcast %340 : vector<1x384xf32> to vector<8x384xf32>
    %342 = arith.addf %339, %341 : vector<8x384xf32>
    %343 = vector.extract_strided_slice %336 {offsets = [0, 0], sizes = [8, 128], strides = [1, 1]} : vector<8x384xf32> to vector<8x128xf32>
    %344 = vector.extract_strided_slice %342 {offsets = [0, 0], sizes = [8, 128], strides = [1, 1]} : vector<8x384xf32> to vector<8x128xf32>
    %345 = arith.addf %343, %344 : vector<8x128xf32>
    %346 = arith.negf %345 : vector<8x128xf32>
    %347 = math.exp %346 : vector<8x128xf32>
    %cst_134 = arith.constant 1.000000e+00 : f32
    %348 = vector.broadcast %cst_134 : f32 to vector<8x128xf32>
    %349 = arith.addf %348, %347 : vector<8x128xf32>
    %350 = arith.divf %348, %349 : vector<8x128xf32>
    %351 = vector.extract_strided_slice %336 {offsets = [0, 128], sizes = [8, 128], strides = [1, 1]} : vector<8x384xf32> to vector<8x128xf32>
    %352 = vector.extract_strided_slice %342 {offsets = [0, 128], sizes = [8, 128], strides = [1, 1]} : vector<8x384xf32> to vector<8x128xf32>
    %353 = arith.addf %351, %352 : vector<8x128xf32>
    %354 = arith.negf %353 : vector<8x128xf32>
    %355 = math.exp %354 : vector<8x128xf32>
    %cst_135 = arith.constant 1.000000e+00 : f32
    %356 = vector.broadcast %cst_135 : f32 to vector<8x128xf32>
    %357 = arith.addf %356, %355 : vector<8x128xf32>
    %358 = arith.divf %356, %357 : vector<8x128xf32>
    %359 = vector.extract_strided_slice %336 {offsets = [0, 256], sizes = [8, 128], strides = [1, 1]} : vector<8x384xf32> to vector<8x128xf32>
    %360 = vector.extract_strided_slice %342 {offsets = [0, 256], sizes = [8, 128], strides = [1, 1]} : vector<8x384xf32> to vector<8x128xf32>
    %361 = arith.mulf %350, %360 : vector<8x128xf32>
    %362 = arith.addf %359, %361 : vector<8x128xf32>
    %363 = math.tanh %362 : vector<8x128xf32>
    %cst_136 = arith.constant 1.000000e+00 : f32
    %364 = vector.broadcast %cst_136 : f32 to vector<8x128xf32>
    %365 = arith.subf %364, %358 : vector<8x128xf32>
    %366 = arith.mulf %365, %363 : vector<8x128xf32>
    %367 = arith.mulf %358, %315 : vector<8x128xf32>
    %368 = arith.addf %366, %367 : vector<8x128xf32>
    %c0_137 = arith.constant 0 : index
    %c6_138 = arith.constant 6 : index
    %c0_139 = arith.constant 0 : index
    %369 = vector.load %arg5[%c0_137, %c6_138, %c0_139] : memref<8x8x128xf32, #tpu.memory_space<vmem>>, vector<8x1x128xf32>
    %370 = vector.shape_cast %369 : vector<8x1x128xf32> to vector<8x128xf32>
    %371 = vector.shape_cast %368 : vector<8x128xf32> to vector<8x1x128xf32>
    tpu.vector_store %arg5[%c0_137, %c6_138, %c0_139], %371 {strides = array<i32>} : memref<8x8x128xf32, #tpu.memory_space<vmem>>, vector<8x1x128xf32>,
    %c0_140 = arith.constant 0 : index
    %c7 = arith.constant 7 : index
    %c0_141 = arith.constant 0 : index
    %372 = vector.load %arg0[%c0_140, %c7, %c0_141] : memref<8x8x2xf32, #tpu.memory_space<vmem>>, vector<8x1x2xf32>
    %373 = vector.shape_cast %372 : vector<8x1x2xf32> to vector<8x2xf32>
    %cst_142 = arith.constant 0.000000e+00 : f32
    %374 = vector.broadcast %cst_142 : f32 to vector<8x384xf32>
    %c0_143 = arith.constant 0 : index
    %c0_144 = arith.constant 0 : index
    %375 = vector.load %arg3[%c0_143, %c0_144] : memref<1x384xf32, #tpu.memory_space<vmem>>, vector<1x384xf32>
    %376 = vector.broadcast %375 : vector<1x384xf32> to vector<8x384xf32>
    %377 = arith.addf %374, %376 : vector<8x384xf32>
    %378 = vector.extract_strided_slice %373 {offsets = [0, 0], sizes = [8, 1], strides = [1, 1]} : vector<8x2xf32> to vector<8x1xf32>
    %c0_145 = arith.constant 0 : index
    %c0_146 = arith.constant 0 : index
    %379 = vector.load %arg1[%c0_145, %c0_146] : memref<2x384xf32, #tpu.memory_space<vmem>>, vector<1x384xf32>
    %380 = vector.broadcast %378 : vector<8x1xf32> to vector<8x384xf32>
    %381 = vector.broadcast %379 : vector<1x384xf32> to vector<8x384xf32>
    %382 = arith.mulf %380, %381 : vector<8x384xf32>
    %383 = arith.addf %377, %382 : vector<8x384xf32>
    %384 = vector.extract_strided_slice %373 {offsets = [0, 1], sizes = [8, 1], strides = [1, 1]} : vector<8x2xf32> to vector<8x1xf32>
    %c1_147 = arith.constant 1 : index
    %c0_148 = arith.constant 0 : index
    %385 = vector.load %arg1[%c1_147, %c0_148] : memref<2x384xf32, #tpu.memory_space<vmem>>, vector<1x384xf32>
    %386 = vector.broadcast %384 : vector<8x1xf32> to vector<8x384xf32>
    %387 = vector.broadcast %385 : vector<1x384xf32> to vector<8x384xf32>
    %388 = arith.mulf %386, %387 : vector<8x384xf32>
    %389 = arith.addf %383, %388 : vector<8x384xf32>
    %390 = arith.truncf %368 : vector<8x128xf32> to vector<8x128xbf16>
    %c0_149 = arith.constant 0 : index
    %c0_150 = arith.constant 0 : index
    %391 = vector.load %arg2[%c0_149, %c0_150] : memref<128x384xbf16, #tpu.memory_space<vmem>>, vector<128x384xbf16>
    %cst_151 = arith.constant dense<0.000000e+00> : vector<8x384xf32>
    %392 = tpu.matmul %390, %391, %cst_151 {dimension_numbers = #tpu.dot_dimension_numbers<[1], [0], [0], [1], [0, 0, 1, 1], [], []>} : vector<8x128xbf16>, vector<128x384xbf16>, vector<8x384xf32> -> vector<8x384xf32>
    %c0_152 = arith.constant 0 : index
    %c0_153 = arith.constant 0 : index
    %393 = vector.load %arg4[%c0_152, %c0_153] : memref<1x384xf32, #tpu.memory_space<vmem>>, vector<1x384xf32>
    %394 = vector.broadcast %393 : vector<1x384xf32> to vector<8x384xf32>
    %395 = arith.addf %392, %394 : vector<8x384xf32>
    %396 = vector.extract_strided_slice %389 {offsets = [0, 0], sizes = [8, 128], strides = [1, 1]} : vector<8x384xf32> to vector<8x128xf32>
    %397 = vector.extract_strided_slice %395 {offsets = [0, 0], sizes = [8, 128], strides = [1, 1]} : vector<8x384xf32> to vector<8x128xf32>
    %398 = arith.addf %396, %397 : vector<8x128xf32>
    %399 = arith.negf %398 : vector<8x128xf32>
    %400 = math.exp %399 : vector<8x128xf32>
    %cst_154 = arith.constant 1.000000e+00 : f32
    %401 = vector.broadcast %cst_154 : f32 to vector<8x128xf32>
    %402 = arith.addf %401, %400 : vector<8x128xf32>
    %403 = arith.divf %401, %402 : vector<8x128xf32>
    %404 = vector.extract_strided_slice %389 {offsets = [0, 128], sizes = [8, 128], strides = [1, 1]} : vector<8x384xf32> to vector<8x128xf32>
    %405 = vector.extract_strided_slice %395 {offsets = [0, 128], sizes = [8, 128], strides = [1, 1]} : vector<8x384xf32> to vector<8x128xf32>
    %406 = arith.addf %404, %405 : vector<8x128xf32>
    %407 = arith.negf %406 : vector<8x128xf32>
    %408 = math.exp %407 : vector<8x128xf32>
    %cst_155 = arith.constant 1.000000e+00 : f32
    %409 = vector.broadcast %cst_155 : f32 to vector<8x128xf32>
    %410 = arith.addf %409, %408 : vector<8x128xf32>
    %411 = arith.divf %409, %410 : vector<8x128xf32>
    %412 = vector.extract_strided_slice %389 {offsets = [0, 256], sizes = [8, 128], strides = [1, 1]} : vector<8x384xf32> to vector<8x128xf32>
    %413 = vector.extract_strided_slice %395 {offsets = [0, 256], sizes = [8, 128], strides = [1, 1]} : vector<8x384xf32> to vector<8x128xf32>
    %414 = arith.mulf %403, %413 : vector<8x128xf32>
    %415 = arith.addf %412, %414 : vector<8x128xf32>
    %416 = math.tanh %415 : vector<8x128xf32>
    %cst_156 = arith.constant 1.000000e+00 : f32
    %417 = vector.broadcast %cst_156 : f32 to vector<8x128xf32>
    %418 = arith.subf %417, %411 : vector<8x128xf32>
    %419 = arith.mulf %418, %416 : vector<8x128xf32>
    %420 = arith.mulf %411, %368 : vector<8x128xf32>
    %421 = arith.addf %419, %420 : vector<8x128xf32>
    %c0_157 = arith.constant 0 : index
    %c7_158 = arith.constant 7 : index
    %c0_159 = arith.constant 0 : index
    %422 = vector.load %arg5[%c0_157, %c7_158, %c0_159] : memref<8x8x128xf32, #tpu.memory_space<vmem>>, vector<8x1x128xf32>
    %423 = vector.shape_cast %422 : vector<8x1x128xf32> to vector<8x128xf32>
    %424 = vector.shape_cast %421 : vector<8x128xf32> to vector<8x1x128xf32>
    tpu.vector_store %arg5[%c0_157, %c7_158, %c0_159], %424 {strides = array<i32>} : memref<8x8x128xf32, #tpu.memory_space<vmem>>, vector<8x1x128xf32>,
    return
  }
}

</mosaic_0001>

<bundles_post_ra>
// kernel: tpu_custom_call.1
= control target key start
LH: loop header
LB: loop body
LE: loop exit
PB: predicated region body
PF: predicated region fallthrough
CT: control target
= control target key end

     0   :  { %10 = vsyncpa [#allocation3], 0  ;;  %s8791_s0 = inlined_call_operand.vmem [shape: f32[8,8,2], index: 0, kind: input, shape index: {}]   ;;  %s8792_s1 = inlined_call_operand.vmem [shape: f32[2,384], index: 1, kind: input, shape index: {}]   ;;  %s8793_s2 = inlined_call_operand.hbm [shape: bf16[128,384], index: 2, kind: input, shape index: {}]   ;;  %s8794_s3 = inlined_call_operand.vmem [shape: f32[1,384], index: 3, kind: input, shape index: {}]   ;;  %s8795_s4 = inlined_call_operand.vmem [shape: f32[1,384], index: 4, kind: input, shape index: {}]   ;;  %s8796_s5 = inlined_call_operand.hbm [shape: f32[8,8,128], index: 5, kind: output, shape index: {}]  }
   0x1   :  { %11 = vsyncpa [#allocation4], 0  ;;  %s6267_s18 = smov [#allocation2]   ;;  %s6219_s22 = scalar_lea.hbm %s8793_s2, 3072 }
   0x2   :  { %s21_s19 = sshll.u32 %s6267_s18, 4  ;;  %p6220_p0 = scmp.ne.s32.totalorder %s8793_s2, %s6219_s22  ;;  %s22_s19 = int_to_ptr.vmem [resolvable:$true] %s21_s19 }
   0x3   :  { %p6223_p1 = scmp.lt.u32.totalorder %s6219_s22, %s8793_s2 }
   0x5   :  { %p6225_p2 = pnand %p6223_p1, %p6220_p0 }
   0x7   :  { %6228 = shalt.err (!%p6225_p2)
}
   0x8   :  { %s6229_s27 = scalar_lea.vmem %s22_s19, 3072  ;;  %p6234_p4 = scmp.lt.s32.totalorder %s22_s19, %s22_s19 }
   0x9   :  { %p6230_p3 = scmp.ne.s32.totalorder %s22_s19, %s6229_s27  ;;  %p6235_p5 = scmp.lt.s32.totalorder %s6229_s27, %s6229_s27 }
   0xb   :  { %p6236_p6 = por %p6235_p5, %p6234_p4 }
   0xd   :  { %p6237_p7 = pnand %p6236_p6, %p6230_p3 }
   0xf   :  { %6240 = shalt.err (!%p6237_p7)
}
  0x10   :  { %s6268_s28 = smov 192   ;;  %s6269_s29 = smov 12  }
  0x11   :  { %27 = dma.hbm_to_vmem [thread:$0]  %s8793_s2, 3072, %s22_s19, [#allocation3], %s6268_s28, %s6268_s28, %s6269_s29  }
  0x12   :  { %6263 = dma.done.wait [#allocation3], 3072  }
  0x13   :  { %6264 = vsyncadd [#allocation3], 4294964224  ;;  %v8799_v0 = vmov 0.0   ;;  %v8801_v1 = vmov 0   ;;  %vm6272_vm0 = vmmov 0   ;;  %v8797_v28 = vmov 1  }
  0x14   :  { %5756 = vmatprep.subr.bf16.mxu1 %v8799_v0  ;;  %579 = vmatprep.mubr.bf16.mxu0 %v8801_v1  ;;  %v6326_v2 = vld [vmem:[#allocation2 + $0x4] ss:$12 sps:$4 sm:$0xff]   ;;  %v6328_v3 = vld [vmem:[#allocation2] ss:$12 sps:$4 sm:$0xff]   ;;  %v6331_v4 = vld [vmem:[#allocation2 + $0x1c] ss:$12 sps:$4 sm:$0xff]  }
  0x15   :  { %5928 = vset.pattern.permute.xlu1 %v8801_v1  ;;  %5927 = vset.pattern.permute.xlu0 %v8801_v1  ;;  %v6334_v5 = vld [vmem:[#allocation2 + $0x18] ss:$12 sps:$4 sm:$0xff]   ;;  %v5967_v6 = vld [vmem:[#allocation2 + $0x34] ss:$12 sps:$4 sm:$0xff]   ;;  %v5969_v7 = vld [vmem:[#allocation2 + $0x30] ss:$12 sps:$4 sm:$0xff]  }
  0x16   :  { %5772 = vmatprep.mubr.msk.bf16.mxu1 %vm6272_vm0, %v8799_v0  ;;  %547 = vmatprep.subr.bf16.mxu0 %v6326_v2  ;;  %v5970_v8 = vld [vmem:[#allocation2 + $0x4c] ss:$12 sps:$4 sm:$0xff]   ;;  %v5982_v9 = vld [vmem:[#allocation2 + $0x8] ss:$12 sps:$4 sm:$0xff]   ;;  %v5973_v11 = vld [vmem:[#allocation2 + $0x64] ss:$12 sps:$4 sm:$0xff]  }
  0x17   :  { %548 = vmatpush1.bf16.msra.mxu0 %v6328_v3  ;;  %v5972_v10 = vld [vmem:[#allocation2 + $0x48] ss:$12 sps:$4 sm:$0xff]   ;;  %5757 = vmatpush3.bf16.msra.mxu1 %v5982_v9  ;;  %v5986_v12 = vld [vmem:[#allocation2 + $0x20] ss:$12 sps:$4 sm:$0xff]   ;;  %v5987_v16 = vld [vmem:[#allocation2 + $0x38] ss:$12 sps:$4 sm:$0xff]  }
  0x18   :  { %549 = vmatprep.subr.bf16.mxu0 %v6331_v4  ;;  %v5975_v13 = vld [vmem:[#allocation2 + $0x60] ss:$12 sps:$4 sm:$0xff]   ;;  %5758 = vmatprep.subr.bf16.mxu1 %v8799_v0  ;;  %v5976_v14 = vld [vmem:[#allocation2 + $0x7c] ss:$12 sps:$4 sm:$0xff]   ;;  %v39_v17 = vld [vmem:[%s8791_s0 + $0x18] sm:$0x1] }
  0x19   :  { %v36_v15 = vld [vmem:[%s8791_s0] sm:$0x1]  ;;  %v5978_v18 = vld [vmem:[#allocation2 + $0x78] ss:$12 sps:$4 sm:$0xff]   ;;  %v5988_v20 = vld [vmem:[#allocation2 + $0x50] ss:$12 sps:$4 sm:$0xff]  }
  0x1a   :  { %67 = vperm.xlu1 %5928, %v36_v15   ;;  %v5979_v19 = vld [vmem:[#allocation2 + $0x94] ss:$12 sps:$4 sm:$0xff]   ;;  %v37_v22 = vld [vmem:[%s8791_s0 + $0x8] sm:$0x1]  ;;  %v5981_v23 = vld [vmem:[#allocation2 + $0x90] ss:$12 sps:$4 sm:$0xff]  }
  0x1b   :  { %550 = vmatpush1.bf16.msra.mxu0 %v6334_v5  ;;  %5759 = vmatpush3.bf16.msra.mxu1 %v5986_v12  ;;  %v40_v21 = vld [vmem:[%s8791_s0 + $0x20] sm:$0x1]  ;;  %v5983_v24 = vld [vmem:[#allocation2 + $0xac] ss:$12 sps:$4 sm:$0xff]   ;;  %v5989_v25 = vld [vmem:[#allocation2 + $0x68] ss:$12 sps:$4 sm:$0xff]   ;;  %v46_v12 = vlaneseq }
  0x1c   :  { %551 = vmatprep.subr.bf16.mxu0 %v5967_v6  ;;  %5760 = vmatprep.subr.bf16.mxu1 %v8799_v0  ;;  %v5985_v26 = vld [vmem:[#allocation2 + $0xa8] ss:$12 sps:$4 sm:$0xff]   ;;  %v38_v27 = vld [vmem:[%s8791_s0 + $0x10] sm:$0x1]  ;;  %v5990_v29 = vld [vmem:[#allocation2 + $0x80] ss:$12 sps:$4 sm:$0xff]  }
  0x1d   :  { %72 = vperm.xlu0 %5927, %v37_v22   ;;  %v5991_v30 = vld [vmem:[#allocation2 + $0x98] ss:$12 sps:$4 sm:$0xff]   ;;  %v41_v31 = vld [vmem:[%s8791_s0 + $0x28] sm:$0x1]  ;;  %v5992_v32 = vld [vmem:[#allocation2 + $0xb0] ss:$12 sps:$4 sm:$0xff]  }
  0x1e   :  { %82 = vperm.xlu1 %5928, %v39_v17   ;;  %v42_v33 = vld [vmem:[%s8791_s0 + $0x30] sm:$0x1]  ;;  %v43_v34 = vld [vmem:[%s8791_s0 + $0x38] sm:$0x1]  ;;  %v716_v35 = vld [vmem:[%s8791_s0 + $0x9] sm:$0x1] }
  0x1f   :  { %552 = vmatpush1.bf16.msra.mxu0 %v5969_v7  ;;  %5761 = vmatpush3.bf16.msra.mxu1 %v5987_v16  ;;  %v715_v36 = vld [vmem:[%s8791_s0 + $0x1] sm:$0x1]  ;;  %v717_v37 = vld [vmem:[%s8791_s0 + $0x11] sm:$0x1]  ;;  %v720_v38 = vld [vmem:[%s8791_s0 + $0x29] sm:$0x1] }
  0x20   :  { %553 = vmatprep.subr.bf16.mxu0 %v5970_v8  ;;  %5762 = vmatprep.subr.bf16.mxu1 %v8799_v0  ;;  %v718_v39 = vld [vmem:[%s8791_s0 + $0x19] sm:$0x1]  ;;  %v721_v40 = vld [vmem:[%s8791_s0 + $0x31] sm:$0x1]  ;;  %v719_v41 = vld [vmem:[%s8791_s0 + $0x21] sm:$0x1] }
  0x21   :  { %5929 = vset.pattern.permute.xlu0 %v8797_v28  ;;  %v722_v42 = vld [vmem:[%s8791_s0 + $0x39] sm:$0x1]  ;;  %v5993_v43 = vld [vmem:[#allocation2 + $0x8] ss:$12 sps:$4 sm:$0xff]   ;;  %v5994_v44 = vld [vmem:[#allocation2 + $0x20] ss:$12 sps:$4 sm:$0xff]  }
  0x22   :  { %87 = vperm.xlu1 %5928, %v40_v21   ;;  %231 = vperm.xlu0 %5929, %v37_v22   ;;  %v6413_v45 = vld [vmem:[#allocation2 + $0x34] ss:$12 sps:$4 sm:$0xff]   ;;  %v6416_v46 = vld [vmem:[#allocation2 + $0x30] ss:$12 sps:$4 sm:$0xff]   ;;  %v5998_v47 = vld [vmem:[#allocation2 + $0x38] ss:$12 sps:$4 sm:$0xff]  }
  0x23   :  { %554 = vmatpush1.bf16.msra.mxu0 %v5972_v10  ;;  %5763 = vmatpush3.bf16.msra.mxu1 %v5988_v20  ;;  %v6420_v48 = vld [vmem:[#allocation2 + $0x4c] ss:$12 sps:$4 sm:$0xff]   ;;  %v6423_v49 = vld [vmem:[#allocation2 + $0x48] ss:$12 sps:$4 sm:$0xff]   ;;  %v6002_v50 = vld [vmem:[#allocation2 + $0x50] ss:$12 sps:$4 sm:$0xff]  }
  0x24   :  { %555 = vmatprep.subr.bf16.mxu0 %v5973_v11  ;;  %5764 = vmatprep.subr.bf16.mxu1 %v8799_v0  ;;  %v6427_v51 = vld [vmem:[#allocation2 + $0x64] ss:$12 sps:$4 sm:$0xff]   ;;  %v6430_v52 = vld [vmem:[#allocation2 + $0x60] ss:$12 sps:$4 sm:$0xff]   ;;  %v6006_v53 = vld [vmem:[#allocation2 + $0x68] ss:$12 sps:$4 sm:$0xff]  }
  0x25   :  { %v6434_v54 = vld [vmem:[#allocation2 + $0x7c] ss:$12 sps:$4 sm:$0xff]   ;;  %v6436_v55 = vld [vmem:[#allocation2 + $0x78] ss:$12 sps:$4 sm:$0xff]   ;;  %v6010_v56 = vld [vmem:[#allocation2 + $0x80] ss:$12 sps:$4 sm:$0xff]  }
  0x26   :  { %5931 = vset.pattern.permute.xlu1 %v8797_v28  ;;  %5930 = vset.pattern.permute.xlu0 %v8801_v1  ;;  %v6441_v57 = vld [vmem:[#allocation2 + $0x94] ss:$12 sps:$4 sm:$0xff]   ;;  %v6443_v58 = vld [vmem:[#allocation2 + $0x90] ss:$12 sps:$4 sm:$0xff]   ;;  %v6014_v59 = vld [vmem:[#allocation2 + $0x98] ss:$12 sps:$4 sm:$0xff]  }
  0x27   :  { %556 = vmatpush1.bf16.msra.mxu0 %v5975_v13  ;;  %5765 = vmatpush3.bf16.msra.mxu1 %v5989_v25  ;;  %v6448_v60 = vld [vmem:[#allocation2 + $0xa8] ss:$12 sps:$4 sm:$0xff]   ;;  %v6450_v61 = vld [vmem:[#allocation2 + $0xac] ss:$12 sps:$4 sm:$0xff]   ;;  %v6018_v62 = vld [vmem:[#allocation2 + $0xb0] ss:$12 sps:$4 sm:$0xff]  }
  0x28   :  { %557 = vmatprep.subr.bf16.mxu0 %v5976_v14  ;;  %5766 = vmatprep.subr.bf16.mxu1 %v8799_v0  ;;  %v1388_v63 = vld [vmem:[%s8791_s0 + $0xa] sm:$0x1]  ;;  %v1391_v7 = vld [vmem:[%s8791_s0 + $0x22] sm:$0x1]  ;;  %v1393_v8 = vld [vmem:[%s8791_s0 + $0x32] sm:$0x1] }
  0x29   :  { %235 = vperm.xlu1 %5931, %v38_v27   ;;  %77 = vperm.xlu0 %5930, %v38_v27   ;;  %v1394_v11 = vld [vmem:[%s8791_s0 + $0x3a] sm:$0x1]  ;;  %v6517_v22 = vld [vmem:[%s8792_s1 + $0x1] ss:$2 sm:$0x7]  ;;  %vm170_vm1 = vcmask 1041409  }
  0x2a   :  { %vm173_vm2 = vcmask 1042434   ;;  %vm176_vm3 = vcmask 1043459   ;;  %vm179_vm4 = vcmask 1044484   ;;  %vm182_vm5 = vcmask 1045509  }
  0x2b   :  { %558 = vmatpush1.bf16.msra.mxu0 %v5978_v18  ;;  %5767 = vmatpush3.bf16.msra.mxu1 %v5990_v29  ;;  %vm185_vm6 = vcmask 1046534   ;;  %vm188_vm7 = vcmask 1047559  }
  0x2c   :  { %559 = vmatprep.subr.bf16.mxu0 %v5979_v19  ;;  %5768 = vmatprep.subr.bf16.mxu1 %v8799_v0  ;;  %v6505_v19 = vld [vmem:[%s8792_s1] ss:$2 sm:$0x7] }
  0x2d   :  { %227 = vperm.xlu1 %5931, %v36_v15   ;;  %92 = vperm.xlu0 %5930, %v41_v31   ;;  %v6493_v15 = vshrl.u32 %v46_v12, 7 }
  0x2f   :  { %560 = vmatpush1.bf16.msra.mxu0 %v5981_v23  ;;  %5769 = vmatpush3.bf16.msra.mxu1 %v5991_v30  ;;  %v6508_v20 = vsub.s32 1, %v6493_v15 }
  0x30   :  { %561 = vmatprep.subr.bf16.mxu0 %v5983_v24  ;;  %5770 = vmatprep.subr.bf16.mxu1 %v8799_v0 }
  0x31   :  { %239 = vperm.xlu1 %5931, %v39_v17   ;;  %97 = vperm.xlu0 %5930, %v42_v33   ;;  %v6498_v17 = vsub.s32 0, %v6493_v15  ;;  %v6523_v24 = vrot.slane %v6505_v19, %v6508_v20  ;;  %v6537_v30 = vrot.slane %v6517_v22, %v6508_v20 }
  0x33   :  { %562 = vmatpush1.bf16.msra.mxu0 %v5985_v26  ;;  %5771 = vmatpush3.bf16.msra.mxu1 %v5992_v32  ;;  %v6529_v26 = vrot.slane %v6517_v22, %v6498_v17 }
  0x34   :  { %1219 = vmatprep.subr.bf16.mxu0 %v6326_v2  ;;  %5776 = vmatprep.subr.bf16.mxu1 %v8799_v0  ;;  %v1387_v2 = vld [vmem:[%s8791_s0 + $0x2] sm:$0x1] }
  0x35   :  { %243 = vperm.xlu1 %5931, %v40_v21   ;;  %102 = vperm.xlu0 %5930, %v43_v34   ;;  %v6512_v21 = vrot.slane %v6505_v19, %v6498_v17 }
  0x36   :  { %580 = vmatmul.mubr.bf16.vlgmr.msra.gmra.mrb[0].mxu0 %v8801_v1  ;;  %5773 = vmatmul.mubr.bf16.vlgmr.msra.gmra.mrb[0].mxu1 %v8801_v1 }
  0x37   :  { %1220 = vmatpush1.bf16.msra.mxu0 %v6328_v3  ;;  %1251 = vmatprep.mubr.bf16.mxu0 %v8801_v1  ;;  %v1390_v3 = vld [vmem:[%s8791_s0 + $0x1a] sm:$0x1] }
  0x38   :  { %1221 = vmatprep.subr.bf16.mxu0 %v6331_v4  ;;  %5792 = vmatprep.mubr.msk.bf16.mxu1 %vm6272_vm0, %v8799_v0  ;;  %v1389_v4 = vld [vmem:[%s8791_s0 + $0x12] sm:$0x1] }
  0x39   :  { %247 = vperm.xlu1 %5931, %v41_v31   ;;  %5932 = vset.pattern.permute.xlu0 %v8797_v28 }
  0x3a   :  { %251 = vperm.xlu0 %5932, %v42_v33   ;;  %5777 = vmatpush3.bf16.msra.mxu1 %v5993_v43 }
  0x3b   :  { %1222 = vmatpush1.bf16.msra.mxu0 %v6334_v5  ;;  %5778 = vmatprep.subr.bf16.mxu1 %v8799_v0  ;;  %v1392_v5 = vld [vmem:[%s8791_s0 + $0x2a] sm:$0x1] }
  0x3c   :  { %1223 = vmatprep.subr.bf16.mxu0 %v6413_v45 }
  0x3d   :  { %255 = vperm.xlu1 %5931, %v43_v34  }
  0x3e   :  { %902 = vperm.xlu0 %5932, %v716_v35   ;;  %5779 = vmatpush3.bf16.msra.mxu1 %v5994_v44 }
  0x3f   :  { %5780 = vmatprep.subr.bf16.mxu1 %v8799_v0  ;;  %1224 = vmatpush1.bf16.msra.mxu0 %v6416_v46 }
  0x40   :  { %1225 = vmatprep.subr.bf16.mxu0 %v6420_v48 }
  0x41   :  { %5933 = vset.pattern.permute.xlu1 %v8801_v1 }
  0x42   :  { %751 = vperm.xlu1 %5933, %v716_v35   ;;  %5934 = vset.pattern.permute.xlu0 %v8801_v1 }
  0x43   :  { %756 = vperm.xlu0 %5934, %v717_v37   ;;  %5781 = vmatpush3.bf16.msra.mxu1 %v5998_v47 }
  0x44   :  { %5782 = vmatprep.subr.bf16.mxu1 %v8799_v0  ;;  %1226 = vmatpush1.bf16.msra.mxu0 %v6423_v49 }
  0x45   :  { %1227 = vmatprep.subr.bf16.mxu0 %v6427_v51 }
  0x46   :  { %746 = vperm.xlu1 %5933, %v715_v36  }
  0x47   :  { %771 = vperm.xlu0 %5934, %v720_v38   ;;  %5783 = vmatpush3.bf16.msra.mxu1 %v6002_v50 }
  0x48   :  { %5784 = vmatprep.subr.bf16.mxu1 %v8799_v0  ;;  %1228 = vmatpush1.bf16.msra.mxu0 %v6430_v52 }
  0x49   :  { %1229 = vmatprep.subr.bf16.mxu0 %v6434_v54 }
  0x4a   :  { %761 = vperm.xlu1 %5933, %v718_v39  }
  0x4b   :  { %776 = vperm.xlu0 %5934, %v721_v40   ;;  %5785 = vmatpush3.bf16.msra.mxu1 %v6006_v53 }
  0x4c   :  { %5786 = vmatprep.subr.bf16.mxu1 %v8799_v0  ;;  %1230 = vmatpush1.bf16.msra.mxu0 %v6436_v55 }
  0x4d   :  { %1231 = vmatprep.subr.bf16.mxu0 %v6441_v57 }
  0x4e   :  { %766 = vperm.xlu1 %5933, %v719_v41  }
  0x4f   :  { %781 = vperm.xlu0 %5934, %v722_v42   ;;  %5787 = vmatpush3.bf16.msra.mxu1 %v6010_v56 }
  0x50   :  { %5788 = vmatprep.subr.bf16.mxu1 %v8799_v0  ;;  %1232 = vmatpush1.bf16.msra.mxu0 %v6443_v58 }
  0x51   :  { %1233 = vmatprep.subr.bf16.mxu0 %v6450_v61 }
  0x52   :  { %5935 = vset.pattern.permute.xlu1 %v8797_v28 }
  0x53   :  { %906 = vperm.xlu1 %5935, %v717_v37   ;;  %5936 = vset.pattern.permute.xlu0 %v8797_v28  ;;  %v6550_v37 = vsub.s32 2, %v6493_v15 }
  0x54   :  { %922 = vperm.xlu0 %5936, %v721_v40   ;;  %5789 = vmatpush3.bf16.msra.mxu1 %v6014_v59 }
  0x55   :  { %5790 = vmatprep.subr.bf16.mxu1 %v8799_v0  ;;  %1234 = vmatpush1.bf16.msra.mxu0 %v6448_v60 }
  0x57   :  { %898 = vperm.xlu1 %5935, %v715_v36  }
  0x58   :  { %5791 = vmatpush3.bf16.msra.mxu1 %v6018_v62  ;;  %1574 = vperm.xlu0 %5936, %v1388_v63  }
  0x59   :  { %5796 = vmatprep.subr.bf16.mxu1 %v8799_v0 }
  0x5b   :  { %910 = vperm.xlu1 %5935, %v718_v39  }
  0x5c   :  { %5938 = vset.pattern.permute.xlu0 %v8801_v1 }
  0x5d   :  { %1428 = vperm.xlu0 %5938, %v1389_v4  }
  0x5f   :  { %914 = vperm.xlu1 %5935, %v719_v41  }
  0x61   :  { %1443 = vperm.xlu0 %5938, %v1392_v5  }
  0x63   :  { %918 = vperm.xlu1 %5935, %v720_v38  }
  0x65   :  { %1448 = vperm.xlu0 %5938, %v1393_v8  }
  0x67   :  { %926 = vperm.xlu1 %5935, %v722_v42  }
  0x69   :  { %1453 = vperm.xlu0 %5938, %v1394_v11  }
  0x6b   :  { %5937 = vset.pattern.permute.xlu1 %v8801_v1 }
  0x6c   :  { %1423 = vperm.xlu1 %5937, %v1388_v63  }
  0x6d   :  { %5940 = vset.pattern.permute.xlu0 %v8797_v28 }
  0x6e   :  { %1594 = vperm.xlu0 %5940, %v1393_v8  }
  0x70   :  { %1418 = vperm.xlu1 %5937, %v1387_v2  }
  0x74   :  { %1433 = vperm.xlu1 %5937, %v1390_v3  }
  0x78   :  { %1438 = vperm.xlu1 %5937, %v1391_v7  }
  0x7c   :  { %5939 = vset.pattern.permute.xlu1 %v8797_v28 }
  0x7d   :  { %1578 = vperm.xlu1 %5939, %v1389_v4  }
  0x81   :  { %1570 = vperm.xlu1 %5939, %v1387_v2  }
  0x85   :  { %1582 = vperm.xlu1 %5939, %v1390_v3  }
  0x89   :  { %1586 = vperm.xlu1 %5939, %v1391_v7  }
  0x8d   :  { %1590 = vperm.xlu1 %5939, %v1392_v5  }
  0x91   :  { %1598 = vperm.xlu1 %5939, %v1394_v11  }
  0x95   :  { %5941 = vset.pattern.permute.xlu1 %v8801_v1 }
  0x99   :  { %v6472_v6 = vpop.permute.xlu1 %67 }
  0x9a   :  { %v121_v33 = vmul.f32 %v6512_v21, %v6472_v6  ;;  %v122_v39 = vmul.f32 %v6523_v24, %v6472_v6 }
  0x9c   :  { %v6482_v10 = vpop.permute.xlu0 %72 }
  0x9d   :  { %v6480_v9 = vpop.permute.xlu1 %82  ;;  %v124_v27 = vmul.f32 %v6512_v21, %v6482_v10  ;;  %v125_v29 = vmul.f32 %v6523_v24, %v6482_v10 }
  0x9e   :  { %v130_v38 = vmul.f32 %v6512_v21, %v6480_v9  ;;  %v131_v56 = vmul.f32 %v6523_v24, %v6480_v9 }
  0x9f   :  { %v169_v34 = vrot.slane %v124_v27, 7  ;;  %v190_v40 = vrot.slane %v125_v29, 7 }
  0xa0   :  { %v175_v59 = vrot.slane %v130_v38, 5 }
  0xa1   :  { %v6488_v13 = vpop.permute.xlu1 %87  ;;  %v6490_v14 = vpop.permute.xlu0 %231  ;;  %v171_v47 = vsel %vm170_vm1, %v169_v34, %v121_v33  ;;  %v191_v3 = vsel %vm170_vm1, %v190_v40, %v122_v39  ;;  %v194_v34 = vrot.slane %v131_v56, 5 }
  0xa2   :  { %v277_v35 = vmul.f32 %v6529_v26, %v6490_v14  ;;  %v278_v43 = vmul.f32 %v6537_v30, %v6490_v14  ;;  %v133_v62 = vmul.f32 %v6512_v21, %v6488_v13  ;;  %v134_v29 = vmul.f32 %v6523_v24, %v6488_v13 }
  0xa4   :  { %v322_v53 = vrot.slane %v277_v35, 7  ;;  %v336_v12 = vrot.slane %v278_v43, 7  ;;  %v178_v35 = vrot.slane %v133_v62, 4  ;;  %v196_v62 = vrot.slane %v134_v29, 4 }
  0xa8   :  { %v6495_v16 = vpop.permute.xlu1 %235  ;;  %v6500_v18 = vpop.permute.xlu0 %77 }
  0xa9   :  { %v127_v32 = vmul.f32 %v6512_v21, %v6500_v18  ;;  %v128_v41 = vmul.f32 %v6523_v24, %v6500_v18  ;;  %v280_v42 = vmul.f32 %v6529_v26, %v6495_v16  ;;  %v281_v2 = vmul.f32 %v6537_v30, %v6495_v16 }
  0xab   :  { %v172_v44 = vrot.slane %v127_v32, 6  ;;  %v192_v5 = vrot.slane %v128_v41, 6  ;;  %v324_v8 = vrot.slane %v280_v42, 6  ;;  %v338_v40 = vrot.slane %v281_v2, 6 }
  0xac   :  { %v6519_v23 = vpop.permute.xlu1 %227  ;;  %v6525_v25 = vpop.permute.xlu0 %92 }
  0xad   :  { %v274_v50 = vmul.f32 %v6529_v26, %v6519_v23  ;;  %v275_v11 = vmul.f32 %v6537_v30, %v6519_v23  ;;  %v174_v27 = vsel %vm173_vm2, %v172_v44, %v171_v47  ;;  %v136_v33 = vmul.f32 %v6512_v21, %v6525_v25 }
  0xae   :  { %v177_v42 = vsel %vm176_vm3, %v175_v59, %v174_v27  ;;  %v193_v43 = vsel %vm173_vm2, %v192_v5, %v191_v3 }
  0xaf   :  { %v323_v32 = vsel %vm170_vm1, %v322_v53, %v274_v50  ;;  %v337_v47 = vsel %vm170_vm1, %v336_v12, %v275_v11  ;;  %v137_v50 = vmul.f32 %v6523_v24, %v6525_v25  ;;  %v180_v12 = vsel %vm179_vm4, %v178_v35, %v177_v42 }
  0xb0   :  { %v6539_v31 = vpop.permute.xlu1 %239  ;;  %v6547_v36 = vpop.permute.xlu0 %97  ;;  %v325_v44 = vsel %vm173_vm2, %v324_v8, %v323_v32  ;;  %v195_v8 = vsel %vm176_vm3, %v194_v34, %v193_v43  ;;  %v339_v27 = vsel %vm173_vm2, %v338_v40, %v337_v47 }
  0xb1   :  { %v283_v4 = vmul.f32 %v6529_v26, %v6539_v31  ;;  %v284_v38 = vmul.f32 %v6537_v30, %v6539_v31  ;;  %v139_v56 = vmul.f32 %v6512_v21, %v6547_v36  ;;  %v140_v29 = vmul.f32 %v6523_v24, %v6547_v36 }
  0xb2   :  { %v198_v28 = vrot.slane %v137_v50, 3  ;;  %v197_v40 = vsel %vm179_vm4, %v196_v62, %v195_v8  ;;  %v6634_v62 = vld [vmem:[%s8794_s3] sm:$0x7] }
  0xb3   :  { %v326_v41 = vrot.slane %v283_v4, 5  ;;  %v181_v4 = vrot.slane %v136_v33, 3  ;;  %v340_v5 = vrot.slane %v284_v38, 5  ;;  %v184_v38 = vrot.slane %v139_v56, 2 }
  0xb4   :  { %v6570_v63 = vpop.permute.xlu1 %243  ;;  %v6577_v7 = vpop.permute.xlu0 %102  ;;  %v200_v47 = vrot.slane %v140_v29, 2 }
  0xb5   :  { %v286_v39 = vmul.f32 %v6529_v26, %v6570_v63  ;;  %v287_v2 = vmul.f32 %v6537_v30, %v6570_v63  ;;  %v327_v32 = vsel %vm176_vm3, %v326_v41, %v325_v44  ;;  %v142_v33 = vmul.f32 %v6512_v21, %v6577_v7 }
  0xb6   :  { %v183_v35 = vsel %vm182_vm5, %v181_v4, %v180_v12  ;;  %v341_v42 = vsel %vm176_vm3, %v340_v5, %v339_v27  ;;  %v143_v21 = vmul.f32 %v6523_v24, %v6577_v7  ;;  %v199_v4 = vsel %vm182_vm5, %v198_v28, %v197_v40 }
  0xb7   :  { %v328_v11 = vrot.slane %v286_v39, 4  ;;  %v342_v39 = vrot.slane %v287_v2, 4  ;;  %v187_v56 = vrot.slane %v142_v33, 1  ;;  %v186_v5 = vsel %vm185_vm6, %v184_v38, %v183_v35  ;;  %v6653_v38 = vld [vmem:[%s8795_s4] sm:$0x7] }
  0xb8   :  { %v6597_v53 = vpop.permute.xlu1 %247  ;;  %v202_v27 = vrot.slane %v143_v21, 1 }
  0xb9   :  { %v289_v59 = vmul.f32 %v6529_v26, %v6597_v53  ;;  %v6605_v3 = vpop.permute.xlu0 %251  ;;  %v290_v0 = vmul.f32 %v6537_v30, %v6597_v53  ;;  %v329_v43 = vsel %vm179_vm4, %v328_v11, %v327_v32  ;;  %v343_v24 = vsel %vm179_vm4, %v342_v39, %v341_v42 }
  0xba   :  { %v292_v34 = vmul.f32 %v6529_v26, %v6605_v3  ;;  %v293_v2 = vmul.f32 %v6537_v30, %v6605_v3  ;;  %v49_v32 = vrot.slane %v6634_v62, %v6498_v17  ;;  %v189_v33 = vsel %vm188_vm7, %v187_v56, %v186_v5 }
  0xbb   :  { %v330_v41 = vrot.slane %v289_v59, 3  ;;  %v344_v59 = vrot.slane %v290_v0, 3  ;;  %v201_v0 = vsel %vm185_vm6, %v200_v47, %v199_v4  ;;  %v53_v39 = vrot.slane %v6634_v62, %v6508_v20 }
  0xbc   :  { %v6623_v44 = vpop.permute.xlu1 %255  ;;  %v332_v8 = vrot.slane %v292_v34, 2  ;;  %v346_v29 = vrot.slane %v293_v2, 2  ;;  %v221_v40 = vadd.f32 %v189_v33, %v49_v32  ;;  %v203_v42 = vsel %vm188_vm7, %v202_v27, %v201_v0 }
  0xbd   :  { %v295_v50 = vmul.f32 %v6529_v26, %v6623_v44  ;;  %v331_v11 = vsel %vm182_vm5, %v330_v41, %v329_v43  ;;  %v6642_v26 = vrot.slane %v6505_v19, %v6550_v37  ;;  %v296_v12 = vmul.f32 %v6537_v30, %v6623_v44 }
  0xbe   :  { %v333_v19 = vsel %vm185_vm6, %v332_v8, %v331_v11  ;;  %v345_v34 = vsel %vm182_vm5, %v344_v59, %v343_v24  ;;  %v6659_v30 = vrot.slane %v6517_v22, %v6550_v37  ;;  %v407_v41 = vrot.slane %v6653_v38, %v6498_v17 }
  0xbf   :  { %v334_v28 = vrot.slane %v295_v50, 1  ;;  %v348_v35 = vrot.slane %v296_v12, 1  ;;  %v126_v43 = vmul.f32 %v6642_v26, %v6482_v10  ;;  %v347_v47 = vsel %vm185_vm6, %v346_v29, %v345_v34 }
  0xc0   :  { %v411_v22 = vrot.slane %v6653_v38, %v6508_v20  ;;  %v222_v56 = vadd.f32 %v203_v42, %v53_v39  ;;  %v129_v2 = vmul.f32 %v6642_v26, %v6500_v18  ;;  %v123_v10 = vmul.f32 %v6642_v26, %v6472_v6 }
  0xc1   :  { %v335_v21 = vsel %vm188_vm7, %v334_v28, %v333_v19  ;;  %v349_v5 = vsel %vm188_vm7, %v348_v35, %v347_v47  ;;  %v204_v24 = vrot.slane %v126_v43, 7  ;;  %v279_v11 = vmul.f32 %v6659_v30, %v6490_v14 }
  0xc2   :  { %v367_v4 = vadd.f32 %v335_v21, %v221_v40  ;;  %v132_v28 = vmul.f32 %v6642_v26, %v6480_v9  ;;  %v368_v18 = vadd.f32 %v349_v5, %v222_v56  ;;  %v282_v29 = vmul.f32 %v6659_v30, %v6495_v16 }
  0xc3   :  { %v206_v33 = vrot.slane %v129_v2, 6  ;;  %v205_v34 = vsel %vm170_vm1, %v204_v24, %v123_v10  ;;  %v276_v6 = vmul.f32 %v6659_v30, %v6519_v23  ;;  %v350_v39 = vrot.slane %v279_v11, 7 }
  0xc4   :  { %v135_v35 = vmul.f32 %v6642_v26, %v6488_v13  ;;  %v208_v40 = vrot.slane %v132_v28, 5  ;;  %v285_v9 = vmul.f32 %v6659_v30, %v6539_v31  ;;  %v138_v21 = vmul.f32 %v6642_v26, %v6525_v25 }
  0xc5   :  { %v207_v16 = vsel %vm173_vm2, %v206_v33, %v205_v34  ;;  %v351_v43 = vsel %vm170_vm1, %v350_v39, %v276_v6  ;;  %v288_v13 = vmul.f32 %v6659_v30, %v6570_v63  ;;  %v291_v25 = vmul.f32 %v6659_v30, %v6597_v53 }
  0xc6   :  { %v354_v56 = vrot.slane %v285_v9, 5  ;;  %v209_v2 = vsel %vm176_vm3, %v208_v40, %v207_v16  ;;  %v212_v5 = vrot.slane %v138_v21, 3  ;;  %v144_v24 = vmul.f32 %v6642_v26, %v6577_v7 }
  0xc7   :  { %v297_v28 = vmul.f32 %v6659_v30, %v6623_v44 }
  0xc9   :  { %v362_v34 = vrot.slane %v297_v28, 1  ;;  %v6746_v28 = vld [vmem:[#allocation2 + $0x18] ss:$12 sps:$4 sm:$0xff]  }
 0x109   :  { %v581_v50 = vpop.f32.mrb[0].mxu0  ;;  %v622_v42 = vpop.f32.mrb[0].mxu1 }
 0x10a   :  { %v582_v59 = vadd.f32 %v581_v50, %v407_v41  ;;  %v583_v8 = vpop.f32.mrb[1].mxu0  ;;  %v352_v41 = vrot.slane %v282_v29, 6  ;;  %v5774_v47 = vpop.f32.mrb[1].mxu1 }
 0x10b   :  { %v584_v12 = vadd.f32 %v583_v8, %v411_v22  ;;  %v585_v27 = vpop.f32.mrb[2].mxu0  ;;  %v210_v22 = vrot.slane %v135_v35, 4  ;;  %v625_v50 = vpop.f32.mrb[2].mxu1  ;;  %v356_v8 = vrot.slane %v288_v13, 4 }
 0x10c   :  { %v628_v32 = vadd.f32 %v582_v59, %v367_v4  ;;  %v586_v0 = vpop.f32.mrb[3].mxu0  ;;  %v5775_v31 = vpop.f32.mrb[3].mxu1  ;;  %v353_v4 = vsel %vm173_vm2, %v352_v41, %v351_v43  ;;  %v141_v59 = vmul.f32 %v6642_v26, %v6547_v36  ;;  %v294_v27 = vmul.f32 %v6659_v30, %v6605_v3 }
 0x10d   :  { %v635_v14 = vadd.f32 %v584_v12, %v368_v18  ;;  %v211_v10 = vsel %vm179_vm4, %v210_v22, %v209_v2  ;;  %v355_v63 = vsel %vm176_vm3, %v354_v56, %v353_v4  ;;  %v216_v18 = vrot.slane %v144_v24, 1 }
 0x10e   :  { %v5461_v19 = vmul.f32 -1.442695, %v628_v32  ;;  %v214_v12 = vrot.slane %v141_v59, 2  ;;  %v213_v36 = vsel %vm182_vm5, %v212_v5, %v211_v10  ;;  %v358_v32 = vrot.slane %v291_v25, 3 }
 0x10f   :  { %v5462_v23 = vmul.f32 -1.442695, %v635_v14  ;;  %v357_v53 = vsel %vm179_vm4, %v356_v8, %v355_v63  ;;  %v360_v33 = vrot.slane %v294_v27, 2  ;;  %v57_v26 = vrot.slane %v6634_v62, %v6550_v37 }
 0x110   :  { %6139 = vpow2.f32 %v5461_v19  ;;  %v215_v29 = vsel %vm185_vm6, %v214_v12, %v213_v36  ;;  %v359_v7 = vsel %vm182_vm5, %v358_v32, %v357_v53  ;;  %v415_v3 = vrot.slane %v6653_v38, %v6550_v37  ;;  %v6021_v36 = vld [vmem:[#allocation2 + $0x4] ss:$12 sps:$4 sm:$0xff]   ;;  %v6740_v32 = vld [vmem:[#allocation2] ss:$12 sps:$4 sm:$0xff]   ;;  %v6743_v53 = vld [vmem:[#allocation2 + $0x1c] ss:$12 sps:$4 sm:$0xff]  }
 0x111   :  { %6141 = vpow2.f32 %v5462_v23  ;;  %v217_v6 = vsel %vm188_vm7, %v216_v18, %v215_v29  ;;  %v361_v39 = vsel %vm185_vm6, %v360_v33, %v359_v7  ;;  %v6274_v62 = vmov 1966171168   ;;  %1891 = vmatprep.subr.bf16.mxu0 %v6021_v36  ;;  %v6026_v18 = vld [vmem:[#allocation2 + $0x20] ss:$12 sps:$4 sm:$0xff]   ;;  %v6027_v29 = vld [vmem:[#allocation2 + $0x38] ss:$12 sps:$4 sm:$0xff]  }
 0x112   :  { %v223_v30 = vadd.f32 %v217_v6, %v57_v26  ;;  %v623_v14 = vadd.f32 %v622_v42, %v415_v3  ;;  %v363_v35 = vsel %vm188_vm7, %v362_v34, %v361_v39  ;;  %v652_v43 = vunpack.c.l.s4 %v6274_v62  ;;  %v6028_v33 = vld [vmem:[#allocation2 + $0x50] ss:$12 sps:$4 sm:$0xff]   ;;  %v6029_v7 = vld [vmem:[#allocation2 + $0x68] ss:$12 sps:$4 sm:$0xff]   ;;  %v2066_v3 = vld [vmem:[%s8791_s0 + $0x3b] sm:$0x1]  ;;  %v6803_v6 = vpop.permute.xlu0 %902 }
 0x114   :  { %v369_v9 = vadd.f32 %v363_v35, %v223_v30  ;;  %v653_v21 = vunpack.c.0.s8 %v652_v43  ;;  %v6813_v30 = vld [vmem:[%s8792_s1] ss:$2 sm:$0x7] }
 0x115   :  { %v6819_v35 = vrot.slane %v6813_v30, %v6498_v17 }
 0x116   :  { %v6722_v50 = vsub.s32 %v653_v21, %v6493_v15  ;;  %v8810_v15 = vmov 0.0  }
 0x11a   :  { %v6140_v11 = vpop.eup %6139 }
 0x11b   :  { %v632_v0 = vadd.f32 1.0, %v6140_v11  ;;  %v6142_v19 = vpop.eup %6141 }
 0x11c   :  { %v639_v44 = vadd.f32 1.0, %v6142_v19  ;;  %v8811_v19 = vmov 1  }
 0x11d   :  { %6143 = vrcp.f32 %v632_v0  ;;  %v6022_v0 = vld [vmem:[#allocation2 + $0x8] ss:$12 sps:$4 sm:$0xff]  }
 0x11e   :  { %6145 = vrcp.f32 %v639_v44  ;;  %v6808_v44 = vpop.permute.xlu0 %756 }
 0x127   :  { %v6144_v40 = vpop.eup %6143 }
 0x128   :  { %v642_v41 = vmul.f32 %v6144_v40, %v623_v14  ;;  %v6146_v38 = vpop.eup %6145  ;;  %v6824_v40 = vld [vmem:[%s8792_s1 + $0x1] ss:$2 sm:$0x7] }
 0x129   :  { %v645_v23 = vsub.f32 1.0, %v6146_v38  ;;  %v647_v13 = vmul.f32 0.0, %v6146_v38  ;;  %v6836_v62 = vrot.slane %v6824_v40, %v6498_v17  ;;  %v6840_v43 = vrot.slane %v6824_v40, %v6508_v20 }
 0x12a   :  { %v643_v16 = vadd.f32 %v642_v41, %v369_v9  ;;  %v6826_v9 = vpop.permute.xlu0 %771  ;;  %v6830_v41 = vrot.slane %v6813_v30, %v6508_v20 }
 0x12c   :  { %6147 = vtanh.f32 %v643_v16 }
 0x136   :  { %v6148_v47 = vpop.eup %6147 }
 0x137   :  { %v646_v22 = vmul.f32 %v6148_v47, %v645_v23  ;;  %v806_v23 = vmul.f32 %v6819_v35, %v6808_v44 }
 0x139   :  { %v6724_v42 = vadd.f32 %v647_v13, %v646_v22  ;;  %v948_v13 = vmul.f32 %v6836_v62, %v6803_v6 }
 0x13b   :  { %v650_v56 = vcombine.high %v6724_v42, %v6724_v42  ;;  %v657_v2 = vrot.slane %v6724_v42, %v6722_v50  ;;  %v1041_v31 = vpack.c.bf16 %v6724_v42, %v6724_v42 }
 0x13d   :  { %v664_v4 = vrot.slane %v650_v56, %v6722_v50  ;;  %v665_v59 = vcombine.high %v657_v2, %v657_v2  ;;  %v673_v5 = vrot.slane %v657_v2, %v6722_v50  ;;  %5463 = vst.sshfl [vmem:[#allocation5] sm:$0x1 pattern:$0x73625140] %v657_v2  ;;  %1252 = vmatmul.mubr.bf16.vlgmr.msra.gmra.mrb[4].mxu0 %v1041_v31  ;;  %v6852_v56 = vpop.permute.xlu0 %776 }
 0x13e   :  { %5793 = vmatmul.mubr.bf16.vlgmr.msra.gmra.mrb[4].mxu1 %v1041_v31  ;;  %1923 = vmatprep.mubr.bf16.mxu0 %v8801_v1  ;;  %v949_v2 = vmul.f32 %v6840_v43, %v6803_v6 }
 0x13f   :  { %5812 = vmatprep.mubr.msk.bf16.mxu1 %vm6272_vm0, %v8810_v15  ;;  %v666_v25 = vcombine.high %v664_v4, %v664_v4  ;;  %v680_v8 = vrot.slane %v664_v4, %v6722_v50  ;;  %v687_v10 = vrot.slane %v665_v59, %v6722_v50  ;;  %v695_v63 = vcombine.high %v673_v5, %v673_v5 }
 0x140   :  { %5464 = vst.sshfl [vmem:[#allocation5 + $0x8] sm:$0x1 pattern:$0x73625140] %v665_v59  ;;  %1892 = vmatpush1.bf16.msra.mxu0 %v6740_v32  ;;  %5797 = vmatpush3.bf16.msra.mxu1 %v6022_v0 }
 0x141   :  { %5465 = vst.sshfl [vmem:[#allocation5 + $0x20] sm:$0x1 pattern:$0x73625140] %v664_v4  ;;  %v694_v24 = vrot.slane %v666_v25, %v6722_v50  ;;  %v696_v11 = vcombine.high %v680_v8, %v680_v8  ;;  %v697_v12 = vcombine.high %v687_v10, %v687_v10  ;;  %709 = vst [vmem:[#allocation5 + $0x10] sm:$0x1] %v695_v63  ;;  %5798 = vmatprep.subr.bf16.mxu1 %v8810_v15 }
 0x142   :  { %5466 = vst.sshfl [vmem:[#allocation5 + $0x28] sm:$0x1 pattern:$0x73625140] %v666_v25  ;;  %1893 = vmatprep.subr.bf16.mxu0 %v6743_v53  ;;  %v807_v4 = vmul.f32 %v6830_v41, %v6808_v44  ;;  %v850_v8 = vrot.slane %v806_v23, 6 }
 0x143   :  { %v698_v27 = vcombine.high %v694_v24, %v694_v24  ;;  %710 = vst [vmem:[#allocation5 + $0x18] sm:$0x1] %v697_v12  ;;  %713 = vst [vmem:[#allocation5 + $0x30] sm:$0x1] %v696_v11  ;;  %v993_v24 = vrot.slane %v948_v13, 7 }
 0x144   :  { %1894 = vmatpush1.bf16.msra.mxu0 %v6746_v28  ;;  %5799 = vmatpush3.bf16.msra.mxu1 %v6026_v18 }
 0x145   :  { %714 = vst [vmem:[#allocation5 + $0x38] sm:$0x1] %v698_v27  ;;  %1895 = vmatprep.subr.bf16.mxu0 %v6413_v45  ;;  %5800 = vmatprep.subr.bf16.mxu1 %v8810_v15  ;;  %v6030_v45 = vld [vmem:[#allocation2 + $0x80] ss:$12 sps:$4 sm:$0xff]  }
 0x148   :  { %1896 = vmatpush1.bf16.msra.mxu0 %v6416_v46  ;;  %5801 = vmatpush3.bf16.msra.mxu1 %v6027_v29  ;;  %v6031_v46 = vld [vmem:[#allocation2 + $0x98] ss:$12 sps:$4 sm:$0xff]   ;;  %v864_v29 = vrot.slane %v807_v4, 6  ;;  %v818_v4 = vmul.f32 %v6819_v35, %v6852_v56 }
 0x149   :  { %1897 = vmatprep.subr.bf16.mxu0 %v6420_v48  ;;  %5802 = vmatprep.subr.bf16.mxu1 %v8810_v15  ;;  %v6032_v48 = vld [vmem:[#allocation2 + $0xb0] ss:$12 sps:$4 sm:$0xff]  }
 0x14c   :  { %1898 = vmatpush1.bf16.msra.mxu0 %v6423_v49  ;;  %5803 = vmatpush3.bf16.msra.mxu1 %v6028_v33  ;;  %v2060_v49 = vld [vmem:[%s8791_s0 + $0xb] sm:$0x1] }
 0x14d   :  { %1899 = vmatprep.subr.bf16.mxu0 %v6427_v51  ;;  %5804 = vmatprep.subr.bf16.mxu1 %v8810_v15  ;;  %v6772_v51 = vpop.permute.xlu1 %751 }
 0x14e   :  { %2095 = vperm.xlu1 %5941, %v2060_v49   ;;  %2246 = vperm.xlu0 %5940, %v2060_v49   ;;  %v803_v16 = vmul.f32 %v6819_v35, %v6772_v51  ;;  %v804_v21 = vmul.f32 %v6830_v41, %v6772_v51 }
 0x150   :  { %1900 = vmatpush1.bf16.msra.mxu0 %v6430_v52  ;;  %5805 = vmatpush3.bf16.msra.mxu1 %v6029_v7  ;;  %v2059_v52 = vld [vmem:[%s8791_s0 + $0x3] sm:$0x1]  ;;  %v848_v47 = vrot.slane %v803_v16, 7  ;;  %v862_v59 = vrot.slane %v804_v21, 7  ;;  %v6878_v7 = vpop.permute.xlu0 %781 }
 0x151   :  { %1901 = vmatprep.subr.bf16.mxu0 %v6434_v54  ;;  %5806 = vmatprep.subr.bf16.mxu1 %v8810_v15  ;;  %v2061_v54 = vld [vmem:[%s8791_s0 + $0x13] sm:$0x1] }
 0x152   :  { %2090 = vperm.xlu1 %5941, %v2059_v52   ;;  %5942 = vset.pattern.permute.xlu0 %v8801_v1 }
 0x153   :  { %2100 = vperm.xlu0 %5942, %v2061_v54  }
 0x154   :  { %1902 = vmatpush1.bf16.msra.mxu0 %v6436_v55  ;;  %5807 = vmatpush3.bf16.msra.mxu1 %v6030_v45  ;;  %v2062_v55 = vld [vmem:[%s8791_s0 + $0x1b] sm:$0x1] }
 0x155   :  { %1903 = vmatprep.subr.bf16.mxu0 %v6441_v57  ;;  %5808 = vmatprep.subr.bf16.mxu1 %v8810_v15  ;;  %v6784_v57 = vpop.permute.xlu1 %746 }
 0x156   :  { %2105 = vperm.xlu1 %5941, %v2062_v55   ;;  %v800_v22 = vmul.f32 %v6819_v35, %v6784_v57  ;;  %v801_v5 = vmul.f32 %v6830_v41, %v6784_v57 }
 0x158   :  { %1904 = vmatpush1.bf16.msra.mxu0 %v6443_v58  ;;  %5809 = vmatpush3.bf16.msra.mxu1 %v6031_v46  ;;  %v2064_v58 = vld [vmem:[%s8791_s0 + $0x2b] sm:$0x1]  ;;  %v849_v63 = vsel %vm170_vm1, %v848_v47, %v800_v22  ;;  %v863_v45 = vsel %vm170_vm1, %v862_v59, %v801_v5 }
 0x159   :  { %1905 = vmatprep.subr.bf16.mxu0 %v6450_v61  ;;  %5810 = vmatprep.subr.bf16.mxu1 %v8810_v15  ;;  %v2065_v61 = vld [vmem:[%s8791_s0 + $0x33] sm:$0x1]  ;;  %v6795_v26 = vpop.permute.xlu1 %761  ;;  %v865_v47 = vsel %vm173_vm2, %v864_v29, %v863_v45  ;;  %v821_v29 = vmul.f32 %v6819_v35, %v6878_v7  ;;  %v858_v45 = vrot.slane %v818_v4, 2 }
 0x15a   :  { %2115 = vperm.xlu0 %5942, %v2064_v58   ;;  %v809_v31 = vmul.f32 %v6819_v35, %v6795_v26  ;;  %v810_v12 = vmul.f32 %v6830_v41, %v6795_v26 }
 0x15c   :  { %1906 = vmatpush1.bf16.msra.mxu0 %v6448_v60  ;;  %5811 = vmatpush3.bf16.msra.mxu1 %v6032_v48  ;;  %v2063_v60 = vld [vmem:[%s8791_s0 + $0x23] sm:$0x1]  ;;  %v852_v0 = vrot.slane %v809_v31, 5  ;;  %v851_v48 = vsel %vm173_vm2, %v850_v8, %v849_v63  ;;  %v816_v31 = vmul.f32 %v6830_v41, %v6826_v9  ;;  %v6907_v63 = vpop.permute.xlu0 %922 }
 0x15d   :  { %2563 = vmatprep.subr.bf16.mxu0 %v6021_v36  ;;  %5816 = vmatprep.subr.bf16.mxu1 %v8810_v15  ;;  %v6801_v34 = vpop.permute.xlu1 %766  ;;  %v1007_v36 = vrot.slane %v949_v2, 7 }
 0x15e   :  { %2110 = vperm.xlu1 %5941, %v2063_v60   ;;  %2120 = vperm.xlu0 %5942, %v2065_v61   ;;  %v812_v27 = vmul.f32 %v6819_v35, %v6801_v34  ;;  %v853_v23 = vsel %vm176_vm3, %v852_v0, %v851_v48  ;;  %v963_v48 = vmul.f32 %v6836_v62, %v6907_v63 }
 0x160   :  { %v1003_v4 = vrot.slane %v963_v48, 2 }
 0x161   :  { %v6806_v39 = vpop.permute.xlu1 %906 }
 0x162   :  { %5943 = vset.pattern.permute.xlu1 %v8811_v19  ;;  %2125 = vperm.xlu0 %5942, %v2066_v3   ;;  %v951_v25 = vmul.f32 %v6836_v62, %v6806_v39  ;;  %v952_v18 = vmul.f32 %v6840_v43, %v6806_v39 }
 0x163   :  { %2250 = vperm.xlu1 %5943, %v2061_v54  }
 0x164   :  { %v995_v46 = vrot.slane %v951_v25, 6  ;;  %v1009_v21 = vrot.slane %v952_v18, 6  ;;  %v819_v18 = vmul.f32 %v6830_v41, %v6852_v56 }
 0x165   :  { %v6815_v14 = vpop.permute.xlu1 %898 }
 0x166   :  { %5944 = vset.pattern.permute.xlu0 %v8811_v19  ;;  %v945_v11 = vmul.f32 %v6836_v62, %v6815_v14  ;;  %v946_v49 = vmul.f32 %v6840_v43, %v6815_v14 }
 0x167   :  { %2242 = vperm.xlu1 %5943, %v2059_v52   ;;  %2266 = vperm.xlu0 %5944, %v2065_v61   ;;  %v813_v52 = vmul.f32 %v6830_v41, %v6801_v34 }
 0x168   :  { %v994_v54 = vsel %vm170_vm1, %v993_v24, %v945_v11  ;;  %v1008_v2 = vsel %vm170_vm1, %v1007_v36, %v946_v49 }
 0x169   :  { %v6842_v38 = vpop.permute.xlu1 %910  ;;  %v996_v13 = vsel %vm173_vm2, %v995_v46, %v994_v54  ;;  %v868_v59 = vrot.slane %v813_v52, 4  ;;  %v1010_v36 = vsel %vm173_vm2, %v1009_v21, %v1008_v2  ;;  %v860_v21 = vrot.slane %v821_v29, 1 }
 0x16a   :  { %v954_v33 = vmul.f32 %v6836_v62, %v6842_v38  ;;  %v955_v61 = vmul.f32 %v6840_v43, %v6842_v38 }
 0x16b   :  { %2254 = vperm.xlu1 %5943, %v2062_v55   ;;  %v815_v55 = vmul.f32 %v6819_v35, %v6826_v9 }
 0x16c   :  { %v997_v22 = vrot.slane %v954_v33, 5  ;;  %v870_v33 = vrot.slane %v816_v31, 3 }
 0x16d   :  { %v6865_v10 = vpop.permute.xlu1 %914  ;;  %v856_v5 = vrot.slane %v815_v55, 3 }
 0x16e   :  { %v958_v25 = vmul.f32 %v6840_v43, %v6865_v10  ;;  %v998_v0 = vsel %vm176_vm3, %v997_v22, %v996_v13  ;;  %v6936_v22 = vld [vmem:[%s8794_s3] sm:$0x7] }
 0x16f   :  { %2258 = vperm.xlu1 %5943, %v2063_v60   ;;  %v854_v60 = vrot.slane %v812_v27, 4 }
 0x170   :  { %v1013_v55 = vrot.slane %v958_v25, 4 }
 0x171   :  { %v6893_v16 = vpop.permute.xlu1 %918  ;;  %v855_v11 = vsel %vm179_vm4, %v854_v60, %v853_v23  ;;  %v964_v23 = vmul.f32 %v6840_v43, %v6907_v63 }
 0x172   :  { %v960_v8 = vmul.f32 %v6836_v62, %v6893_v16  ;;  %v961_v46 = vmul.f32 %v6840_v43, %v6893_v16  ;;  %v857_v52 = vsel %vm182_vm5, %v856_v5, %v855_v11  ;;  %v6944_v5 = vrot.slane %v6813_v30, %v6550_v37 }
 0x173   :  { %2262 = vperm.xlu1 %5943, %v2064_v58   ;;  %v866_v58 = vrot.slane %v810_v12, 5  ;;  %v1011_v12 = vrot.slane %v955_v61, 5  ;;  %v822_v61 = vmul.f32 %v6830_v41, %v6878_v7  ;;  %v859_v2 = vsel %vm185_vm6, %v858_v45, %v857_v52 }
 0x174   :  { %v1015_v31 = vrot.slane %v961_v46, 3  ;;  %v1017_v11 = vrot.slane %v964_v23, 2  ;;  %v805_v48 = vmul.f32 %v6944_v5, %v6772_v51 }
 0x175   :  { %v867_v24 = vsel %vm176_vm3, %v866_v58, %v865_v47  ;;  %v6921_v49 = vpop.permute.xlu1 %926  ;;  %v1001_v58 = vrot.slane %v960_v8, 3  ;;  %v1012_v60 = vsel %vm176_vm3, %v1011_v12, %v1010_v36  ;;  %v728_v8 = vrot.slane %v6936_v22, %v6498_v17  ;;  %v6955_v36 = vld [vmem:[%s8795_s4] sm:$0x7] }
 0x176   :  { %v869_v54 = vsel %vm179_vm4, %v868_v59, %v867_v24  ;;  %v966_v47 = vmul.f32 %v6836_v62, %v6921_v49  ;;  %v1014_v41 = vsel %vm179_vm4, %v1013_v55, %v1012_v60  ;;  %v967_v25 = vmul.f32 %v6840_v43, %v6921_v49 }
 0x177   :  { %2270 = vperm.xlu1 %5943, %v2066_v3   ;;  %v957_v3 = vmul.f32 %v6836_v62, %v6865_v10  ;;  %v871_v13 = vsel %vm182_vm5, %v870_v33, %v869_v54  ;;  %v874_v62 = vrot.slane %v822_v61, 1  ;;  %v6961_v43 = vrot.slane %v6824_v40, %v6550_v37 }
 0x178   :  { %v1005_v12 = vrot.slane %v966_v47, 1  ;;  %v1019_v29 = vrot.slane %v967_v25, 1  ;;  %v1079_v45 = vrot.slane %v6955_v36, %v6498_v17  ;;  %v1083_v40 = vrot.slane %v6955_v36, %v6508_v20 }
 0x179   :  { %v999_v27 = vrot.slane %v957_v3, 4  ;;  %v872_v3 = vrot.slane %v819_v18, 2  ;;  %v732_v18 = vrot.slane %v6936_v22, %v6508_v20  ;;  %v876_v47 = vrot.slane %v805_v48, 7 }
 0x17b   :  { %5945 = vset.pattern.permute.xlu1 %v8801_v1  ;;  %v1000_v35 = vsel %vm179_vm4, %v999_v27, %v998_v0  ;;  %v873_v24 = vsel %vm185_vm6, %v872_v3, %v871_v13  ;;  %v861_v27 = vsel %vm188_vm7, %v860_v21, %v859_v2  ;;  %v1016_v0 = vsel %vm182_vm5, %v1015_v31, %v1014_v41 }
 0x17c   :  { %v1002_v59 = vsel %vm182_vm5, %v1001_v58, %v1000_v35  ;;  %v893_v33 = vadd.f32 %v861_v27, %v728_v8  ;;  %v875_v46 = vsel %vm188_vm7, %v874_v62, %v873_v24  ;;  %v1018_v54 = vsel %vm185_vm6, %v1017_v11, %v1016_v0 }
 0x17d   :  { %v1004_v30 = vsel %vm185_vm6, %v1003_v4, %v1002_v59  ;;  %v894_v60 = vadd.f32 %v875_v46, %v732_v18  ;;  %v808_v35 = vmul.f32 %v6944_v5, %v6808_v44  ;;  %v1020_v21 = vsel %vm188_vm7, %v1019_v29, %v1018_v54 }
 0x17e   :  { %v1006_v52 = vsel %vm188_vm7, %v1005_v12, %v1004_v30  ;;  %v802_v13 = vmul.f32 %v6944_v5, %v6784_v57  ;;  %v950_v2 = vmul.f32 %v6961_v43, %v6803_v6  ;;  %v811_v44 = vmul.f32 %v6944_v5, %v6795_v26 }
 0x17f   :  { %v1038_v61 = vadd.f32 %v1006_v52, %v893_v33  ;;  %v1039_v8 = vadd.f32 %v1020_v21, %v894_v60  ;;  %v953_v24 = vmul.f32 %v6961_v43, %v6806_v39  ;;  %v878_v11 = vrot.slane %v808_v35, 6 }
 0x180   :  { %v877_v57 = vsel %vm170_vm1, %v876_v47, %v802_v13  ;;  %v1021_v27 = vrot.slane %v950_v2, 7  ;;  %v947_v6 = vmul.f32 %v6961_v43, %v6815_v14  ;;  %v814_v0 = vmul.f32 %v6944_v5, %v6801_v34 }
 0x181   :  { %v880_v18 = vrot.slane %v811_v44, 5  ;;  %v956_v26 = vmul.f32 %v6961_v43, %v6842_v38  ;;  %v1023_v29 = vrot.slane %v953_v24, 6  ;;  %v879_v39 = vsel %vm173_vm2, %v878_v11, %v877_v57 }
 0x182   :  { %v1022_v33 = vsel %vm170_vm1, %v1021_v27, %v947_v6  ;;  %v882_v48 = vrot.slane %v814_v0, 4  ;;  %v959_v14 = vmul.f32 %v6961_v43, %v6865_v10  ;;  %v820_v38 = vmul.f32 %v6944_v5, %v6852_v56 }
 0x183   :  { %v881_v34 = vsel %vm176_vm3, %v880_v18, %v879_v39  ;;  %v1025_v52 = vrot.slane %v956_v26, 5  ;;  %v1024_v54 = vsel %vm173_vm2, %v1023_v29, %v1022_v33  ;;  %v823_v10 = vmul.f32 %v6944_v5, %v6878_v7 }
 0x184   :  { %v1027_v60 = vrot.slane %v959_v14, 4  ;;  %v965_v21 = vmul.f32 %v6961_v43, %v6907_v63  ;;  %v968_v13 = vmul.f32 %v6961_v43, %v6921_v49 }
 0x185   :  { %v1026_v35 = vsel %vm176_vm3, %v1025_v52, %v1024_v54  ;;  %v888_v47 = vrot.slane %v823_v10, 1  ;;  %v6033_v52 = vld [vmem:[#allocation2 + $0x8] ss:$12 sps:$4 sm:$0xff]  }
 0x186   :  { %v7047_v54 = vld [vmem:[#allocation2 + $0x34] ss:$12 sps:$4 sm:$0xff]  }
 0x187   :  { %v6046_v10 = vld [vmem:[#allocation2 + $0x68] ss:$12 sps:$4 sm:$0xff]  }
 0x210   :  { %v1253_v55 = vpop.f32.mrb[4].mxu0 }
 0x211   :  { %v6974_v58 = vpop.f32.mrb[4].mxu1  ;;  %v1254_v3 = vadd.f32 %v1253_v55, %v1079_v45  ;;  %v1255_v23 = vpop.f32.mrb[5].mxu0  ;;  %v817_v45 = vmul.f32 %v6944_v5, %v6826_v9  ;;  %v962_v55 = vmul.f32 %v6961_v43, %v6893_v16  ;;  %v883_v9 = vsel %vm179_vm4, %v882_v48, %v881_v34 }
 0x212   :  { %v5794_v51 = vpop.f32.mrb[5].mxu1  ;;  %v1256_v31 = vadd.f32 %v1255_v23, %v1083_v40  ;;  %v1257_v4 = vpop.f32.mrb[6].mxu0  ;;  %v1028_v16 = vsel %vm179_vm4, %v1027_v60, %v1026_v35  ;;  %v736_v5 = vrot.slane %v6936_v22, %v6550_v37  ;;  %v7061_v60 = vld [vmem:[#allocation2 + $0x64] ss:$12 sps:$4 sm:$0xff]   ;;  %v7064_v35 = vld [vmem:[#allocation2 + $0x60] ss:$12 sps:$4 sm:$0xff]  }
 0x213   :  { %v1297_v41 = vpop.f32.mrb[6].mxu1  ;;  %v1300_v59 = vadd.f32 %v1254_v3, %v1038_v61  ;;  %v1258_v62 = vpop.f32.mrb[7].mxu0  ;;  %v884_v40 = vrot.slane %v817_v45, 3  ;;  %v886_v3 = vrot.slane %v820_v38, 2  ;;  %v1029_v23 = vrot.slane %v962_v55, 3 }
 0x214   :  { %v5795_v25 = vpop.f32.mrb[7].mxu1  ;;  %v1307_v30 = vadd.f32 %v1256_v31, %v1039_v8  ;;  %v1031_v31 = vrot.slane %v965_v21, 2  ;;  %v1033_v41 = vrot.slane %v968_v13, 1  ;;  %v1087_v62 = vrot.slane %v6955_v36, %v6550_v37  ;;  %v7050_v38 = vld [vmem:[#allocation2 + $0x30] ss:$12 sps:$4 sm:$0xff]  }
 0x215   :  { %v5492_v12 = vmul.f32 -1.442695, %v1300_v59  ;;  %v885_v56 = vsel %vm182_vm5, %v884_v40, %v883_v9  ;;  %v1030_v7 = vsel %vm182_vm5, %v1029_v23, %v1028_v16  ;;  %v6038_v40 = vld [vmem:[#allocation2 + $0x38] ss:$12 sps:$4 sm:$0xff]   ;;  %v7057_v55 = vld [vmem:[#allocation2 + $0x48] ss:$12 sps:$4 sm:$0xff]  }
 0x216   :  { %v5493_v46 = vmul.f32 -1.442695, %v1307_v30  ;;  %v887_v2 = vsel %vm185_vm6, %v886_v3, %v885_v56  ;;  %v1032_v59 = vsel %vm185_vm6, %v1031_v31, %v1030_v7  ;;  %v1295_v44 = vadd.f32 %v6974_v58, %v1087_v62  ;;  %v6042_v9 = vld [vmem:[#allocation2 + $0x50] ss:$12 sps:$4 sm:$0xff]   ;;  %v7070_v3 = vld [vmem:[#allocation2 + $0x78] ss:$12 sps:$4 sm:$0xff]   ;;  %v7093_v31 = vpop.permute.xlu1 %1423 }
 0x217   :  { %6149 = vpow2.f32 %v5492_v12  ;;  %v889_v4 = vsel %vm188_vm7, %v888_v47, %v887_v2  ;;  %v1034_v43 = vsel %vm188_vm7, %v1033_v41, %v1032_v59  ;;  %v6050_v21 = vld [vmem:[#allocation2 + $0x80] ss:$12 sps:$4 sm:$0xff]   ;;  %v7077_v23 = vld [vmem:[#allocation2 + $0x90] ss:$12 sps:$4 sm:$0xff]   ;;  %v7084_v47 = vld [vmem:[#allocation2 + $0xa8] ss:$12 sps:$4 sm:$0xff]  }
 0x218   :  { %6151 = vpow2.f32 %v5493_v46  ;;  %v895_v25 = vadd.f32 %v889_v4, %v736_v5  ;;  %v7074_v56 = vld [vmem:[#allocation2 + $0x94] ss:$12 sps:$4 sm:$0xff]   ;;  %v7081_v16 = vld [vmem:[#allocation2 + $0xac] ss:$12 sps:$4 sm:$0xff]   ;;  %8813 = vst [vmem:[#allocation9_spill] sm:$0xff] %v7084_v47 }
 0x219   :  { %8812 = vst [vmem:[#allocation8_spill] sm:$0xff] %v7081_v16  ;;  %v6058_v13 = vld [vmem:[#allocation2 + $0xb0] ss:$12 sps:$4 sm:$0xff]   ;;  %v2732_v2 = vld [vmem:[%s8791_s0 + $0xc] sm:$0x1] }
 0x21a   :  { %v1040_v24 = vadd.f32 %v1034_v43, %v895_v25  ;;  %2767 = vperm.xlu1 %5945, %v2732_v2   ;;  %2918 = vperm.xlu0 %5944, %v2732_v2   ;;  %v2731_v7 = vld [vmem:[%s8791_s0 + $0x4] sm:$0x1]  ;;  %v2733_v5 = vld [vmem:[%s8791_s0 + $0x14] sm:$0x1]  ;;  %v7105_v4 = vpop.permute.xlu1 %1418  ;;  %v2736_v41 = vld [vmem:[%s8791_s0 + $0x2c] sm:$0x1] }
 0x21b   :  { %v2735_v59 = vld [vmem:[%s8791_s0 + $0x24] sm:$0x1]  ;;  %v2737_v62 = vld [vmem:[%s8791_s0 + $0x34] sm:$0x1] }
 0x21e   :  { %2762 = vperm.xlu1 %5945, %v2731_v7   ;;  %5946 = vset.pattern.permute.xlu0 %v8801_v1  ;;  %v7116_v25 = vpop.permute.xlu1 %1433 }
 0x21f   :  { %2772 = vperm.xlu0 %5946, %v2733_v5  }
 0x221   :  { %v6150_v61 = vpop.eup %6149 }
 0x222   :  { %v1304_v51 = vadd.f32 1.0, %v6150_v61  ;;  %v6152_v63 = vpop.eup %6151  ;;  %v7067_v61 = vld [vmem:[#allocation2 + $0x7c] ss:$12 sps:$4 sm:$0xff]   ;;  %v7122_v43 = vpop.permute.xlu1 %1438 }
 0x223   :  { %v1311_v49 = vadd.f32 1.0, %v6152_v63  ;;  %v2734_v63 = vld [vmem:[%s8791_s0 + $0x1c] sm:$0x1]  ;;  %2787 = vperm.xlu0 %5946, %v2736_v41  }
 0x224   :  { %6153 = vrcp.f32 %v1304_v51  ;;  %v6054_v51 = vld [vmem:[#allocation2 + $0x98] ss:$12 sps:$4 sm:$0xff]   ;;  %2777 = vperm.xlu1 %5945, %v2734_v63  }
 0x225   :  { %6155 = vrcp.f32 %v1311_v49  ;;  %v2738_v49 = vld [vmem:[%s8791_s0 + $0x3c] sm:$0x1] }
 0x227   :  { %2792 = vperm.xlu0 %5946, %v2737_v62  }
 0x228   :  { %2782 = vperm.xlu1 %5945, %v2735_v59  }
 0x22b   :  { %2797 = vperm.xlu0 %5946, %v2738_v49  }
 0x22c   :  { %5947 = vset.pattern.permute.xlu1 %v8811_v19 }
 0x22d   :  { %2922 = vperm.xlu1 %5947, %v2733_v5  }
 0x22e   :  { %v6154_v8 = vpop.eup %6153 }
 0x22f   :  { %v1314_v11 = vmul.f32 %v6154_v8, %v1295_v44  ;;  %v6156_v12 = vpop.eup %6155  ;;  %v7124_v44 = vpop.permute.xlu0 %1574  ;;  %5948 = vset.pattern.permute.xlu0 %v8811_v19 }
 0x230   :  { %v1317_v57 = vsub.f32 1.0, %v6156_v12  ;;  %v1319_v30 = vmul.f32 %v6156_v12, %v6724_v42  ;;  %2938 = vperm.xlu0 %5948, %v2737_v62   ;;  %v7127_v8 = vpop.permute.xlu1 %1578 }
 0x231   :  { %v1315_v22 = vadd.f32 %v1314_v11, %v1040_v24  ;;  %2914 = vperm.xlu1 %5947, %v2731_v7   ;;  %v7134_v11 = vld [vmem:[%s8792_s1] ss:$2 sm:$0x7] }
 0x232   :  { %v7140_v12 = vrot.slane %v7134_v11, %v6498_v17 }
 0x233   :  { %6157 = vtanh.f32 %v1315_v22  ;;  %v7129_v24 = vpop.permute.xlu0 %1428 }
 0x234   :  { %v7136_v22 = vpop.permute.xlu1 %1570 }
 0x235   :  { %2926 = vperm.xlu1 %5947, %v2734_v63  }
 0x239   :  { %2930 = vperm.xlu1 %5947, %v2735_v59  }
 0x23d   :  { %v6158_v27 = vpop.eup %6157  ;;  %2934 = vperm.xlu1 %5947, %v2736_v41  }
 0x23e   :  { %v1318_v6 = vmul.f32 %v6158_v27, %v1317_v57  ;;  %v7145_v57 = vld [vmem:[%s8792_s1 + $0x1] ss:$2 sm:$0x7]  ;;  %v7147_v27 = vpop.permute.xlu0 %1443 }
 0x240   :  { %v7027_v0 = vadd.f32 %v1319_v30, %v1318_v6  ;;  %v7151_v6 = vrot.slane %v7134_v11, %v6508_v20  ;;  %v1475_v30 = vmul.f32 %v7140_v12, %v7093_v31 }
 0x241   :  { %2942 = vperm.xlu1 %5947, %v2738_v49  }
 0x242   :  { %v1322_v36 = vcombine.high %v7027_v0, %v7027_v0  ;;  %v1329_v58 = vrot.slane %v7027_v0, %v6722_v50  ;;  %v1713_v18 = vpack.c.bf16 %v7027_v0, %v7027_v0 }
 0x244   :  { %v1336_v26 = vrot.slane %v1322_v36, %v6722_v50  ;;  %v1337_v29 = vcombine.high %v1329_v58, %v1329_v58  ;;  %v1345_v39 = vrot.slane %v1329_v58, %v6722_v50  ;;  %5494 = vst.sshfl [vmem:[#allocation5 + $0x1] sm:$0x1 pattern:$0x73625140] %v1329_v58  ;;  %1924 = vmatmul.mubr.bf16.vlgmr.msra.gmra.mrb[8].mxu0 %v1713_v18 }
 0x245   :  { %5813 = vmatmul.mubr.bf16.vlgmr.msra.gmra.mrb[8].mxu1 %v1713_v18  ;;  %2564 = vmatpush1.bf16.msra.mxu0 %v6740_v32  ;;  %v7157_v36 = vrot.slane %v7145_v57, %v6498_v17  ;;  %v7161_v58 = vrot.slane %v7145_v57, %v6508_v20  ;;  %v7163_v18 = vpop.permute.xlu1 %1582 }
 0x246   :  { %2595 = vmatprep.mubr.bf16.mxu0 %v8801_v1  ;;  %v1338_v42 = vcombine.high %v1336_v26, %v1336_v26  ;;  %v1352_v33 = vrot.slane %v1336_v26, %v6722_v50  ;;  %v1359_v45 = vrot.slane %v1337_v29, %v6722_v50  ;;  %v1367_v46 = vcombine.high %v1345_v39, %v1345_v39 }
 0x247   :  { %5495 = vst.sshfl [vmem:[#allocation5 + $0x9] sm:$0x1 pattern:$0x73625140] %v1337_v29  ;;  %2565 = vmatprep.subr.bf16.mxu0 %v6743_v53  ;;  %5832 = vmatprep.mubr.msk.bf16.mxu1 %vm6272_vm0, %v8810_v15  ;;  %v6034_v53 = vld [vmem:[#allocation2 + $0x20] ss:$12 sps:$4 sm:$0xff]   ;;  %v1478_v29 = vmul.f32 %v7140_v12, %v7129_v24  ;;  %v1624_v5 = vmul.f32 %v7161_v58, %v7127_v8 }
 0x248   :  { %5496 = vst.sshfl [vmem:[#allocation5 + $0x21] sm:$0x1 pattern:$0x73625140] %v1336_v26  ;;  %v1366_v48 = vrot.slane %v1338_v42, %v6722_v50  ;;  %v1368_v14 = vcombine.high %v1352_v33, %v1352_v33  ;;  %v1369_v34 = vcombine.high %v1359_v45, %v1359_v45  ;;  %1381 = vst [vmem:[#allocation5 + $0x11] sm:$0x1] %v1367_v46  ;;  %5817 = vmatpush3.bf16.msra.mxu1 %v6033_v52  ;;  %v7173_v45 = vpop.permute.xlu0 %1448 }
 0x249   :  { %5497 = vst.sshfl [vmem:[#allocation5 + $0x29] sm:$0x1 pattern:$0x73625140] %v1338_v42  ;;  %2566 = vmatpush1.bf16.msra.mxu0 %v6746_v28  ;;  %5818 = vmatprep.subr.bf16.mxu1 %v8810_v15  ;;  %v7054_v28 = vld [vmem:[#allocation2 + $0x4c] ss:$12 sps:$4 sm:$0xff]   ;;  %v1476_v26 = vmul.f32 %v7151_v6, %v7093_v31  ;;  %v1472_v42 = vmul.f32 %v7140_v12, %v7105_v4 }
 0x24a   :  { %v1370_v32 = vcombine.high %v1366_v48, %v1366_v48  ;;  %1382 = vst [vmem:[#allocation5 + $0x19] sm:$0x1] %v1369_v34  ;;  %1385 = vst [vmem:[#allocation5 + $0x31] sm:$0x1] %v1368_v14  ;;  %2567 = vmatprep.subr.bf16.mxu0 %v7047_v54  ;;  %v1520_v39 = vrot.slane %v1475_v30, 7  ;;  %v1620_v33 = vmul.f32 %v7157_v36, %v7124_v44  ;;  %5949 = vset.pattern.permute.xlu1 %v8801_v1 }
 0x24b   :  { %v1621_v46 = vmul.f32 %v7161_v58, %v7124_v44  ;;  %v1481_v48 = vmul.f32 %v7140_v12, %v7116_v25  ;;  %v1479_v14 = vmul.f32 %v7151_v6, %v7129_v24  ;;  %v1534_v34 = vrot.slane %v1476_v26, 7 }
 0x24c   :  { %1386 = vst [vmem:[#allocation5 + $0x39] sm:$0x1] %v1370_v32  ;;  %5819 = vmatpush3.bf16.msra.mxu1 %v6034_v53  ;;  %v1473_v32 = vmul.f32 %v7151_v6, %v7105_v4  ;;  %v1623_v52 = vmul.f32 %v7157_v36, %v7127_v8  ;;  %v1522_v53 = vrot.slane %v1478_v29, 6  ;;  %v1626_v41 = vmul.f32 %v7157_v36, %v7163_v18  ;;  %v7199_v59 = vpop.permute.xlu0 %1453 }
 0x24d   :  { %5820 = vmatprep.subr.bf16.mxu1 %v8810_v15  ;;  %2568 = vmatpush1.bf16.msra.mxu0 %v7050_v38  ;;  %v1679_v2 = vrot.slane %v1621_v46, 7  ;;  %v1524_v7 = vrot.slane %v1481_v48, 5  ;;  %v1536_v63 = vrot.slane %v1479_v14, 6  ;;  %v1618_v26 = vmul.f32 %v7161_v58, %v7136_v22 }
 0x24e   :  { %2569 = vmatprep.subr.bf16.mxu0 %v7054_v28  ;;  %v1535_v62 = vsel %vm170_vm1, %v1534_v34, %v1473_v32  ;;  %v1667_v49 = vrot.slane %v1623_v52, 6  ;;  %v1485_v29 = vmul.f32 %v7151_v6, %v7122_v43  ;;  %v1627_v48 = vmul.f32 %v7161_v58, %v7163_v18 }
 0x24f   :  { %v1681_v32 = vrot.slane %v1624_v5, 6 }
 0x250   :  { %5821 = vmatpush3.bf16.msra.mxu1 %v6038_v40  ;;  %v7186_v40 = vpop.permute.xlu1 %1586  ;;  %v1540_v1 = vrot.slane %v1485_v29, 4  ;;  %v1491_v29 = vmul.f32 %v7151_v6, %v7173_v45 }
 0x251   :  { %5822 = vmatprep.subr.bf16.mxu1 %v8810_v15  ;;  %2570 = vmatpush1.bf16.msra.mxu0 %v7057_v55  ;;  %v1629_v14 = vmul.f32 %v7157_v36, %v7186_v40  ;;  %v1630_v5 = vmul.f32 %v7161_v58, %v7186_v40 }
 0x252   :  { %2571 = vmatprep.subr.bf16.mxu0 %v7061_v60 }
 0x254   :  { %5823 = vmatpush3.bf16.msra.mxu1 %v6042_v9  ;;  %v1521_v9 = vsel %vm170_vm1, %v1520_v39, %v1472_v42  ;;  %v1487_v42 = vmul.f32 %v7140_v12, %v7147_v27  ;;  %v7214_v34 = vpop.permute.xlu1 %1590 }
 0x255   :  { %5824 = vmatprep.subr.bf16.mxu1 %v8810_v15  ;;  %2572 = vmatpush1.bf16.msra.mxu0 %v7064_v35  ;;  %v1523_v30 = vsel %vm173_vm2, %v1522_v53, %v1521_v9  ;;  %v1537_v53 = vsel %vm173_vm2, %v1536_v63, %v1535_v62  ;;  %v1669_v9 = vrot.slane %v1626_v41, 5  ;;  %v7228_v63 = vpop.permute.xlu0 %1594  ;;  %v1683_v62 = vrot.slane %v1627_v48, 5 }
 0x256   :  { %2573 = vmatprep.subr.bf16.mxu0 %v7067_v61  ;;  %v1525_v52 = vsel %vm176_vm3, %v1524_v7, %v1523_v30  ;;  %v1528_v19 = vrot.slane %v1487_v42, 3  ;;  %v1632_v7 = vmul.f32 %v7157_v36, %v7214_v34 }
 0x258   :  { %5825 = vmatpush3.bf16.msra.mxu1 %v6046_v10  ;;  %v1665_v10 = vrot.slane %v1620_v33, 7 }
 0x259   :  { %5826 = vmatprep.subr.bf16.mxu1 %v8810_v15  ;;  %2574 = vmatpush1.bf16.msra.mxu0 %v7070_v3 }
 0x25a   :  { %2575 = vmatprep.subr.bf16.mxu0 %v7074_v56 }
 0x25c   :  { %5827 = vmatpush3.bf16.msra.mxu1 %v6050_v21  ;;  %v1617_v21 = vmul.f32 %v7157_v36, %v7136_v22 }
 0x25d   :  { %5828 = vmatprep.subr.bf16.mxu1 %v8810_v15  ;;  %2576 = vmatpush1.bf16.msra.mxu0 %v7077_v23 }
 0x25e   :  { %2577 = vmatprep.subr.bf16.mxu0 %v7081_v16  ;;  %v1666_v39 = vsel %vm170_vm1, %v1665_v10, %v1617_v21  ;;  %v1680_v21 = vsel %vm170_vm1, %v1679_v2, %v1618_v26  ;;  %v1633_v16 = vmul.f32 %v7161_v58, %v7214_v34 }
 0x25f   :  { %v1668_v10 = vsel %vm173_vm2, %v1667_v49, %v1666_v39  ;;  %v1671_v49 = vrot.slane %v1629_v14, 4  ;;  %v1682_v30 = vsel %vm173_vm2, %v1681_v32, %v1680_v21  ;;  %v1493_v39 = vmul.f32 %v7140_v12, %v7199_v59 }
 0x260   :  { %5829 = vmatpush3.bf16.msra.mxu1 %v6054_v51  ;;  %v1482_v51 = vmul.f32 %v7151_v6, %v7116_v25  ;;  %v1670_v26 = vsel %vm176_vm3, %v1669_v9, %v1668_v10  ;;  %v1685_v32 = vrot.slane %v1630_v5, 4  ;;  %v1494_v9 = vmul.f32 %v7151_v6, %v7199_v59 }
 0x261   :  { %5830 = vmatprep.subr.bf16.mxu1 %v8810_v15  ;;  %2578 = vmatpush1.bf16.msra.mxu0 %v7084_v47  ;;  %v1544_v10 = vrot.slane %v1491_v29, 2  ;;  %v1532_v21 = vrot.slane %v1493_v39, 1  ;;  %v7276_v39 = vld [vmem:[%s8795_s4] sm:$0x7] }
 0x262   :  { %v1538_v33 = vrot.slane %v1482_v51, 5  ;;  %v1488_v51 = vmul.f32 %v7151_v6, %v7147_v27 }
 0x264   :  { %5831 = vmatpush3.bf16.msra.mxu1 %v6058_v13  ;;  %v1484_v13 = vmul.f32 %v7140_v12, %v7122_v43  ;;  %v1539_v41 = vsel %vm176_vm3, %v1538_v33, %v1537_v53  ;;  %v1542_v42 = vrot.slane %v1488_v51, 3  ;;  %v1635_v33 = vmul.f32 %v7157_v36, %v7228_v63 }
 0x265   :  { %5836 = vmatprep.subr.bf16.mxu1 %v8810_v15  ;;  %v1541_v14 = vsel %vm179_vm4, %v1540_v1, %v1539_v41  ;;  %v1684_v53 = vsel %vm176_vm3, %v1683_v62, %v1682_v30  ;;  %v1636_v51 = vmul.f32 %v7161_v58, %v7228_v63  ;;  %v7257_v1 = vld [vmem:[%s8794_s3] sm:$0x7]  ;;  %v7265_v62 = vrot.slane %v7134_v11, %v6550_v37 }
 0x266   :  { %v1526_v46 = vrot.slane %v1484_v13, 4  ;;  %v1490_v13 = vmul.f32 %v7140_v12, %v7173_v45  ;;  %v1672_v12 = vsel %vm179_vm4, %v1671_v49, %v1670_v26  ;;  %v1675_v41 = vrot.slane %v1635_v33, 2 }
 0x267   :  { %v1686_v6 = vsel %vm179_vm4, %v1685_v32, %v1684_v53  ;;  %v1400_v30 = vrot.slane %v7257_v1, %v6498_v17  ;;  %v1404_v33 = vrot.slane %v7257_v1, %v6508_v20  ;;  %v1751_v32 = vrot.slane %v7276_v39, %v6498_v17 }
 0x268   :  { %v1527_v2 = vsel %vm179_vm4, %v1526_v46, %v1525_v52  ;;  %v1530_v47 = vrot.slane %v1490_v13, 2  ;;  %v7242_v46 = vpop.permute.xlu1 %1598  ;;  %v1673_v52 = vrot.slane %v1632_v7, 3  ;;  %v1687_v7 = vrot.slane %v1633_v16, 3 }
 0x269   :  { %v1529_v48 = vsel %vm182_vm5, %v1528_v19, %v1527_v2  ;;  %v1638_v13 = vmul.f32 %v7157_v36, %v7242_v46  ;;  %v1543_v19 = vsel %vm182_vm5, %v1542_v42, %v1541_v14  ;;  %v1546_v36 = vrot.slane %v1494_v9, 1 }
 0x26a   :  { %v1531_v5 = vsel %vm185_vm6, %v1530_v47, %v1529_v48  ;;  %v1674_v2 = vsel %vm182_vm5, %v1673_v52, %v1672_v12  ;;  %v1639_v49 = vmul.f32 %v7161_v58, %v7242_v46  ;;  %v1545_v26 = vsel %vm185_vm6, %v1544_v10, %v1543_v19 }
 0x26b   :  { %v1689_v47 = vrot.slane %v1636_v51, 2  ;;  %v1677_v16 = vrot.slane %v1638_v13, 1  ;;  %v1533_v29 = vsel %vm188_vm7, %v1532_v21, %v1531_v5  ;;  %v1676_v11 = vsel %vm185_vm6, %v1675_v41, %v1674_v2 }
 0x26c   :  { %v1688_v42 = vsel %vm182_vm5, %v1687_v7, %v1686_v6  ;;  %v7282_v58 = vrot.slane %v7145_v57, %v6550_v37  ;;  %v1691_v48 = vrot.slane %v1639_v49, 1  ;;  %v1565_v14 = vadd.f32 %v1533_v29, %v1400_v30 }
 0x26d   :  { %v1547_v52 = vsel %vm188_vm7, %v1546_v36, %v1545_v26  ;;  %v1477_v53 = vmul.f32 %v7265_v62, %v7093_v31  ;;  %v1678_v12 = vsel %vm188_vm7, %v1677_v16, %v1676_v11  ;;  %v1690_v9 = vsel %vm185_vm6, %v1689_v47, %v1688_v42 }
 0x26e   :  { %v1755_v57 = vrot.slane %v7276_v39, %v6508_v20  ;;  %v1566_v51 = vadd.f32 %v1547_v52, %v1404_v33  ;;  %v1480_v13 = vmul.f32 %v7265_v62, %v7129_v24  ;;  %v1710_v19 = vadd.f32 %v1678_v12, %v1565_v14 }
 0x26f   :  { %v1692_v7 = vsel %vm188_vm7, %v1691_v48, %v1690_v9  ;;  %v1548_v6 = vrot.slane %v1477_v53, 7  ;;  %v1474_v2 = vmul.f32 %v7265_v62, %v7105_v4  ;;  %v1622_v36 = vmul.f32 %v7282_v58, %v7124_v44 }
 0x270   :  { %v1483_v24 = vmul.f32 %v7265_v62, %v7116_v25  ;;  %v1711_v11 = vadd.f32 %v1692_v7, %v1566_v51  ;;  %v1625_v42 = vmul.f32 %v7282_v58, %v7127_v8  ;;  %v1550_v33 = vrot.slane %v1480_v13, 6 }
 0x271   :  { %v1549_v4 = vsel %vm170_vm1, %v1548_v6, %v1474_v2  ;;  %v1693_v14 = vrot.slane %v1622_v36, 7  ;;  %v1619_v44 = vmul.f32 %v7282_v58, %v7136_v22  ;;  %v1486_v52 = vmul.f32 %v7265_v62, %v7122_v43 }
 0x272   :  { %v1552_v53 = vrot.slane %v1483_v24, 5  ;;  %v1628_v25 = vmul.f32 %v7282_v58, %v7163_v18  ;;  %v1695_v12 = vrot.slane %v1625_v42, 6  ;;  %v1551_v8 = vsel %vm173_vm2, %v1550_v33, %v1549_v4 }
 0x273   :  { %v1694_v9 = vsel %vm170_vm1, %v1693_v14, %v1619_v44  ;;  %v1554_v51 = vrot.slane %v1486_v52, 4  ;;  %v1631_v22 = vmul.f32 %v7282_v58, %v7186_v40  ;;  %v1492_v18 = vmul.f32 %v7265_v62, %v7173_v45 }
 0x274   :  { %v1553_v43 = vsel %vm176_vm3, %v1552_v53, %v1551_v8  ;;  %v1697_v13 = vrot.slane %v1628_v25, 5  ;;  %v1634_v7 = vmul.f32 %v7282_v58, %v7214_v34  ;;  %v1495_v40 = vmul.f32 %v7265_v62, %v7199_v59 }
 0x275   :  { %v1558_v2 = vrot.slane %v1492_v18, 2  ;;  %v1637_v36 = vmul.f32 %v7282_v58, %v7228_v63  ;;  %v1759_v33 = vrot.slane %v7276_v39, %v6550_v37 }
 0x317   :  { %v1925_v10 = vpop.f32.mrb[8].mxu0 }
 0x318   :  { %v7295_v21 = vpop.f32.mrb[8].mxu1  ;;  %v1926_v5 = vadd.f32 %v1925_v10, %v1751_v32  ;;  %v1927_v41 = vpop.f32.mrb[9].mxu0 }
 0x319   :  { %v5814_v31 = vpop.f32.mrb[9].mxu1  ;;  %v1928_v49 = vadd.f32 %v1927_v41, %v1755_v57  ;;  %v1929_v30 = vpop.f32.mrb[10].mxu0  ;;  %v1489_v57 = vmul.f32 %v7265_v62, %v7147_v27  ;;  %v1555_v27 = vsel %vm179_vm4, %v1554_v51, %v1553_v43  ;;  %v1699_v41 = vrot.slane %v1631_v22, 4 }
 0x31a   :  { %v1969_v26 = vpop.f32.mrb[10].mxu1  ;;  %v1972_v47 = vadd.f32 %v1926_v5, %v1710_v19  ;;  %v1930_v16 = vpop.f32.mrb[11].mxu0  ;;  %v1696_v19 = vsel %vm173_vm2, %v1695_v12, %v1694_v9  ;;  %v1408_v62 = vrot.slane %v7257_v1, %v6550_v37  ;;  %v1967_v4 = vadd.f32 %v7295_v21, %v1759_v33 }
 0x31b   :  { %v5815_v29 = vpop.f32.mrb[11].mxu1  ;;  %v1979_v32 = vadd.f32 %v1928_v49, %v1711_v11  ;;  %v1556_v5 = vrot.slane %v1489_v57, 3  ;;  %v1698_v31 = vsel %vm176_vm3, %v1697_v13, %v1696_v19  ;;  %v1701_v49 = vrot.slane %v1634_v7, 3 }
 0x31c   :  { %v5523_v48 = vmul.f32 -1.442695, %v1972_v47  ;;  %v1700_v34 = vsel %vm179_vm4, %v1699_v41, %v1698_v31  ;;  %v1560_v26 = vrot.slane %v1495_v40, 1  ;;  %v1640_v47 = vmul.f32 %v7282_v58, %v7242_v46  ;;  %v6061_v31 = vld [vmem:[#allocation2 + $0x4] ss:$12 sps:$4 sm:$0xff]  }
 0x31d   :  { %v5524_v10 = vmul.f32 -1.442695, %v1979_v32  ;;  %v1557_v45 = vsel %vm182_vm5, %v1556_v5, %v1555_v27  ;;  %v1703_v29 = vrot.slane %v1637_v36, 2  ;;  %v1702_v59 = vsel %vm182_vm5, %v1701_v49, %v1700_v34  ;;  %v7364_v40 = vld [vmem:[#allocation2] ss:$12 sps:$4 sm:$0xff]   ;;  %3235 = vmatprep.subr.bf16.mxu0 %v6061_v31 }
 0x31e   :  { %6159 = vpow2.f32 %v5523_v48  ;;  %v1559_v16 = vsel %vm185_vm6, %v1558_v2, %v1557_v45  ;;  %v1705_v11 = vrot.slane %v1640_v47, 1  ;;  %v7367_v2 = vld [vmem:[#allocation2 + $0x1c] ss:$12 sps:$4 sm:$0xff]   ;;  %v7370_v36 = vld [vmem:[#allocation2 + $0x18] ss:$12 sps:$4 sm:$0xff]  }
 0x31f   :  { %6161 = vpow2.f32 %v5524_v10  ;;  %v1561_v24 = vsel %vm188_vm7, %v1560_v26, %v1559_v16  ;;  %v1704_v42 = vsel %vm185_vm6, %v1703_v29, %v1702_v59  ;;  %v6066_v45 = vld [vmem:[#allocation2 + $0x20] ss:$12 sps:$4 sm:$0xff]   ;;  %v6067_v49 = vld [vmem:[#allocation2 + $0x38] ss:$12 sps:$4 sm:$0xff]   ;;  %v6069_v34 = vld [vmem:[#allocation2 + $0x68] ss:$12 sps:$4 sm:$0xff]  }
 0x320   :  { %v1567_v48 = vadd.f32 %v1561_v24, %v1408_v62  ;;  %v1706_v58 = vsel %vm188_vm7, %v1705_v11, %v1704_v42  ;;  %v3408_v47 = vld [vmem:[%s8791_s0 + $0x2d] sm:$0x1]  ;;  %v3407_v16 = vld [vmem:[%s8791_s0 + $0x25] sm:$0x1]  ;;  %v3409_v29 = vld [vmem:[%s8791_s0 + $0x35] sm:$0x1]  ;;  %v7427_v11 = vpop.permute.xlu0 %2246 }
 0x321   :  { %v3410_v62 = vld [vmem:[%s8791_s0 + $0x3d] sm:$0x1] }
 0x322   :  { %v1712_v44 = vadd.f32 %v1706_v58, %v1567_v48  ;;  %v7437_v48 = vld [vmem:[%s8792_s1] ss:$2 sm:$0x7] }
 0x323   :  { %v7443_v58 = vrot.slane %v7437_v48, %v6498_v17 }
 0x324   :  { %v7432_v33 = vpop.permute.xlu0 %2100 }
 0x328   :  { %v6160_v6 = vpop.eup %6159 }
 0x329   :  { %v1976_v30 = vadd.f32 1.0, %v6160_v6  ;;  %v6162_v63 = vpop.eup %6161  ;;  %v6062_v6 = vld [vmem:[#allocation2 + $0x8] ss:$12 sps:$4 sm:$0xff]  }
 0x32a   :  { %v1983_v46 = vadd.f32 1.0, %v6162_v63  ;;  %v8817_v63 = vmov 1  }
 0x32b   :  { %6163 = vrcp.f32 %v1976_v30  ;;  %v6068_v30 = vld [vmem:[#allocation2 + $0x50] ss:$12 sps:$4 sm:$0xff]  }
 0x32c   :  { %6165 = vrcp.f32 %v1983_v46 }
 0x335   :  { %v6164_v14 = vpop.eup %6163 }
 0x336   :  { %v1986_v32 = vmul.f32 %v6164_v14, %v1967_v4  ;;  %v6166_v52 = vpop.eup %6165  ;;  %v7448_v4 = vld [vmem:[%s8792_s1 + $0x1] ss:$2 sm:$0x7]  ;;  %v7450_v14 = vpop.permute.xlu0 %2115 }
 0x337   :  { %v1989_v53 = vsub.f32 1.0, %v6166_v52  ;;  %v1991_v8 = vmul.f32 %v6166_v52, %v7027_v0  ;;  %v8814_v0 = vmov 0   ;;  %v7464_v52 = vrot.slane %v7448_v4, %v6508_v20 }
 0x338   :  { %v1987_v1 = vadd.f32 %v1986_v32, %v1712_v44  ;;  %v7454_v44 = vrot.slane %v7437_v48, %v6508_v20 }
 0x33a   :  { %6167 = vtanh.f32 %v1987_v1  ;;  %v7460_v1 = vrot.slane %v7448_v4, %v6498_v17 }
 0x344   :  { %v6168_v25 = vpop.eup %6167 }
 0x345   :  { %v1990_v12 = vmul.f32 %v6168_v25, %v1989_v53 }
 0x347   :  { %v7348_v9 = vadd.f32 %v1991_v8, %v1990_v12  ;;  %v2150_v12 = vmul.f32 %v7443_v58, %v7432_v33 }
 0x349   :  { %v1994_v39 = vcombine.high %v7348_v9, %v7348_v9  ;;  %v2001_v21 = vrot.slane %v7348_v9, %v6722_v50  ;;  %v2385_v57 = vpack.c.bf16 %v7348_v9, %v7348_v9 }
 0x34b   :  { %v2008_v10 = vrot.slane %v1994_v39, %v6722_v50  ;;  %v2009_v51 = vcombine.high %v2001_v21, %v2001_v21  ;;  %v2017_v22 = vrot.slane %v2001_v21, %v6722_v50  ;;  %5525 = vst.sshfl [vmem:[#allocation5 + $0x2] sm:$0x1 pattern:$0x73625140] %v2001_v21  ;;  %2596 = vmatmul.mubr.bf16.vlgmr.msra.gmra.mrb[12].mxu0 %v2385_v57 }
 0x34c   :  { %5833 = vmatmul.mubr.bf16.vlgmr.msra.gmra.mrb[12].mxu1 %v2385_v57  ;;  %3267 = vmatprep.mubr.bf16.mxu0 %v8814_v0  ;;  %v2292_v21 = vmul.f32 %v7460_v1, %v7427_v11  ;;  %v7476_v57 = vpop.permute.xlu0 %2120 }
 0x34d   :  { %5852 = vmatprep.mubr.msk.bf16.mxu1 %vm6272_vm0, %v8810_v15  ;;  %v2010_v43 = vcombine.high %v2008_v10, %v2008_v10  ;;  %v2024_v13 = vrot.slane %v2008_v10, %v6722_v50  ;;  %v2031_v19 = vrot.slane %v2009_v51, %v6722_v50  ;;  %v2039_v18 = vcombine.high %v2017_v22, %v2017_v22 }
 0x34e   :  { %5526 = vst.sshfl [vmem:[#allocation5 + $0xa] sm:$0x1 pattern:$0x73625140] %v2009_v51  ;;  %3236 = vmatpush1.bf16.msra.mxu0 %v7364_v40  ;;  %5837 = vmatpush3.bf16.msra.mxu1 %v6062_v6  ;;  %v2151_v22 = vmul.f32 %v7454_v44, %v7432_v33 }
 0x34f   :  { %5527 = vst.sshfl [vmem:[#allocation5 + $0x22] sm:$0x1 pattern:$0x73625140] %v2008_v10  ;;  %v2038_v5 = vrot.slane %v2010_v43, %v6722_v50  ;;  %v2040_v7 = vcombine.high %v2024_v13, %v2024_v13  ;;  %v2041_v27 = vcombine.high %v2031_v19, %v2031_v19  ;;  %2053 = vst [vmem:[#allocation5 + $0x12] sm:$0x1] %v2039_v18  ;;  %5838 = vmatprep.subr.bf16.mxu1 %v8810_v15 }
 0x350   :  { %5528 = vst.sshfl [vmem:[#allocation5 + $0x2a] sm:$0x1 pattern:$0x73625140] %v2010_v43  ;;  %3237 = vmatprep.subr.bf16.mxu0 %v7367_v2  ;;  %v2293_v10 = vmul.f32 %v7464_v52, %v7427_v11  ;;  %v2194_v18 = vrot.slane %v2150_v12, 6 }
 0x351   :  { %v2042_v41 = vcombine.high %v2038_v5, %v2038_v5  ;;  %2054 = vst [vmem:[#allocation5 + $0x1a] sm:$0x1] %v2041_v27  ;;  %2057 = vst [vmem:[#allocation5 + $0x32] sm:$0x1] %v2040_v7  ;;  %v2337_v27 = vrot.slane %v2292_v21, 7 }
 0x352   :  { %3238 = vmatpush1.bf16.msra.mxu0 %v7370_v36  ;;  %5839 = vmatpush3.bf16.msra.mxu1 %v6066_v45  ;;  %v2351_v45 = vrot.slane %v2293_v10, 7 }
 0x353   :  { %2058 = vst [vmem:[#allocation5 + $0x3a] sm:$0x1] %v2042_v41  ;;  %3239 = vmatprep.subr.bf16.mxu0 %v7047_v54  ;;  %5840 = vmatprep.subr.bf16.mxu1 %v8810_v15  ;;  %v6070_v54 = vld [vmem:[#allocation2 + $0x80] ss:$12 sps:$4 sm:$0xff]  }
 0x356   :  { %3240 = vmatpush1.bf16.msra.mxu0 %v7050_v38  ;;  %5841 = vmatpush3.bf16.msra.mxu1 %v6067_v49  ;;  %v6071_v38 = vld [vmem:[#allocation2 + $0x98] ss:$12 sps:$4 sm:$0xff]  }
 0x357   :  { %3241 = vmatprep.subr.bf16.mxu0 %v7054_v28  ;;  %5842 = vmatprep.subr.bf16.mxu1 %v8810_v15  ;;  %v6072_v28 = vld [vmem:[#allocation2 + $0xb0] ss:$12 sps:$4 sm:$0xff]  }
 0x35a   :  { %3242 = vmatpush1.bf16.msra.mxu0 %v7057_v55  ;;  %5843 = vmatpush3.bf16.msra.mxu1 %v6068_v30  ;;  %v8815_v55 = vld [vmem:[#allocation8_spill] sm:$0xff] }
 0x35b   :  { %3243 = vmatprep.subr.bf16.mxu0 %v7061_v60  ;;  %5844 = vmatprep.subr.bf16.mxu1 %v8810_v15  ;;  %v8816_v60 = vld [vmem:[#allocation9_spill] sm:$0xff] }
 0x35e   :  { %3244 = vmatpush1.bf16.msra.mxu0 %v7064_v35  ;;  %5845 = vmatpush3.bf16.msra.mxu1 %v6069_v34  ;;  %v3404_v35 = vld [vmem:[%s8791_s0 + $0xd] sm:$0x1]  ;;  %v2208_v34 = vrot.slane %v2151_v22, 6  ;;  %v2162_v22 = vmul.f32 %v7443_v58, %v7476_v57 }
 0x35f   :  { %3245 = vmatprep.subr.bf16.mxu0 %v7067_v61  ;;  %5846 = vmatprep.subr.bf16.mxu1 %v8810_v15  ;;  %v7396_v61 = vpop.permute.xlu1 %2095 }
 0x360   :  { %3439 = vperm.xlu1 %5949, %v3404_v35   ;;  %3590 = vperm.xlu0 %5948, %v3404_v35   ;;  %v2147_v32 = vmul.f32 %v7443_v58, %v7396_v61  ;;  %v2148_v25 = vmul.f32 %v7454_v44, %v7396_v61 }
 0x362   :  { %3246 = vmatpush1.bf16.msra.mxu0 %v7070_v3  ;;  %5847 = vmatpush3.bf16.msra.mxu1 %v6070_v54  ;;  %v3403_v3 = vld [vmem:[%s8791_s0 + $0x5] sm:$0x1]  ;;  %v2192_v8 = vrot.slane %v2147_v32, 7  ;;  %v2206_v43 = vrot.slane %v2148_v25, 7 }
 0x363   :  { %3247 = vmatprep.subr.bf16.mxu0 %v7074_v56  ;;  %5848 = vmatprep.subr.bf16.mxu1 %v8810_v15  ;;  %v3405_v56 = vld [vmem:[%s8791_s0 + $0x15] sm:$0x1]  ;;  %v7408_v26 = vpop.permute.xlu1 %2090 }
 0x364   :  { %3434 = vperm.xlu1 %5949, %v3403_v3   ;;  %5950 = vset.pattern.permute.xlu0 %v8814_v0  ;;  %v2144_v39 = vmul.f32 %v7443_v58, %v7408_v26  ;;  %v2145_v13 = vmul.f32 %v7454_v44, %v7408_v26 }
 0x365   :  { %3444 = vperm.xlu0 %5950, %v3405_v56  }
 0x366   :  { %3248 = vmatpush1.bf16.msra.mxu0 %v7077_v23  ;;  %5849 = vmatpush3.bf16.msra.mxu1 %v6071_v38  ;;  %v3406_v23 = vld [vmem:[%s8791_s0 + $0x1d] sm:$0x1]  ;;  %v2193_v7 = vsel %vm170_vm1, %v2192_v8, %v2144_v39  ;;  %v7502_v38 = vpop.permute.xlu0 %2125 }
 0x367   :  { %3249 = vmatprep.subr.bf16.mxu0 %v8815_v55  ;;  %5850 = vmatprep.subr.bf16.mxu1 %v8810_v15  ;;  %v7419_v59 = vpop.permute.xlu1 %2105 }
 0x368   :  { %3449 = vperm.xlu1 %5949, %v3406_v23   ;;  %v2153_v51 = vmul.f32 %v7443_v58, %v7419_v59 }
 0x369   :  { %3459 = vperm.xlu0 %5950, %v3408_v47  }
 0x36a   :  { %3250 = vmatpush1.bf16.msra.mxu0 %v8816_v60  ;;  %5851 = vmatpush3.bf16.msra.mxu1 %v6072_v28  ;;  %v2196_v49 = vrot.slane %v2153_v51, 5  ;;  %v2207_v28 = vsel %vm170_vm1, %v2206_v43, %v2145_v13  ;;  %v2195_v60 = vsel %vm173_vm2, %v2194_v18, %v2193_v7  ;;  %v2160_v51 = vmul.f32 %v7454_v44, %v7450_v14  ;;  %v7531_v7 = vpop.permute.xlu0 %2266 }
 0x36b   :  { %3907 = vmatprep.subr.bf16.mxu0 %v6061_v31  ;;  %5856 = vmatprep.subr.bf16.mxu1 %v8810_v15  ;;  %v7425_v24 = vpop.permute.xlu1 %2110  ;;  %v2154_v31 = vmul.f32 %v7454_v44, %v7419_v59  ;;  %v2209_v8 = vsel %vm173_vm2, %v2208_v34, %v2207_v28  ;;  %v2165_v34 = vmul.f32 %v7443_v58, %v7502_v38  ;;  %v2202_v28 = vrot.slane %v2162_v22, 2 }
 0x36c   :  { %3454 = vperm.xlu1 %5949, %v3407_v16   ;;  %v2156_v6 = vmul.f32 %v7443_v58, %v7425_v24  ;;  %v2197_v12 = vsel %vm176_vm3, %v2196_v49, %v2195_v60  ;;  %v2307_v60 = vmul.f32 %v7460_v1, %v7531_v7 }
 0x36d   :  { %3464 = vperm.xlu0 %5950, %v3409_v29  }
 0x36e   :  { %v2347_v22 = vrot.slane %v2307_v60, 2 }
 0x36f   :  { %v7430_v42 = vpop.permute.xlu1 %2250 }
 0x370   :  { %5951 = vset.pattern.permute.xlu1 %v8817_v63  ;;  %v2295_v19 = vmul.f32 %v7460_v1, %v7430_v42  ;;  %v2296_v30 = vmul.f32 %v7464_v52, %v7430_v42 }
 0x371   :  { %3594 = vperm.xlu1 %5951, %v3405_v56   ;;  %3469 = vperm.xlu0 %5950, %v3410_v62  }
 0x372   :  { %v2339_v55 = vrot.slane %v2295_v19, 6  ;;  %v2353_v25 = vrot.slane %v2296_v30, 6  ;;  %v2163_v30 = vmul.f32 %v7454_v44, %v7476_v57 }
 0x373   :  { %v7439_v46 = vpop.permute.xlu1 %2242 }
 0x374   :  { %v2289_v41 = vmul.f32 %v7460_v1, %v7439_v46  ;;  %v2290_v35 = vmul.f32 %v7464_v52, %v7439_v46 }
 0x375   :  { %3586 = vperm.xlu1 %5951, %v3403_v3   ;;  %5952 = vset.pattern.permute.xlu0 %v8817_v63  ;;  %v2157_v3 = vmul.f32 %v7454_v44, %v7425_v24 }
 0x376   :  { %3610 = vperm.xlu0 %5952, %v3409_v29   ;;  %v2338_v56 = vsel %vm170_vm1, %v2337_v27, %v2289_v41  ;;  %v2352_v10 = vsel %vm170_vm1, %v2351_v45, %v2290_v35 }
 0x377   :  { %v7466_v53 = vpop.permute.xlu1 %2254  ;;  %v2340_v21 = vsel %vm173_vm2, %v2339_v55, %v2338_v56  ;;  %v2212_v43 = vrot.slane %v2157_v3, 4  ;;  %v2354_v45 = vsel %vm173_vm2, %v2353_v25, %v2352_v10  ;;  %v2204_v25 = vrot.slane %v2165_v34, 1 }
 0x378   :  { %v2298_v54 = vmul.f32 %v7460_v1, %v7466_v53  ;;  %v2299_v29 = vmul.f32 %v7464_v52, %v7466_v53 }
 0x379   :  { %3598 = vperm.xlu1 %5951, %v3406_v23   ;;  %v2159_v23 = vmul.f32 %v7443_v58, %v7450_v14 }
 0x37a   :  { %v2341_v39 = vrot.slane %v2298_v54, 5  ;;  %v2214_v54 = vrot.slane %v2160_v51, 3 }
 0x37b   :  { %v7489_v5 = vpop.permute.xlu1 %2258  ;;  %v2200_v13 = vrot.slane %v2159_v23, 3 }
 0x37c   :  { %v2302_v19 = vmul.f32 %v7464_v52, %v7489_v5  ;;  %v2342_v49 = vsel %vm176_vm3, %v2341_v39, %v2340_v21  ;;  %v7560_v39 = vld [vmem:[%s8794_s3] sm:$0x7] }
 0x37d   :  { %3602 = vperm.xlu1 %5951, %v3407_v16   ;;  %v2198_v16 = vrot.slane %v2156_v6, 4 }
 0x37e   :  { %v2357_v23 = vrot.slane %v2302_v19, 4 }
 0x37f   :  { %v7517_v32 = vpop.permute.xlu1 %2262  ;;  %v2199_v41 = vsel %vm179_vm4, %v2198_v16, %v2197_v12  ;;  %v2308_v12 = vmul.f32 %v7464_v52, %v7531_v7 }
 0x380   :  { %v2304_v18 = vmul.f32 %v7460_v1, %v7517_v32  ;;  %v2305_v55 = vmul.f32 %v7464_v52, %v7517_v32  ;;  %v2201_v3 = vsel %vm182_vm5, %v2200_v13, %v2199_v41  ;;  %v7568_v13 = vrot.slane %v7437_v48, %v6550_v37 }
 0x381   :  { %3606 = vperm.xlu1 %5951, %v3408_v47   ;;  %v2210_v47 = vrot.slane %v2154_v31, 5  ;;  %v2355_v31 = vrot.slane %v2299_v29, 5  ;;  %v2166_v29 = vmul.f32 %v7454_v44, %v7502_v38  ;;  %v2203_v10 = vsel %vm185_vm6, %v2202_v28, %v2201_v3 }
 0x382   :  { %v2359_v51 = vrot.slane %v2305_v55, 3  ;;  %v2361_v41 = vrot.slane %v2308_v12, 2  ;;  %v2149_v60 = vmul.f32 %v7568_v13, %v7396_v61 }
 0x383   :  { %v2211_v27 = vsel %vm176_vm3, %v2210_v47, %v2209_v8  ;;  %v7545_v35 = vpop.permute.xlu1 %2270  ;;  %v2345_v47 = vrot.slane %v2304_v18, 3  ;;  %v2356_v16 = vsel %vm176_vm3, %v2355_v31, %v2354_v45  ;;  %v2072_v18 = vrot.slane %v7560_v39, %v6498_v17  ;;  %v7579_v45 = vld [vmem:[%s8795_s4] sm:$0x7] }
 0x384   :  { %v2213_v56 = vsel %vm179_vm4, %v2212_v43, %v2211_v27  ;;  %v2310_v8 = vmul.f32 %v7460_v1, %v7545_v35  ;;  %v2358_v44 = vsel %vm179_vm4, %v2357_v23, %v2356_v16  ;;  %v2311_v19 = vmul.f32 %v7464_v52, %v7545_v35 }
 0x385   :  { %3614 = vperm.xlu1 %5951, %v3410_v62   ;;  %v2301_v62 = vmul.f32 %v7460_v1, %v7489_v5  ;;  %v2215_v21 = vsel %vm182_vm5, %v2214_v54, %v2213_v56  ;;  %v2218_v1 = vrot.slane %v2166_v29, 1  ;;  %v2360_v48 = vsel %vm182_vm5, %v2359_v51, %v2358_v44 }
 0x386   :  { %v2349_v31 = vrot.slane %v2310_v8, 1  ;;  %v7585_v52 = vrot.slane %v7448_v4, %v6550_v37  ;;  %v2363_v34 = vrot.slane %v2311_v19, 1  ;;  %v2423_v28 = vrot.slane %v7579_v45, %v6498_v17 }
 0x387   :  { %v2343_v6 = vrot.slane %v2301_v62, 4  ;;  %v2216_v62 = vrot.slane %v2163_v30, 2  ;;  %v2076_v30 = vrot.slane %v7560_v39, %v6508_v20  ;;  %v2362_v56 = vsel %vm185_vm6, %v2361_v41, %v2360_v48 }
 0x388   :  { %v2427_v4 = vrot.slane %v7579_v45, %v6508_v20  ;;  %v2220_v8 = vrot.slane %v2149_v60, 7 }
 0x389   :  { %5953 = vset.pattern.permute.xlu1 %v8814_v0  ;;  %v2344_v58 = vsel %vm179_vm4, %v2343_v6, %v2342_v49  ;;  %v2217_v27 = vsel %vm185_vm6, %v2216_v62, %v2215_v21  ;;  %v2205_v6 = vsel %vm188_vm7, %v2204_v25, %v2203_v10  ;;  %v2364_v25 = vsel %vm188_vm7, %v2363_v34, %v2362_v56 }
 0x38a   :  { %v2346_v43 = vsel %vm182_vm5, %v2345_v47, %v2344_v58  ;;  %v2237_v54 = vadd.f32 %v2205_v6, %v2072_v18  ;;  %v2219_v55 = vsel %vm188_vm7, %v2218_v1, %v2217_v27  ;;  %v2152_v58 = vmul.f32 %v7568_v13, %v7432_v33 }
 0x38b   :  { %v2348_v49 = vsel %vm185_vm6, %v2347_v22, %v2346_v43  ;;  %v2238_v16 = vadd.f32 %v2219_v55, %v2076_v30  ;;  %v2146_v21 = vmul.f32 %v7568_v13, %v7408_v26  ;;  %v2294_v10 = vmul.f32 %v7585_v52, %v7427_v11 }
 0x38c   :  { %v2350_v3 = vsel %vm188_vm7, %v2349_v31, %v2348_v49  ;;  %v2155_v33 = vmul.f32 %v7568_v13, %v7419_v59  ;;  %v2297_v27 = vmul.f32 %v7585_v52, %v7430_v42  ;;  %v2222_v41 = vrot.slane %v2152_v58, 6 }
 0x38d   :  { %v2382_v29 = vadd.f32 %v2350_v3, %v2237_v54  ;;  %v2383_v18 = vadd.f32 %v2364_v25, %v2238_v16  ;;  %v2221_v26 = vsel %vm170_vm1, %v2220_v8, %v2146_v21  ;;  %v2365_v6 = vrot.slane %v2294_v10, 7 }
 0x38e   :  { %v2291_v11 = vmul.f32 %v7585_v52, %v7439_v46  ;;  %v2158_v49 = vmul.f32 %v7568_v13, %v7425_v24  ;;  %v2224_v30 = vrot.slane %v2155_v33, 5  ;;  %v2300_v59 = vmul.f32 %v7585_v52, %v7466_v53 }
 0x38f   :  { %v2367_v34 = vrot.slane %v2297_v27, 6  ;;  %v2223_v42 = vsel %vm173_vm2, %v2222_v41, %v2221_v26  ;;  %v2303_v46 = vmul.f32 %v7585_v52, %v7489_v5  ;;  %v2164_v53 = vmul.f32 %v7568_v13, %v7476_v57 }
 0x390   :  { %v2366_v54 = vsel %vm170_vm1, %v2365_v6, %v2291_v11  ;;  %v2226_v60 = vrot.slane %v2158_v49, 4  ;;  %v2225_v24 = vsel %vm176_vm3, %v2224_v30, %v2223_v42  ;;  %v2369_v3 = vrot.slane %v2300_v59, 5 }
 0x391   :  { %v2368_v56 = vsel %vm173_vm2, %v2367_v34, %v2366_v54  ;;  %v2371_v16 = vrot.slane %v2303_v46, 4  ;;  %v2167_v5 = vmul.f32 %v7568_v13, %v7502_v38  ;;  %v2309_v25 = vmul.f32 %v7585_v52, %v7531_v7 }
 0x392   :  { %v2370_v58 = vsel %vm176_vm3, %v2369_v3, %v2368_v56  ;;  %v2312_v21 = vmul.f32 %v7585_v52, %v7545_v35  ;;  %v6073_v3 = vld [vmem:[#allocation2 + $0x8] ss:$12 sps:$4 sm:$0xff]  }
 0x393   :  { %v2232_v8 = vrot.slane %v2167_v5, 1  ;;  %v7671_v56 = vld [vmem:[#allocation2 + $0x34] ss:$12 sps:$4 sm:$0xff]  }
 0x394   :  { %v6086_v5 = vld [vmem:[#allocation2 + $0x68] ss:$12 sps:$4 sm:$0xff]  }
 0x41e   :  { %v2597_v23 = vpop.f32.mrb[12].mxu0 }
 0x41f   :  { %v7598_v47 = vpop.f32.mrb[12].mxu1  ;;  %v2598_v62 = vadd.f32 %v2597_v23, %v2423_v28  ;;  %v2599_v12 = vpop.f32.mrb[13].mxu0  ;;  %v2161_v28 = vmul.f32 %v7568_v13, %v7450_v14  ;;  %v2306_v23 = vmul.f32 %v7585_v52, %v7517_v32  ;;  %v2227_v14 = vsel %vm179_vm4, %v2226_v60, %v2225_v24 }
 0x420   :  { %v5834_v61 = vpop.f32.mrb[13].mxu1  ;;  %v2600_v51 = vadd.f32 %v2599_v12, %v2427_v4  ;;  %v2601_v22 = vpop.f32.mrb[14].mxu0  ;;  %v2372_v32 = vsel %vm179_vm4, %v2371_v16, %v2370_v58  ;;  %v2080_v13 = vrot.slane %v7560_v39, %v6550_v37  ;;  %v7685_v16 = vld [vmem:[#allocation2 + $0x64] ss:$12 sps:$4 sm:$0xff]   ;;  %v7688_v58 = vld [vmem:[#allocation2 + $0x60] ss:$12 sps:$4 sm:$0xff]  }
 0x421   :  { %v2641_v44 = vpop.f32.mrb[14].mxu1  ;;  %v2644_v43 = vadd.f32 %v2598_v62, %v2382_v29  ;;  %v2602_v1 = vpop.f32.mrb[15].mxu0  ;;  %v2228_v4 = vrot.slane %v2161_v28, 3  ;;  %v2230_v62 = vrot.slane %v2164_v53, 2  ;;  %v2373_v12 = vrot.slane %v2306_v23, 3 }
 0x422   :  { %v5835_v19 = vpop.f32.mrb[15].mxu1  ;;  %v2651_v48 = vadd.f32 %v2600_v51, %v2383_v18  ;;  %v2375_v51 = vrot.slane %v2309_v25, 2  ;;  %v2377_v44 = vrot.slane %v2312_v21, 1  ;;  %v2431_v1 = vrot.slane %v7579_v45, %v6550_v37  ;;  %v7674_v53 = vld [vmem:[#allocation2 + $0x30] ss:$12 sps:$4 sm:$0xff]  }
 0x423   :  { %v5554_v31 = vmul.f32 -1.442695, %v2644_v43  ;;  %v2229_v57 = vsel %vm182_vm5, %v2228_v4, %v2227_v14  ;;  %v2374_v38 = vsel %vm182_vm5, %v2373_v12, %v2372_v32  ;;  %v6078_v4 = vld [vmem:[#allocation2 + $0x38] ss:$12 sps:$4 sm:$0xff]   ;;  %v7681_v23 = vld [vmem:[#allocation2 + $0x48] ss:$12 sps:$4 sm:$0xff]  }
 0x424   :  { %v5555_v55 = vmul.f32 -1.442695, %v2651_v48  ;;  %v2231_v10 = vsel %vm185_vm6, %v2230_v62, %v2229_v57  ;;  %v2376_v43 = vsel %vm185_vm6, %v2375_v51, %v2374_v38  ;;  %v2639_v33 = vadd.f32 %v7598_v47, %v2431_v1  ;;  %v6082_v14 = vld [vmem:[#allocation2 + $0x50] ss:$12 sps:$4 sm:$0xff]   ;;  %v7694_v62 = vld [vmem:[#allocation2 + $0x78] ss:$12 sps:$4 sm:$0xff]   ;;  %v7717_v51 = vpop.permute.xlu1 %2767 }
 0x425   :  { %6169 = vpow2.f32 %v5554_v31  ;;  %v2233_v22 = vsel %vm188_vm7, %v2232_v8, %v2231_v10  ;;  %v2378_v52 = vsel %vm188_vm7, %v2377_v44, %v2376_v43  ;;  %v6090_v25 = vld [vmem:[#allocation2 + $0x80] ss:$12 sps:$4 sm:$0xff]   ;;  %v7701_v12 = vld [vmem:[#allocation2 + $0x90] ss:$12 sps:$4 sm:$0xff]   ;;  %v7708_v8 = vld [vmem:[#allocation2 + $0xa8] ss:$12 sps:$4 sm:$0xff]  }
 0x426   :  { %6171 = vpow2.f32 %v5555_v55  ;;  %v2239_v19 = vadd.f32 %v2233_v22, %v2080_v13  ;;  %v7698_v57 = vld [vmem:[#allocation2 + $0x94] ss:$12 sps:$4 sm:$0xff]   ;;  %8818 = vst [vmem:[#allocation8_spill] sm:$0xff] %v7701_v12  ;;  %v7705_v32 = vld [vmem:[#allocation2 + $0xac] ss:$12 sps:$4 sm:$0xff]   ;;  %8820 = vst [vmem:[#allocation10_spill] sm:$0xff] %v7708_v8 }
 0x427   :  { %8819 = vst [vmem:[#allocation9_spill] sm:$0xff] %v7705_v32  ;;  %v6098_v21 = vld [vmem:[#allocation2 + $0xb0] ss:$12 sps:$4 sm:$0xff]   ;;  %v4076_v10 = vld [vmem:[%s8791_s0 + $0xe] sm:$0x1] }
 0x428   :  { %v2384_v27 = vadd.f32 %v2378_v52, %v2239_v19  ;;  %4111 = vperm.xlu1 %5953, %v4076_v10   ;;  %4262 = vperm.xlu0 %5952, %v4076_v10   ;;  %v4075_v38 = vld [vmem:[%s8791_s0 + $0x6] sm:$0x1]  ;;  %v4077_v13 = vld [vmem:[%s8791_s0 + $0x16] sm:$0x1]  ;;  %v7729_v22 = vpop.permute.xlu1 %2762  ;;  %v4080_v44 = vld [vmem:[%s8791_s0 + $0x2e] sm:$0x1] }
 0x429   :  { %v4079_v43 = vld [vmem:[%s8791_s0 + $0x26] sm:$0x1]  ;;  %v4081_v1 = vld [vmem:[%s8791_s0 + $0x36] sm:$0x1] }
 0x42c   :  { %4106 = vperm.xlu1 %5953, %v4075_v38   ;;  %5954 = vset.pattern.permute.xlu0 %v8814_v0  ;;  %v7740_v19 = vpop.permute.xlu1 %2777 }
 0x42d   :  { %4116 = vperm.xlu0 %5954, %v4077_v13  }
 0x42f   :  { %v6170_v29 = vpop.eup %6169 }
 0x430   :  { %v2648_v61 = vadd.f32 1.0, %v6170_v29  ;;  %v6172_v7 = vpop.eup %6171  ;;  %v7691_v29 = vld [vmem:[#allocation2 + $0x7c] ss:$12 sps:$4 sm:$0xff]   ;;  %v7746_v52 = vpop.permute.xlu1 %2782 }
 0x431   :  { %v2655_v35 = vadd.f32 1.0, %v6172_v7  ;;  %v4078_v7 = vld [vmem:[%s8791_s0 + $0x1e] sm:$0x1]  ;;  %4131 = vperm.xlu0 %5954, %v4080_v44  }
 0x432   :  { %6173 = vrcp.f32 %v2648_v61  ;;  %v6094_v61 = vld [vmem:[#allocation2 + $0x98] ss:$12 sps:$4 sm:$0xff]   ;;  %4121 = vperm.xlu1 %5953, %v4078_v7  }
 0x433   :  { %6175 = vrcp.f32 %v2655_v35  ;;  %v4082_v35 = vld [vmem:[%s8791_s0 + $0x3e] sm:$0x1] }
 0x435   :  { %4136 = vperm.xlu0 %5954, %v4081_v1  }
 0x436   :  { %4126 = vperm.xlu1 %5953, %v4079_v43  }
 0x439   :  { %4141 = vperm.xlu0 %5954, %v4082_v35  }
 0x43a   :  { %5955 = vset.pattern.permute.xlu1 %v8817_v63 }
 0x43b   :  { %4266 = vperm.xlu1 %5955, %v4077_v13  }
 0x43c   :  { %v6174_v18 = vpop.eup %6173 }
 0x43d   :  { %v2658_v41 = vmul.f32 %v6174_v18, %v2639_v33  ;;  %v6176_v31 = vpop.eup %6175  ;;  %v7748_v33 = vpop.permute.xlu0 %2918  ;;  %5956 = vset.pattern.permute.xlu0 %v8817_v63 }
 0x43e   :  { %v2661_v26 = vsub.f32 1.0, %v6176_v31  ;;  %v2663_v48 = vmul.f32 %v6176_v31, %v7348_v9  ;;  %4282 = vperm.xlu0 %5956, %v4081_v1   ;;  %v7751_v18 = vpop.permute.xlu1 %2922 }
 0x43f   :  { %v2659_v39 = vadd.f32 %v2658_v41, %v2384_v27  ;;  %4258 = vperm.xlu1 %5955, %v4075_v38   ;;  %v7758_v41 = vld [vmem:[%s8792_s1] ss:$2 sm:$0x7] }
 0x440   :  { %v7764_v31 = vrot.slane %v7758_v41, %v6498_v17 }
 0x441   :  { %6177 = vtanh.f32 %v2659_v39  ;;  %v7753_v27 = vpop.permute.xlu0 %2772 }
 0x442   :  { %v7760_v39 = vpop.permute.xlu1 %2914 }
 0x443   :  { %4270 = vperm.xlu1 %5955, %v4078_v7  }
 0x447   :  { %4274 = vperm.xlu1 %5955, %v4079_v43  }
 0x44b   :  { %v6178_v6 = vpop.eup %6177  ;;  %4278 = vperm.xlu1 %5955, %v4080_v44  }
 0x44c   :  { %v2662_v11 = vmul.f32 %v6178_v6, %v2661_v26  ;;  %v7769_v26 = vld [vmem:[%s8792_s1 + $0x1] ss:$2 sm:$0x7]  ;;  %v7771_v6 = vpop.permute.xlu0 %2787 }
 0x44e   :  { %v7651_v49 = vadd.f32 %v2663_v48, %v2662_v11  ;;  %v7775_v11 = vrot.slane %v7758_v41, %v6508_v20  ;;  %v2819_v48 = vmul.f32 %v7764_v31, %v7717_v51 }
 0x44f   :  { %4286 = vperm.xlu1 %5955, %v4082_v35  }
 0x450   :  { %v2666_v45 = vcombine.high %v7651_v49, %v7651_v49  ;;  %v2673_v47 = vrot.slane %v7651_v49, %v6722_v50  ;;  %v3057_v30 = vpack.c.bf16 %v7651_v49, %v7651_v49 }
 0x452   :  { %v2680_v59 = vrot.slane %v2666_v45, %v6722_v50  ;;  %v2681_v34 = vcombine.high %v2673_v47, %v2673_v47  ;;  %v2689_v42 = vrot.slane %v2673_v47, %v6722_v50  ;;  %5556 = vst.sshfl [vmem:[#allocation5 + $0x3] sm:$0x1 pattern:$0x73625140] %v2673_v47  ;;  %3268 = vmatmul.mubr.bf16.vlgmr.msra.gmra.mrb[16].mxu0 %v3057_v30 }
 0x453   :  { %5853 = vmatmul.mubr.bf16.vlgmr.msra.gmra.mrb[16].mxu1 %v3057_v30  ;;  %3908 = vmatpush1.bf16.msra.mxu0 %v7364_v40  ;;  %v7781_v45 = vrot.slane %v7769_v26, %v6498_v17  ;;  %v7785_v47 = vrot.slane %v7769_v26, %v6508_v20  ;;  %v7787_v30 = vpop.permute.xlu1 %2926 }
 0x454   :  { %3939 = vmatprep.mubr.bf16.mxu0 %v8814_v0  ;;  %v2682_v9 = vcombine.high %v2680_v59, %v2680_v59  ;;  %v2696_v54 = vrot.slane %v2680_v59, %v6722_v50  ;;  %v2703_v28 = vrot.slane %v2681_v34, %v6722_v50  ;;  %v2711_v55 = vcombine.high %v2689_v42, %v2689_v42 }
 0x455   :  { %5557 = vst.sshfl [vmem:[#allocation5 + $0xb] sm:$0x1 pattern:$0x73625140] %v2681_v34  ;;  %3909 = vmatprep.subr.bf16.mxu0 %v7367_v2  ;;  %5872 = vmatprep.mubr.msk.bf16.mxu1 %vm6272_vm0, %v8810_v15  ;;  %v6074_v2 = vld [vmem:[#allocation2 + $0x20] ss:$12 sps:$4 sm:$0xff]   ;;  %v2822_v34 = vmul.f32 %v7764_v31, %v7753_v27  ;;  %v2968_v13 = vmul.f32 %v7785_v47, %v7751_v18 }
 0x456   :  { %5558 = vst.sshfl [vmem:[#allocation5 + $0x23] sm:$0x1 pattern:$0x73625140] %v2680_v59  ;;  %v2710_v60 = vrot.slane %v2682_v9, %v6722_v50  ;;  %v2712_v46 = vcombine.high %v2696_v54, %v2696_v54  ;;  %v2713_v24 = vcombine.high %v2703_v28, %v2703_v28  ;;  %2725 = vst [vmem:[#allocation5 + $0x13] sm:$0x1] %v2711_v55  ;;  %5857 = vmatpush3.bf16.msra.mxu1 %v6073_v3  ;;  %v7797_v28 = vpop.permute.xlu0 %2792 }
 0x457   :  { %5559 = vst.sshfl [vmem:[#allocation5 + $0x2b] sm:$0x1 pattern:$0x73625140] %v2682_v9  ;;  %3910 = vmatpush1.bf16.msra.mxu0 %v7370_v36  ;;  %5858 = vmatprep.subr.bf16.mxu1 %v8810_v15  ;;  %v7678_v36 = vld [vmem:[#allocation2 + $0x4c] ss:$12 sps:$4 sm:$0xff]   ;;  %v2820_v59 = vmul.f32 %v7775_v11, %v7717_v51  ;;  %v2816_v9 = vmul.f32 %v7764_v31, %v7729_v22 }
 0x458   :  { %v2714_v40 = vcombine.high %v2710_v60, %v2710_v60  ;;  %2726 = vst [vmem:[#allocation5 + $0x1b] sm:$0x1] %v2713_v24  ;;  %2729 = vst [vmem:[#allocation5 + $0x33] sm:$0x1] %v2712_v46  ;;  %3911 = vmatprep.subr.bf16.mxu0 %v7671_v56  ;;  %v2864_v42 = vrot.slane %v2819_v48, 7  ;;  %v2964_v54 = vmul.f32 %v7781_v45, %v7748_v33  ;;  %5957 = vset.pattern.permute.xlu1 %v8814_v0 }
 0x459   :  { %v2965_v55 = vmul.f32 %v7785_v47, %v7748_v33  ;;  %v2825_v60 = vmul.f32 %v7764_v31, %v7740_v19  ;;  %v2823_v46 = vmul.f32 %v7775_v11, %v7753_v27  ;;  %v2878_v24 = vrot.slane %v2820_v59, 7 }
 0x45a   :  { %2730 = vst [vmem:[#allocation5 + $0x3b] sm:$0x1] %v2714_v40  ;;  %5859 = vmatpush3.bf16.msra.mxu1 %v6074_v2  ;;  %v2817_v40 = vmul.f32 %v7775_v11, %v7729_v22  ;;  %v2967_v3 = vmul.f32 %v7781_v45, %v7751_v18  ;;  %v2866_v2 = vrot.slane %v2822_v34, 6  ;;  %v2970_v44 = vmul.f32 %v7781_v45, %v7787_v30  ;;  %v7823_v43 = vpop.permute.xlu0 %2797 }
 0x45b   :  { %5860 = vmatprep.subr.bf16.mxu1 %v8810_v15  ;;  %3912 = vmatpush1.bf16.msra.mxu0 %v7674_v53  ;;  %v3023_v10 = vrot.slane %v2965_v55, 7  ;;  %v2868_v38 = vrot.slane %v2825_v60, 5  ;;  %v2880_v7 = vrot.slane %v2823_v46, 6  ;;  %v2962_v59 = vmul.f32 %v7785_v47, %v7760_v39 }
 0x45c   :  { %3913 = vmatprep.subr.bf16.mxu0 %v7678_v36  ;;  %v2879_v1 = vsel %vm170_vm1, %v2878_v24, %v2817_v40  ;;  %v3011_v35 = vrot.slane %v2967_v3, 6  ;;  %v2829_v34 = vmul.f32 %v7775_v11, %v7746_v52  ;;  %v2971_v60 = vmul.f32 %v7785_v47, %v7787_v30 }
 0x45d   :  { %v3025_v40 = vrot.slane %v2968_v13, 6 }
 0x45e   :  { %5861 = vmatpush3.bf16.msra.mxu1 %v6078_v4  ;;  %v7810_v4 = vpop.permute.xlu1 %2930  ;;  %v2884_v63 = vrot.slane %v2829_v34, 4  ;;  %v2835_v34 = vmul.f32 %v7775_v11, %v7797_v28 }
 0x45f   :  { %5862 = vmatprep.subr.bf16.mxu1 %v8810_v15  ;;  %3914 = vmatpush1.bf16.msra.mxu0 %v7681_v23  ;;  %v2973_v46 = vmul.f32 %v7781_v45, %v7810_v4  ;;  %v2974_v13 = vmul.f32 %v7785_v47, %v7810_v4 }
 0x460   :  { %3915 = vmatprep.subr.bf16.mxu0 %v7685_v16 }
 0x462   :  { %5863 = vmatpush3.bf16.msra.mxu1 %v6082_v14  ;;  %v2865_v14 = vsel %vm170_vm1, %v2864_v42, %v2816_v9  ;;  %v2831_v9 = vmul.f32 %v7764_v31, %v7771_v6  ;;  %v7838_v24 = vpop.permute.xlu1 %2934 }
 0x463   :  { %5864 = vmatprep.subr.bf16.mxu1 %v8810_v15  ;;  %3916 = vmatpush1.bf16.msra.mxu0 %v7688_v58  ;;  %v2867_v48 = vsel %vm173_vm2, %v2866_v2, %v2865_v14  ;;  %v2881_v2 = vsel %vm173_vm2, %v2880_v7, %v2879_v1  ;;  %v3013_v14 = vrot.slane %v2970_v44, 5  ;;  %v7852_v7 = vpop.permute.xlu0 %2938  ;;  %v3027_v1 = vrot.slane %v2971_v60, 5 }
 0x464   :  { %3917 = vmatprep.subr.bf16.mxu0 %v7691_v29  ;;  %v2869_v3 = vsel %vm176_vm3, %v2868_v38, %v2867_v48  ;;  %v2976_v38 = vmul.f32 %v7781_v45, %v7838_v24 }
 0x466   :  { %5865 = vmatpush3.bf16.msra.mxu1 %v6086_v5  ;;  %v3009_v5 = vrot.slane %v2964_v54, 7 }
 0x467   :  { %5866 = vmatprep.subr.bf16.mxu1 %v8810_v15  ;;  %3918 = vmatpush1.bf16.msra.mxu0 %v7694_v62 }
 0x468   :  { %3919 = vmatprep.subr.bf16.mxu0 %v7698_v57 }
 0x46a   :  { %5867 = vmatpush3.bf16.msra.mxu1 %v6090_v25  ;;  %v2961_v25 = vmul.f32 %v7781_v45, %v7760_v39 }
 0x46b   :  { %5868 = vmatprep.subr.bf16.mxu1 %v8810_v15  ;;  %3920 = vmatpush1.bf16.msra.mxu0 %v7701_v12  ;;  %v2977_v12 = vmul.f32 %v7785_v47, %v7838_v24 }
 0x46c   :  { %3921 = vmatprep.subr.bf16.mxu0 %v7705_v32  ;;  %v3010_v42 = vsel %vm170_vm1, %v3009_v5, %v2961_v25  ;;  %v3024_v25 = vsel %vm170_vm1, %v3023_v10, %v2962_v59 }
 0x46d   :  { %v3012_v5 = vsel %vm173_vm2, %v3011_v35, %v3010_v42  ;;  %v3015_v35 = vrot.slane %v2973_v46, 4  ;;  %v3026_v48 = vsel %vm173_vm2, %v3025_v40, %v3024_v25  ;;  %v2837_v42 = vmul.f32 %v7764_v31, %v7823_v43 }
 0x46e   :  { %5869 = vmatpush3.bf16.msra.mxu1 %v6094_v61  ;;  %v2826_v61 = vmul.f32 %v7775_v11, %v7740_v19  ;;  %v3014_v59 = vsel %vm176_vm3, %v3013_v14, %v3012_v5  ;;  %v3029_v40 = vrot.slane %v2974_v13, 4  ;;  %v2838_v14 = vmul.f32 %v7775_v11, %v7823_v43 }
 0x46f   :  { %5870 = vmatprep.subr.bf16.mxu1 %v8810_v15  ;;  %3922 = vmatpush1.bf16.msra.mxu0 %v7708_v8  ;;  %v2872_v8 = vrot.slane %v2831_v9, 3  ;;  %v2888_v5 = vrot.slane %v2835_v34, 2  ;;  %v2876_v25 = vrot.slane %v2837_v42, 1  ;;  %v7900_v42 = vld [vmem:[%s8795_s4] sm:$0x7] }
 0x470   :  { %v2882_v54 = vrot.slane %v2826_v61, 5  ;;  %v2832_v61 = vmul.f32 %v7775_v11, %v7771_v6 }
 0x472   :  { %5871 = vmatpush3.bf16.msra.mxu1 %v6098_v21  ;;  %v2828_v21 = vmul.f32 %v7764_v31, %v7746_v52  ;;  %v2883_v44 = vsel %vm176_vm3, %v2882_v54, %v2881_v2  ;;  %v2886_v9 = vrot.slane %v2832_v61, 3  ;;  %v2979_v54 = vmul.f32 %v7781_v45, %v7852_v7 }
 0x473   :  { %5876 = vmatprep.subr.bf16.mxu1 %v8810_v15  ;;  %v2885_v46 = vsel %vm179_vm4, %v2884_v63, %v2883_v44  ;;  %v3028_v2 = vsel %vm176_vm3, %v3027_v1, %v3026_v48  ;;  %v2980_v61 = vmul.f32 %v7785_v47, %v7852_v7  ;;  %v7881_v63 = vld [vmem:[%s8794_s3] sm:$0x7]  ;;  %v7889_v1 = vrot.slane %v7758_v41, %v6550_v37 }
 0x474   :  { %v2870_v55 = vrot.slane %v2828_v21, 4  ;;  %v2834_v21 = vmul.f32 %v7764_v31, %v7797_v28  ;;  %v3016_v31 = vsel %vm179_vm4, %v3015_v35, %v3014_v59  ;;  %v3019_v44 = vrot.slane %v2979_v54, 2 }
 0x475   :  { %v3030_v11 = vsel %vm179_vm4, %v3029_v40, %v3028_v2  ;;  %v2744_v48 = vrot.slane %v7881_v63, %v6498_v17  ;;  %v2748_v54 = vrot.slane %v7881_v63, %v6508_v20  ;;  %v3095_v40 = vrot.slane %v7900_v42, %v6498_v17 }
 0x476   :  { %v2871_v10 = vsel %vm179_vm4, %v2870_v55, %v2869_v3  ;;  %v2874_v32 = vrot.slane %v2834_v21, 2  ;;  %v7866_v55 = vpop.permute.xlu1 %2942  ;;  %v3017_v3 = vrot.slane %v2976_v38, 3  ;;  %v3031_v38 = vrot.slane %v2977_v12, 3 }
 0x477   :  { %v2873_v60 = vsel %vm182_vm5, %v2872_v8, %v2871_v10  ;;  %v2982_v21 = vmul.f32 %v7781_v45, %v7866_v55  ;;  %v2887_v8 = vsel %vm182_vm5, %v2886_v9, %v2885_v46  ;;  %v2890_v45 = vrot.slane %v2838_v14, 1 }
 0x478   :  { %v2875_v13 = vsel %vm185_vm6, %v2874_v32, %v2873_v60  ;;  %v3018_v10 = vsel %vm182_vm5, %v3017_v3, %v3016_v31  ;;  %v2983_v35 = vmul.f32 %v7785_v47, %v7866_v55  ;;  %v2889_v59 = vsel %vm185_vm6, %v2888_v5, %v2887_v8 }
 0x479   :  { %v3033_v32 = vrot.slane %v2980_v61, 2  ;;  %v3021_v12 = vrot.slane %v2982_v21, 1  ;;  %v2877_v34 = vsel %vm188_vm7, %v2876_v25, %v2875_v13  ;;  %v3032_v41 = vsel %vm182_vm5, %v3031_v38, %v3030_v11 }
 0x47a   :  { %v3020_v9 = vsel %vm185_vm6, %v3019_v44, %v3018_v10  ;;  %v7906_v47 = vrot.slane %v7769_v26, %v6550_v37  ;;  %v3035_v60 = vrot.slane %v2983_v35, 1  ;;  %v2909_v46 = vadd.f32 %v2877_v34, %v2744_v48 }
 0x47b   :  { %v2891_v3 = vsel %vm188_vm7, %v2890_v45, %v2889_v59  ;;  %v2821_v2 = vmul.f32 %v7889_v1, %v7717_v51  ;;  %v3022_v31 = vsel %vm188_vm7, %v3021_v12, %v3020_v9  ;;  %v3034_v14 = vsel %vm185_vm6, %v3033_v32, %v3032_v41 }
 0x47c   :  { %v3099_v26 = vrot.slane %v7900_v42, %v6508_v20  ;;  %v2910_v61 = vadd.f32 %v2891_v3, %v2748_v54  ;;  %v2824_v21 = vmul.f32 %v7889_v1, %v7753_v27  ;;  %v3054_v8 = vadd.f32 %v3022_v31, %v2909_v46 }
 0x47d   :  { %v3036_v38 = vsel %vm188_vm7, %v3035_v60, %v3034_v14  ;;  %v2892_v11 = vrot.slane %v2821_v2, 7  ;;  %v2818_v10 = vmul.f32 %v7889_v1, %v7729_v22  ;;  %v2966_v45 = vmul.f32 %v7906_v47, %v7748_v33 }
 0x47e   :  { %v2827_v27 = vmul.f32 %v7889_v1, %v7740_v19  ;;  %v3055_v41 = vadd.f32 %v3036_v38, %v2910_v61  ;;  %v2969_v9 = vmul.f32 %v7906_v47, %v7751_v18  ;;  %v2894_v54 = vrot.slane %v2824_v21, 6 }
 0x47f   :  { %v2893_v22 = vsel %vm170_vm1, %v2892_v11, %v2818_v10  ;;  %v3037_v46 = vrot.slane %v2966_v45, 7  ;;  %v2963_v33 = vmul.f32 %v7906_v47, %v7760_v39  ;;  %v2830_v3 = vmul.f32 %v7889_v1, %v7746_v52 }
 0x480   :  { %v2896_v2 = vrot.slane %v2827_v27, 5  ;;  %v2972_v19 = vmul.f32 %v7906_v47, %v7787_v30  ;;  %v3039_v31 = vrot.slane %v2969_v9, 6  ;;  %v2895_v18 = vsel %vm173_vm2, %v2894_v54, %v2893_v22 }
 0x481   :  { %v3038_v14 = vsel %vm170_vm1, %v3037_v46, %v2963_v33  ;;  %v2898_v61 = vrot.slane %v2830_v3, 4  ;;  %v2975_v39 = vmul.f32 %v7906_v47, %v7810_v4  ;;  %v2836_v30 = vmul.f32 %v7889_v1, %v7797_v28 }
 0x482   :  { %v2897_v52 = vsel %vm176_vm3, %v2896_v2, %v2895_v18  ;;  %v3041_v21 = vrot.slane %v2972_v19, 5  ;;  %v2978_v38 = vmul.f32 %v7906_v47, %v7838_v24  ;;  %v2839_v4 = vmul.f32 %v7889_v1, %v7823_v43 }
 0x483   :  { %v2902_v10 = vrot.slane %v2836_v30, 2  ;;  %v2981_v45 = vmul.f32 %v7906_v47, %v7852_v7  ;;  %v3103_v54 = vrot.slane %v7900_v42, %v6550_v37 }
 0x525   :  { %v3269_v5 = vpop.f32.mrb[16].mxu0 }
 0x526   :  { %v7919_v25 = vpop.f32.mrb[16].mxu1  ;;  %v3270_v13 = vadd.f32 %v3269_v5, %v3095_v40  ;;  %v3271_v44 = vpop.f32.mrb[17].mxu0 }
 0x527   :  { %v5854_v51 = vpop.f32.mrb[17].mxu1  ;;  %v3272_v35 = vadd.f32 %v3271_v44, %v3099_v26  ;;  %v3273_v48 = vpop.f32.mrb[18].mxu0  ;;  %v2833_v26 = vmul.f32 %v7889_v1, %v7771_v6  ;;  %v2899_v6 = vsel %vm179_vm4, %v2898_v61, %v2897_v52  ;;  %v3043_v44 = vrot.slane %v2975_v39, 4 }
 0x528   :  { %v3313_v59 = vpop.f32.mrb[18].mxu1  ;;  %v3316_v32 = vadd.f32 %v3270_v13, %v3054_v8  ;;  %v3274_v12 = vpop.f32.mrb[19].mxu0  ;;  %v3040_v8 = vsel %vm173_vm2, %v3039_v31, %v3038_v14  ;;  %v2752_v1 = vrot.slane %v7881_v63, %v6550_v37  ;;  %v3311_v22 = vadd.f32 %v7919_v25, %v3103_v54 }
 0x529   :  { %v5855_v34 = vpop.f32.mrb[19].mxu1  ;;  %v3323_v40 = vadd.f32 %v3272_v35, %v3055_v41  ;;  %v2900_v13 = vrot.slane %v2833_v26, 3  ;;  %v3042_v51 = vsel %vm176_vm3, %v3041_v21, %v3040_v8  ;;  %v3045_v35 = vrot.slane %v2978_v38, 3 }
 0x52a   :  { %v5585_v60 = vmul.f32 -1.442695, %v3316_v32  ;;  %v3044_v24 = vsel %vm179_vm4, %v3043_v44, %v3042_v51  ;;  %v2904_v59 = vrot.slane %v2839_v4, 1  ;;  %v2984_v32 = vmul.f32 %v7906_v47, %v7866_v55  ;;  %v6101_v44 = vld [vmem:[#allocation2 + $0x4] ss:$12 sps:$4 sm:$0xff]  }
 0x52b   :  { %v5586_v5 = vmul.f32 -1.442695, %v3323_v40  ;;  %v2901_v28 = vsel %vm182_vm5, %v2900_v13, %v2899_v6  ;;  %v3047_v34 = vrot.slane %v2981_v45, 2  ;;  %v3046_v43 = vsel %vm182_vm5, %v3045_v35, %v3044_v24  ;;  %v7988_v51 = vld [vmem:[#allocation2] ss:$12 sps:$4 sm:$0xff]   ;;  %4579 = vmatprep.subr.bf16.mxu0 %v6101_v44 }
 0x52c   :  { %6179 = vpow2.f32 %v5585_v60  ;;  %v2903_v12 = vsel %vm185_vm6, %v2902_v10, %v2901_v28  ;;  %v3049_v41 = vrot.slane %v2984_v32, 1  ;;  %v6102_v4 = vld [vmem:[#allocation2 + $0x8] ss:$12 sps:$4 sm:$0xff]   ;;  %v7994_v10 = vld [vmem:[#allocation2 + $0x18] ss:$12 sps:$4 sm:$0xff]  }
 0x52d   :  { %6181 = vpow2.f32 %v5586_v5  ;;  %v2905_v27 = vsel %vm188_vm7, %v2904_v59, %v2903_v12  ;;  %v3048_v9 = vsel %vm185_vm6, %v3047_v34, %v3046_v43  ;;  %v6106_v45 = vld [vmem:[#allocation2 + $0x20] ss:$12 sps:$4 sm:$0xff]   ;;  %v6107_v28 = vld [vmem:[#allocation2 + $0x38] ss:$12 sps:$4 sm:$0xff]   ;;  %v6108_v35 = vld [vmem:[#allocation2 + $0x50] ss:$12 sps:$4 sm:$0xff]  }
 0x52e   :  { %v2911_v60 = vadd.f32 %v2905_v27, %v2752_v1  ;;  %v3050_v47 = vsel %vm188_vm7, %v3049_v41, %v3048_v9  ;;  %v4749_v24 = vld [vmem:[%s8791_s0 + $0x17] sm:$0x1]  ;;  %v4750_v59 = vld [vmem:[%s8791_s0 + $0x1f] sm:$0x1]  ;;  %v4752_v12 = vld [vmem:[%s8791_s0 + $0x2f] sm:$0x1]  ;;  %v8051_v9 = vpop.permute.xlu0 %3590 }
 0x52f   :  { %v4751_v34 = vld [vmem:[%s8791_s0 + $0x27] sm:$0x1]  ;;  %v4753_v43 = vld [vmem:[%s8791_s0 + $0x37] sm:$0x1]  ;;  %v8824_v27 = vmov 1  }
 0x530   :  { %v3056_v33 = vadd.f32 %v3050_v47, %v2911_v60 }
 0x532   :  { %v8056_v60 = vpop.permute.xlu0 %3444 }
 0x536   :  { %v6180_v11 = vpop.eup %6179 }
 0x537   :  { %v3320_v48 = vadd.f32 1.0, %v6180_v11  ;;  %v6182_v7 = vpop.eup %6181  ;;  %v7991_v11 = vld [vmem:[#allocation2 + $0x1c] ss:$12 sps:$4 sm:$0xff]  }
 0x538   :  { %v3327_v55 = vadd.f32 1.0, %v6182_v7  ;;  %v4754_v7 = vld [vmem:[%s8791_s0 + $0x3f] sm:$0x1] }
 0x539   :  { %6183 = vrcp.f32 %v3320_v48  ;;  %v6109_v48 = vld [vmem:[#allocation2 + $0x68] ss:$12 sps:$4 sm:$0xff]  }
 0x53a   :  { %6185 = vrcp.f32 %v3327_v55  ;;  %v8061_v55 = vld [vmem:[%s8792_s1] ss:$2 sm:$0x7] }
 0x543   :  { %v6184_v46 = vpop.eup %6183 }
 0x544   :  { %v3330_v40 = vmul.f32 %v6184_v46, %v3311_v22  ;;  %v6186_v3 = vpop.eup %6185  ;;  %v8067_v22 = vrot.slane %v8061_v55, %v6498_v17  ;;  %v8072_v46 = vld [vmem:[%s8792_s1 + $0x1] ss:$2 sm:$0x7] }
 0x545   :  { %v3333_v2 = vsub.f32 1.0, %v6186_v3  ;;  %v3335_v18 = vmul.f32 %v6186_v3, %v7651_v49  ;;  %v8084_v3 = vrot.slane %v8072_v46, %v6498_v17 }
 0x546   :  { %v3331_v63 = vadd.f32 %v3330_v40, %v3056_v33  ;;  %v8074_v33 = vpop.permute.xlu0 %3459  ;;  %v8078_v40 = vrot.slane %v8061_v55, %v6508_v20 }
 0x548   :  { %6187 = vtanh.f32 %v3331_v63 }
 0x552   :  { %v6188_v19 = vpop.eup %6187 }
 0x553   :  { %v3334_v31 = vmul.f32 %v6188_v19, %v3333_v2  ;;  %v8088_v2 = vrot.slane %v8072_v46, %v6508_v20 }
 0x555   :  { %v7972_v14 = vadd.f32 %v3335_v18, %v3334_v31  ;;  %v3494_v18 = vmul.f32 %v8067_v22, %v8056_v60 }
 0x557   :  { %v3338_v42 = vcombine.high %v7972_v14, %v7972_v14  ;;  %v3345_v25 = vrot.slane %v7972_v14, %v6722_v50  ;;  %v3729_v26 = vpack.c.bf16 %v7972_v14, %v7972_v14 }
 0x559   :  { %v3352_v5 = vrot.slane %v3338_v42, %v6722_v50  ;;  %v3353_v61 = vcombine.high %v3345_v25, %v3345_v25  ;;  %v3361_v39 = vrot.slane %v3345_v25, %v6722_v50  ;;  %5587 = vst.sshfl [vmem:[#allocation5 + $0x4] sm:$0x1 pattern:$0x73625140] %v3345_v25  ;;  %3940 = vmatmul.mubr.bf16.vlgmr.msra.gmra.mrb[20].mxu0 %v3729_v26 }
 0x55a   :  { %5873 = vmatmul.mubr.bf16.vlgmr.msra.gmra.mrb[20].mxu1 %v3729_v26  ;;  %4611 = vmatprep.mubr.bf16.mxu0 %v8814_v0  ;;  %v3636_v26 = vmul.f32 %v8084_v3, %v8051_v9 }
 0x55b   :  { %5892 = vmatprep.mubr.msk.bf16.mxu1 %vm6272_vm0, %v8810_v15  ;;  %v3354_v49 = vcombine.high %v3352_v5, %v3352_v5  ;;  %v3368_v52 = vrot.slane %v3352_v5, %v6722_v50  ;;  %v3375_v21 = vrot.slane %v3353_v61, %v6722_v50  ;;  %v3383_v8 = vcombine.high %v3361_v39, %v3361_v39 }
 0x55c   :  { %5588 = vst.sshfl [vmem:[#allocation5 + $0xc] sm:$0x1 pattern:$0x73625140] %v3353_v61  ;;  %4580 = vmatpush1.bf16.msra.mxu0 %v7988_v51  ;;  %5877 = vmatpush3.bf16.msra.mxu1 %v6102_v4  ;;  %v3637_v61 = vmul.f32 %v8088_v2, %v8051_v9 }
 0x55d   :  { %5589 = vst.sshfl [vmem:[#allocation5 + $0x24] sm:$0x1 pattern:$0x73625140] %v3352_v5  ;;  %v3382_v30 = vrot.slane %v3354_v49, %v6722_v50  ;;  %v3384_v13 = vcombine.high %v3368_v52, %v3368_v52  ;;  %v3385_v38 = vcombine.high %v3375_v21, %v3375_v21  ;;  %3397 = vst [vmem:[#allocation5 + $0x14] sm:$0x1] %v3383_v8  ;;  %5878 = vmatprep.subr.bf16.mxu1 %v8810_v15  ;;  %v8100_v5 = vpop.permute.xlu0 %3464 }
 0x55e   :  { %5590 = vst.sshfl [vmem:[#allocation5 + $0x2c] sm:$0x1 pattern:$0x73625140] %v3354_v49  ;;  %4581 = vmatprep.subr.bf16.mxu0 %v7991_v11  ;;  %v3495_v49 = vmul.f32 %v8078_v40, %v8056_v60 }
 0x55f   :  { %v3386_v6 = vcombine.high %v3382_v30, %v3382_v30  ;;  %3398 = vst [vmem:[#allocation5 + $0x1c] sm:$0x1] %v3385_v38  ;;  %3401 = vst [vmem:[#allocation5 + $0x34] sm:$0x1] %v3384_v13  ;;  %v3538_v30 = vrot.slane %v3494_v18, 6 }
 0x560   :  { %4582 = vmatpush1.bf16.msra.mxu0 %v7994_v10  ;;  %5879 = vmatpush3.bf16.msra.mxu1 %v6106_v45 }
 0x561   :  { %3402 = vst [vmem:[#allocation5 + $0x3c] sm:$0x1] %v3386_v6  ;;  %4583 = vmatprep.subr.bf16.mxu0 %v7671_v56  ;;  %5880 = vmatprep.subr.bf16.mxu1 %v8810_v15  ;;  %v6110_v56 = vld [vmem:[#allocation2 + $0x80] ss:$12 sps:$4 sm:$0xff]   ;;  %v3681_v6 = vrot.slane %v3636_v26, 7 }
 0x564   :  { %4584 = vmatpush1.bf16.msra.mxu0 %v7674_v53  ;;  %5881 = vmatpush3.bf16.msra.mxu1 %v6107_v28  ;;  %v6111_v53 = vld [vmem:[#allocation2 + $0x98] ss:$12 sps:$4 sm:$0xff]   ;;  %v3695_v28 = vrot.slane %v3637_v61, 7  ;;  %v3504_v61 = vmul.f32 %v8078_v40, %v8074_v33 }
 0x565   :  { %4585 = vmatprep.subr.bf16.mxu0 %v7678_v36  ;;  %5882 = vmatprep.subr.bf16.mxu1 %v8810_v15  ;;  %v8821_v36 = vld [vmem:[#allocation8_spill] sm:$0xff] }
 0x568   :  { %4586 = vmatpush1.bf16.msra.mxu0 %v7681_v23  ;;  %5883 = vmatpush3.bf16.msra.mxu1 %v6108_v35  ;;  %v6112_v23 = vld [vmem:[#allocation2 + $0xb0] ss:$12 sps:$4 sm:$0xff]  }
 0x569   :  { %4587 = vmatprep.subr.bf16.mxu0 %v7685_v16  ;;  %5884 = vmatprep.subr.bf16.mxu1 %v8810_v15  ;;  %v8822_v16 = vld [vmem:[#allocation9_spill] sm:$0xff] }
 0x56c   :  { %4588 = vmatpush1.bf16.msra.mxu0 %v7688_v58  ;;  %5885 = vmatpush3.bf16.msra.mxu1 %v6109_v48  ;;  %v8823_v58 = vld [vmem:[#allocation10_spill] sm:$0xff] }
 0x56d   :  { %4589 = vmatprep.subr.bf16.mxu0 %v7691_v29  ;;  %5886 = vmatprep.subr.bf16.mxu1 %v8810_v15  ;;  %v4748_v29 = vld [vmem:[%s8791_s0 + $0xf] sm:$0x1] }
 0x56e   :  { %4783 = vperm.xlu1 %5957, %v4748_v29   ;;  %4934 = vperm.xlu0 %5956, %v4748_v29  }
 0x570   :  { %4590 = vmatpush1.bf16.msra.mxu0 %v7694_v62  ;;  %5887 = vmatpush3.bf16.msra.mxu1 %v6110_v56  ;;  %v8020_v62 = vpop.permute.xlu1 %3439  ;;  %v3552_v56 = vrot.slane %v3495_v49, 6 }
 0x571   :  { %4591 = vmatprep.subr.bf16.mxu0 %v7698_v57  ;;  %5888 = vmatprep.subr.bf16.mxu1 %v8810_v15  ;;  %v4747_v57 = vld [vmem:[%s8791_s0 + $0x7] sm:$0x1]  ;;  %v3491_v63 = vmul.f32 %v8067_v22, %v8020_v62  ;;  %v3492_v31 = vmul.f32 %v8078_v40, %v8020_v62 }
 0x572   :  { %4778 = vperm.xlu1 %5957, %v4747_v57   ;;  %5958 = vset.pattern.permute.xlu0 %v8814_v0 }
 0x573   :  { %4788 = vperm.xlu0 %5958, %v4749_v24   ;;  %v3536_v42 = vrot.slane %v3491_v63, 7  ;;  %v3550_v52 = vrot.slane %v3492_v31, 7 }
 0x574   :  { %4592 = vmatpush1.bf16.msra.mxu0 %v8821_v36  ;;  %5889 = vmatpush3.bf16.msra.mxu1 %v6111_v53  ;;  %v8032_v32 = vpop.permute.xlu1 %3434  ;;  %v8125_v36 = vpop.permute.xlu0 %3469 }
 0x575   :  { %4593 = vmatprep.subr.bf16.mxu0 %v8822_v16  ;;  %5890 = vmatprep.subr.bf16.mxu1 %v8810_v15  ;;  %v3488_v25 = vmul.f32 %v8067_v22, %v8032_v32  ;;  %v3489_v21 = vmul.f32 %v8078_v40, %v8032_v32 }
 0x576   :  { %4793 = vperm.xlu1 %5957, %v4750_v59  }
 0x577   :  { %4803 = vperm.xlu0 %5958, %v4752_v12   ;;  %v3537_v38 = vsel %vm170_vm1, %v3536_v42, %v3488_v25 }
 0x578   :  { %4594 = vmatpush1.bf16.msra.mxu0 %v8823_v58  ;;  %5891 = vmatpush3.bf16.msra.mxu1 %v6112_v23  ;;  %v8043_v1 = vpop.permute.xlu1 %3449  ;;  %v3551_v23 = vsel %vm170_vm1, %v3550_v52, %v3489_v21  ;;  %v3539_v58 = vsel %vm173_vm2, %v3538_v30, %v3537_v38  ;;  %v8154_v30 = vpop.permute.xlu0 %3610 }
 0x579   :  { %5251 = vmatprep.subr.bf16.mxu0 %v6101_v44  ;;  %5896 = vmatprep.subr.bf16.mxu1 %v8810_v15  ;;  %v3497_v39 = vmul.f32 %v8067_v22, %v8043_v1  ;;  %v3498_v4 = vmul.f32 %v8078_v40, %v8043_v1  ;;  %v3553_v18 = vsel %vm173_vm2, %v3552_v56, %v3551_v23  ;;  %v3558_v56 = vrot.slane %v3504_v61, 3 }
 0x57a   :  { %4798 = vperm.xlu1 %5957, %v4751_v34  }
 0x57b   :  { %4808 = vperm.xlu0 %5958, %v4753_v43   ;;  %v3540_v35 = vrot.slane %v3497_v39, 5  ;;  %v3506_v39 = vmul.f32 %v8067_v22, %v8100_v5 }
 0x57c   :  { %v8049_v41 = vpop.permute.xlu1 %3454 }
 0x57d   :  { %v3500_v45 = vmul.f32 %v8067_v22, %v8049_v41  ;;  %v3541_v31 = vsel %vm176_vm3, %v3540_v35, %v3539_v58  ;;  %v3507_v35 = vmul.f32 %v8078_v40, %v8100_v5 }
 0x57e   :  { %5959 = vset.pattern.permute.xlu1 %v8824_v27 }
 0x57f   :  { %4938 = vperm.xlu1 %5959, %v4749_v24   ;;  %4813 = vperm.xlu0 %5958, %v4754_v7  }
 0x580   :  { %v8054_v54 = vpop.permute.xlu1 %3594 }
 0x581   :  { %v3639_v8 = vmul.f32 %v8084_v3, %v8054_v54  ;;  %v3640_v48 = vmul.f32 %v8088_v2, %v8054_v54 }
 0x583   :  { %4930 = vperm.xlu1 %5959, %v4747_v57   ;;  %5960 = vset.pattern.permute.xlu0 %v8824_v27  ;;  %v3683_v16 = vrot.slane %v3639_v8, 6  ;;  %v3501_v57 = vmul.f32 %v8078_v40, %v8049_v41  ;;  %v3697_v63 = vrot.slane %v3640_v48, 6  ;;  %v3509_v48 = vmul.f32 %v8067_v22, %v8125_v36 }
 0x584   :  { %4954 = vperm.xlu0 %5960, %v4753_v43   ;;  %v8063_v47 = vpop.permute.xlu1 %3586 }
 0x585   :  { %v3633_v44 = vmul.f32 %v8084_v3, %v8063_v47  ;;  %v3634_v29 = vmul.f32 %v8088_v2, %v8063_v47  ;;  %v3556_v49 = vrot.slane %v3501_v57, 4 }
 0x587   :  { %4942 = vperm.xlu1 %5959, %v4750_v59   ;;  %v3682_v24 = vsel %vm170_vm1, %v3681_v6, %v3633_v44  ;;  %v3503_v59 = vmul.f32 %v8067_v22, %v8074_v33  ;;  %v3696_v26 = vsel %vm170_vm1, %v3695_v28, %v3634_v29 }
 0x588   :  { %v8090_v19 = vpop.permute.xlu1 %3598  ;;  %v3684_v25 = vsel %vm173_vm2, %v3683_v16, %v3682_v24  ;;  %v3651_v16 = vmul.f32 %v8084_v3, %v8154_v30 }
 0x589   :  { %v3642_v53 = vmul.f32 %v8084_v3, %v8090_v19  ;;  %v3643_v43 = vmul.f32 %v8088_v2, %v8090_v19  ;;  %v3544_v52 = vrot.slane %v3503_v59, 3 }
 0x58a   :  { %v3691_v61 = vrot.slane %v3651_v16, 2 }
 0x58b   :  { %4946 = vperm.xlu1 %5959, %v4751_v34   ;;  %v3542_v34 = vrot.slane %v3500_v45, 4  ;;  %v3685_v42 = vrot.slane %v3642_v53, 5  ;;  %v3699_v44 = vrot.slane %v3643_v43, 5  ;;  %v3698_v45 = vsel %vm173_vm2, %v3697_v63, %v3696_v26 }
 0x58c   :  { %v8112_v13 = vpop.permute.xlu1 %3602  ;;  %v3546_v53 = vrot.slane %v3506_v39, 2  ;;  %v3560_v43 = vrot.slane %v3507_v35, 2  ;;  %v3652_v63 = vmul.f32 %v8088_v2, %v8154_v30 }
 0x58d   :  { %v3646_v21 = vmul.f32 %v8088_v2, %v8112_v13  ;;  %v3543_v6 = vsel %vm179_vm4, %v3542_v34, %v3541_v31  ;;  %v3686_v28 = vsel %vm176_vm3, %v3685_v42, %v3684_v25  ;;  %v3510_v34 = vmul.f32 %v8078_v40, %v8125_v36 }
 0x58e   :  { %v3545_v29 = vsel %vm182_vm5, %v3544_v52, %v3543_v6 }
 0x58f   :  { %4950 = vperm.xlu1 %5959, %v4752_v12   ;;  %v3554_v12 = vrot.slane %v3498_v4, 5  ;;  %v3701_v24 = vrot.slane %v3646_v21, 4  ;;  %v3547_v25 = vsel %vm185_vm6, %v3546_v53, %v3545_v29 }
 0x590   :  { %v8140_v27 = vpop.permute.xlu1 %3606 }
 0x591   :  { %v3648_v8 = vmul.f32 %v8084_v3, %v8140_v27  ;;  %v3555_v38 = vsel %vm176_vm3, %v3554_v12, %v3553_v18  ;;  %v3649_v23 = vmul.f32 %v8088_v2, %v8140_v27  ;;  %v3700_v12 = vsel %vm176_vm3, %v3699_v44, %v3698_v45  ;;  %v8183_v18 = vld [vmem:[%s8794_s3] sm:$0x7] }
 0x592   :  { %v3557_v57 = vsel %vm179_vm4, %v3556_v49, %v3555_v38  ;;  %v3702_v40 = vsel %vm179_vm4, %v3701_v24, %v3700_v12  ;;  %v8191_v49 = vrot.slane %v8061_v55, %v6550_v37  ;;  %v3416_v21 = vrot.slane %v8183_v18, %v6498_v17 }
 0x593   :  { %4958 = vperm.xlu1 %5959, %v4754_v7   ;;  %v3645_v7 = vmul.f32 %v8084_v3, %v8112_v13  ;;  %v3689_v59 = vrot.slane %v3648_v8, 3  ;;  %v3559_v42 = vsel %vm182_vm5, %v3558_v56, %v3557_v57  ;;  %v3703_v26 = vrot.slane %v3649_v23, 3 }
 0x594   :  { %v8168_v58 = vpop.permute.xlu1 %3614  ;;  %v3561_v8 = vsel %vm185_vm6, %v3560_v43, %v3559_v42  ;;  %v3705_v38 = vrot.slane %v3652_v63, 2  ;;  %v3493_v23 = vmul.f32 %v8191_v49, %v8020_v62  ;;  %v3496_v12 = vmul.f32 %v8191_v49, %v8056_v60 }
 0x595   :  { %v3687_v4 = vrot.slane %v3645_v7, 4  ;;  %v3548_v7 = vrot.slane %v3509_v48, 1  ;;  %v3654_v31 = vmul.f32 %v8084_v3, %v8168_v58  ;;  %v3562_v3 = vrot.slane %v3510_v34, 1 }
 0x596   :  { %v3655_v52 = vmul.f32 %v8088_v2, %v8168_v58  ;;  %v3704_v55 = vsel %vm182_vm5, %v3703_v26, %v3702_v40  ;;  %v8208_v2 = vrot.slane %v8072_v46, %v6550_v37  ;;  %v3564_v63 = vrot.slane %v3493_v23, 7 }
 0x597   :  { %v3688_v22 = vsel %vm179_vm4, %v3687_v4, %v3686_v28  ;;  %v3693_v6 = vrot.slane %v3654_v31, 1  ;;  %v3549_v44 = vsel %vm188_vm7, %v3548_v7, %v3547_v25  ;;  %v8202_v4 = vld [vmem:[%s8795_s4] sm:$0x7]  ;;  %v3420_v28 = vrot.slane %v8183_v18, %v6508_v20 }
 0x598   :  { %v3690_v39 = vsel %vm182_vm5, %v3689_v59, %v3688_v22  ;;  %v3707_v35 = vrot.slane %v3655_v52, 1  ;;  %v3581_v48 = vadd.f32 %v3549_v44, %v3416_v21  ;;  %v3767_v56 = vrot.slane %v8202_v4, %v6498_v17 }
 0x599   :  { %v3692_v45 = vsel %vm185_vm6, %v3691_v61, %v3690_v39  ;;  %v3563_v53 = vsel %vm188_vm7, %v3562_v3, %v3561_v8  ;;  %v3706_v29 = vsel %vm185_vm6, %v3705_v38, %v3704_v55  ;;  %v3771_v46 = vrot.slane %v8202_v4, %v6508_v20 }
 0x59a   :  { %v3694_v16 = vsel %vm188_vm7, %v3693_v6, %v3692_v45  ;;  %v3582_v59 = vadd.f32 %v3563_v53, %v3420_v28  ;;  %v3708_v43 = vsel %vm188_vm7, %v3707_v35, %v3706_v29  ;;  %v3490_v31 = vmul.f32 %v8191_v49, %v8032_v32 }
 0x59b   :  { %v3726_v22 = vadd.f32 %v3694_v16, %v3581_v48  ;;  %v3638_v42 = vmul.f32 %v8208_v2, %v8051_v9  ;;  %v3499_v60 = vmul.f32 %v8191_v49, %v8043_v1  ;;  %v3641_v21 = vmul.f32 %v8208_v2, %v8054_v54 }
 0x59c   :  { %v3727_v52 = vadd.f32 %v3708_v43, %v3582_v59  ;;  %v3566_v8 = vrot.slane %v3496_v12, 6  ;;  %v3565_v32 = vsel %vm170_vm1, %v3564_v63, %v3490_v31  ;;  %v3635_v9 = vmul.f32 %v8208_v2, %v8063_v47 }
 0x59d   :  { %v3709_v6 = vrot.slane %v3638_v42, 7  ;;  %v3502_v55 = vmul.f32 %v8191_v49, %v8049_v41  ;;  %v3568_v45 = vrot.slane %v3499_v60, 5  ;;  %v3644_v1 = vmul.f32 %v8208_v2, %v8090_v19 }
 0x59e   :  { %v3711_v28 = vrot.slane %v3641_v21, 6  ;;  %v3567_v54 = vsel %vm173_vm2, %v3566_v8, %v3565_v32  ;;  %v3505_v48 = vmul.f32 %v8191_v49, %v8074_v33  ;;  %v3647_v47 = vmul.f32 %v8208_v2, %v8112_v13 }
 0x59f   :  { %v3710_v35 = vsel %vm170_vm1, %v3709_v6, %v3635_v9  ;;  %v3570_v53 = vrot.slane %v3502_v55, 4  ;;  %v3569_v41 = vsel %vm176_vm3, %v3568_v45, %v3567_v54  ;;  %v3713_v23 = vrot.slane %v3644_v1, 5 }
 0x5a0   :  { %v3712_v16 = vsel %vm173_vm2, %v3711_v28, %v3710_v35  ;;  %v3508_v19 = vmul.f32 %v8191_v49, %v8100_v5  ;;  %v3572_v29 = vrot.slane %v3505_v48, 3  ;;  %v3511_v13 = vmul.f32 %v8191_v49, %v8125_v36 }
 0x5a1   :  { %v3571_v33 = vsel %vm179_vm4, %v3570_v53, %v3569_v41  ;;  %v3714_v59 = vsel %vm176_vm3, %v3713_v23, %v3712_v16  ;;  %v3656_v63 = vmul.f32 %v8208_v2, %v8168_v58  ;;  %v3424_v49 = vrot.slane %v8183_v18, %v6550_v37  ;;  %v6117_v41 = vld [vmem:[#allocation2 + $0x34] ss:$12 sps:$4 sm:$0xff]   ;;  %v6115_v23 = vld [vmem:[#allocation2 + $0x30] ss:$12 sps:$4 sm:$0xff]   ;;  %v6118_v16 = vld [vmem:[#allocation2 + $0x38] ss:$12 sps:$4 sm:$0xff]  }
 0x5a2   :  { %v3573_v5 = vsel %vm182_vm5, %v3572_v29, %v3571_v33  ;;  %v6122_v29 = vld [vmem:[#allocation2 + $0x50] ss:$12 sps:$4 sm:$0xff]   ;;  %v6123_v33 = vld [vmem:[#allocation2 + $0x60] ss:$12 sps:$4 sm:$0xff]  }
 0x62c   :  { %v3941_v57 = vpop.f32.mrb[20].mxu0 }
 0x62d   :  { %v8221_v24 = vpop.f32.mrb[20].mxu1  ;;  %v3942_v34 = vadd.f32 %v3941_v57, %v3767_v56  ;;  %v3943_v7 = vpop.f32.mrb[21].mxu0  ;;  %v3715_v57 = vrot.slane %v3647_v47, 4 }
 0x62e   :  { %v5874_v62 = vpop.f32.mrb[21].mxu1  ;;  %v3944_v25 = vadd.f32 %v3943_v7, %v3771_v46  ;;  %v3945_v26 = vpop.f32.mrb[22].mxu0  ;;  %v3650_v46 = vmul.f32 %v8208_v2, %v8140_v27 }
 0x62f   :  { %v3985_v61 = vpop.f32.mrb[22].mxu1  ;;  %v3988_v40 = vadd.f32 %v3942_v34, %v3726_v22  ;;  %v3946_v39 = vpop.f32.mrb[23].mxu0  ;;  %v3574_v22 = vrot.slane %v3508_v19, 2  ;;  %v3653_v34 = vmul.f32 %v8208_v2, %v8154_v30  ;;  %v3716_v27 = vsel %vm179_vm4, %v3715_v57, %v3714_v59  ;;  %v6121_v19 = vld [vmem:[#allocation2 + $0x4c] ss:$12 sps:$4 sm:$0xff]  }
 0x630   :  { %v5875_v3 = vpop.f32.mrb[23].mxu1  ;;  %v3995_v44 = vadd.f32 %v3944_v25, %v3727_v52  ;;  %v3717_v43 = vrot.slane %v3650_v46, 3  ;;  %v3576_v62 = vrot.slane %v3511_v13, 1  ;;  %v3721_v26 = vrot.slane %v3656_v63, 1  ;;  %v6125_v46 = vld [vmem:[#allocation2 + $0x64] ss:$12 sps:$4 sm:$0xff]  }
 0x631   :  { %v5616_v38 = vmul.f32 -1.442695, %v3988_v40  ;;  %v3575_v31 = vsel %vm185_vm6, %v3574_v22, %v3573_v5  ;;  %v3719_v42 = vrot.slane %v3653_v34, 2  ;;  %v3775_v40 = vrot.slane %v8202_v4, %v6550_v37  ;;  %v6126_v57 = vld [vmem:[#allocation2 + $0x68] ss:$12 sps:$4 sm:$0xff]  }
 0x632   :  { %v5617_v56 = vmul.f32 -1.442695, %v3995_v44  ;;  %v3718_v36 = vsel %vm182_vm5, %v3717_v43, %v3716_v27  ;;  %v3577_v25 = vsel %vm188_vm7, %v3576_v62, %v3575_v31  ;;  %v6129_v59 = vld [vmem:[#allocation2 + $0x7c] ss:$12 sps:$4 sm:$0xff]   ;;  %v6127_v13 = vld [vmem:[#allocation2 + $0x78] ss:$12 sps:$4 sm:$0xff]   ;;  %v8300_v62 = vpop.permute.xlu1 %4111 }
 0x633   :  { %6189 = vpow2.f32 %v5616_v38  ;;  %v3720_v61 = vsel %vm185_vm6, %v3719_v42, %v3718_v36  ;;  %v3583_v39 = vadd.f32 %v3577_v25, %v3424_v49  ;;  %v3983_v3 = vadd.f32 %v8221_v24, %v3775_v40  ;;  %v6133_v22 = vld [vmem:[#allocation2 + $0x94] ss:$12 sps:$4 sm:$0xff]   ;;  %v6131_v34 = vld [vmem:[#allocation2 + $0x90] ss:$12 sps:$4 sm:$0xff]   ;;  %v6134_v5 = vld [vmem:[#allocation2 + $0x98] ss:$12 sps:$4 sm:$0xff]   ;;  %v8308_v36 = vpop.permute.xlu0 %4262 }
 0x634   :  { %6191 = vpow2.f32 %v5617_v56  ;;  %v3722_v2 = vsel %vm188_vm7, %v3721_v26, %v3720_v61  ;;  %v6137_v43 = vld [vmem:[#allocation2 + $0xac] ss:$12 sps:$4 sm:$0xff]   ;;  %v6138_v27 = vld [vmem:[#allocation2 + $0xb0] ss:$12 sps:$4 sm:$0xff]  }
 0x635   :  { %v3728_v52 = vadd.f32 %v3722_v2, %v3583_v39  ;;  %v8328_v61 = vld [vmem:[%s8792_s1 + $0x1] ss:$2 sm:$0x7] }
 0x636   :  { %v8302_v63 = vpop.permute.xlu1 %4106  ;;  %v8340_v2 = vrot.slane %v8328_v61, %v6498_v17 }
 0x63a   :  { %v8304_v31 = vpop.permute.xlu1 %4121 }
 0x63d   :  { %v6190_v12 = vpop.eup %6189 }
 0x63e   :  { %v3992_v7 = vadd.f32 1.0, %v6190_v12  ;;  %v6192_v30 = vpop.eup %6191  ;;  %v6130_v12 = vld [vmem:[#allocation2 + $0x80] ss:$12 sps:$4 sm:$0xff]   ;;  %v8306_v42 = vpop.permute.xlu1 %4126 }
 0x63f   :  { %v3999_v58 = vadd.f32 1.0, %v6192_v30  ;;  %v8312_v30 = vpop.permute.xlu0 %4116 }
 0x640   :  { %6193 = vrcp.f32 %v3992_v7  ;;  %v6135_v7 = vld [vmem:[#allocation2 + $0xa8] ss:$12 sps:$4 sm:$0xff]  }
 0x641   :  { %6195 = vrcp.f32 %v3999_v58 }
 0x642   :  { %v8310_v49 = vpop.permute.xlu1 %4266 }
 0x643   :  { %v8330_v40 = vpop.permute.xlu0 %4131 }
 0x646   :  { %v8319_v25 = vpop.permute.xlu1 %4258 }
 0x64a   :  { %v6194_v60 = vpop.eup %6193 }
 0x64b   :  { %v4002_v21 = vmul.f32 %v6194_v60, %v3983_v3  ;;  %v6196_v8 = vpop.eup %6195  ;;  %v8344_v3 = vrot.slane %v8328_v61, %v6508_v20  ;;  %v8346_v60 = vpop.permute.xlu1 %4270 }
 0x64c   :  { %v4005_v38 = vsub.f32 1.0, %v6196_v8  ;;  %v4007_v9 = vmul.f32 %v6196_v8, %v7972_v14 }
 0x64d   :  { %v4003_v18 = vadd.f32 %v4002_v21, %v3728_v52 }
 0x64f   :  { %6197 = vtanh.f32 %v4003_v18 }
 0x659   :  { %v6198_v32 = vpop.eup %6197 }
 0x65a   :  { %v4006_v6 = vmul.f32 %v6198_v32, %v4005_v38  ;;  %v4308_v38 = vmul.f32 %v8340_v2, %v8308_v36  ;;  %v8356_v32 = vpop.permute.xlu0 %4136 }
 0x65c   :  { %v8274_v44 = vadd.f32 %v4007_v9, %v4006_v6  ;;  %v4309_v6 = vmul.f32 %v8344_v3, %v8308_v36 }
 0x65e   :  { %v4010_v4 = vcombine.high %v8274_v44, %v8274_v44  ;;  %v4017_v24 = vrot.slane %v8274_v44, %v6722_v50  ;;  %v4401_v55 = vpack.c.bf16 %v8274_v44, %v8274_v44 }
 0x660   :  { %v4024_v45 = vrot.slane %v4010_v4, %v6722_v50  ;;  %v4025_v1 = vcombine.high %v4017_v24, %v4017_v24  ;;  %v4033_v28 = vrot.slane %v4017_v24, %v6722_v50  ;;  %5618 = vst.sshfl [vmem:[#allocation5 + $0x5] sm:$0x1 pattern:$0x73625140] %v4017_v24  ;;  %4612 = vmatmul.mubr.bf16.vlgmr.msra.gmra.mrb[24].mxu0 %v4401_v55 }
 0x661   :  { %5893 = vmatmul.mubr.bf16.vlgmr.msra.gmra.mrb[24].mxu1 %v4401_v55  ;;  %5252 = vmatpush1.bf16.msra.mxu0 %v7988_v51  ;;  %v6113_v51 = vld [vmem:[#allocation2 + $0x8] ss:$12 sps:$4 sm:$0xff]  }
 0x662   :  { %5283 = vmatprep.mubr.bf16.mxu0 %v8814_v0  ;;  %v4026_v14 = vcombine.high %v4024_v45, %v4024_v45  ;;  %v4040_v54 = vrot.slane %v4024_v45, %v6722_v50  ;;  %v4047_v35 = vrot.slane %v4025_v1, %v6722_v50  ;;  %v4055_v48 = vcombine.high %v4033_v28, %v4033_v28  ;;  %v8368_v28 = vpop.permute.xlu1 %4274 }
 0x663   :  { %5619 = vst.sshfl [vmem:[#allocation5 + $0xd] sm:$0x1 pattern:$0x73625140] %v4025_v1  ;;  %5253 = vmatprep.subr.bf16.mxu0 %v7991_v11  ;;  %5912 = vmatprep.mubr.msk.bf16.mxu1 %vm6272_vm0, %v8810_v15  ;;  %v6114_v11 = vld [vmem:[#allocation2 + $0x20] ss:$12 sps:$4 sm:$0xff]  }
 0x664   :  { %5620 = vst.sshfl [vmem:[#allocation5 + $0x25] sm:$0x1 pattern:$0x73625140] %v4024_v45  ;;  %v4054_v56 = vrot.slane %v4026_v14, %v6722_v50  ;;  %v4056_v53 = vcombine.high %v4040_v54, %v4040_v54  ;;  %v4057_v47 = vcombine.high %v4047_v35, %v4047_v35  ;;  %4069 = vst [vmem:[#allocation5 + $0x15] sm:$0x1] %v4055_v48  ;;  %5897 = vmatpush3.bf16.msra.mxu1 %v6113_v51 }
 0x665   :  { %5621 = vst.sshfl [vmem:[#allocation5 + $0x2d] sm:$0x1 pattern:$0x73625140] %v4026_v14  ;;  %5254 = vmatpush1.bf16.msra.mxu0 %v7994_v10  ;;  %5898 = vmatprep.subr.bf16.mxu1 %v8810_v15  ;;  %v6119_v10 = vld [vmem:[#allocation2 + $0x48] ss:$12 sps:$4 sm:$0xff]   ;;  %v4311_v45 = vmul.f32 %v8340_v2, %v8310_v49  ;;  %v4305_v35 = vmul.f32 %v8340_v2, %v8319_v25 }
 0x666   :  { %v4058_v0 = vcombine.high %v4054_v56, %v4054_v56  ;;  %4070 = vst [vmem:[#allocation5 + $0x1d] sm:$0x1] %v4057_v47  ;;  %4073 = vst [vmem:[#allocation5 + $0x35] sm:$0x1] %v4056_v53  ;;  %5255 = vmatprep.subr.bf16.mxu0 %v6117_v41  ;;  %v4353_v54 = vrot.slane %v4308_v38, 7  ;;  %v4367_v53 = vrot.slane %v4309_v6, 7  ;;  %v8381_v41 = vpop.permute.xlu0 %4141  ;;  %v4318_v38 = vmul.f32 %v8344_v3, %v8368_v28 }
 0x668   :  { %4074 = vst [vmem:[#allocation5 + $0x3d] sm:$0x1] %v4058_v0  ;;  %5899 = vmatpush3.bf16.msra.mxu1 %v6114_v11  ;;  %v4312_v0 = vmul.f32 %v8344_v3, %v8310_v49  ;;  %v4314_v11 = vmul.f32 %v8340_v2, %v8346_v60 }
 0x669   :  { %5900 = vmatprep.subr.bf16.mxu1 %v8810_v15  ;;  %5256 = vmatpush1.bf16.msra.mxu0 %v6115_v23 }
 0x66a   :  { %5257 = vmatprep.subr.bf16.mxu0 %v6121_v19 }
 0x66c   :  { %5901 = vmatpush3.bf16.msra.mxu1 %v6118_v16  ;;  %v4355_v16 = vrot.slane %v4311_v45, 6 }
 0x66d   :  { %5902 = vmatprep.subr.bf16.mxu1 %v8810_v15  ;;  %5258 = vmatpush1.bf16.msra.mxu0 %v6119_v10  ;;  %v4306_v10 = vmul.f32 %v8344_v3, %v8319_v25 }
 0x66e   :  { %5259 = vmatprep.subr.bf16.mxu0 %v6125_v46  ;;  %v4354_v46 = vsel %vm170_vm1, %v4353_v54, %v4305_v35 }
 0x670   :  { %5903 = vmatpush3.bf16.msra.mxu1 %v6122_v29 }
 0x671   :  { %5904 = vmatprep.subr.bf16.mxu1 %v8810_v15  ;;  %5260 = vmatpush1.bf16.msra.mxu0 %v6123_v33 }
 0x672   :  { %5261 = vmatprep.subr.bf16.mxu0 %v6129_v59 }
 0x674   :  { %5905 = vmatpush3.bf16.msra.mxu1 %v6126_v57 }
 0x675   :  { %5906 = vmatprep.subr.bf16.mxu1 %v8810_v15  ;;  %5262 = vmatpush1.bf16.msra.mxu0 %v6127_v13  ;;  %v4315_v13 = vmul.f32 %v8344_v3, %v8346_v60 }
 0x676   :  { %5263 = vmatprep.subr.bf16.mxu0 %v6133_v22  ;;  %v8396_v22 = vpop.permute.xlu1 %4278 }
 0x677   :  { %v4320_v6 = vmul.f32 %v8340_v2, %v8396_v22 }
 0x678   :  { %5907 = vmatpush3.bf16.msra.mxu1 %v6130_v12  ;;  %v4317_v12 = vmul.f32 %v8340_v2, %v8368_v28 }
 0x679   :  { %5908 = vmatprep.subr.bf16.mxu1 %v8810_v15  ;;  %5264 = vmatpush1.bf16.msra.mxu0 %v6131_v34  ;;  %v4369_v34 = vrot.slane %v4312_v0, 6 }
 0x67a   :  { %5265 = vmatprep.subr.bf16.mxu0 %v6137_v43  ;;  %v4359_v45 = vrot.slane %v4317_v12, 4  ;;  %v8424_v0 = vpop.permute.xlu1 %4286 }
 0x67c   :  { %5909 = vmatpush3.bf16.msra.mxu1 %v6134_v5 }
 0x67d   :  { %5910 = vmatprep.subr.bf16.mxu1 %v8810_v15  ;;  %5266 = vmatpush1.bf16.msra.mxu0 %v6135_v7  ;;  %v8317_v15 = vld [vmem:[%s8792_s1] ss:$2 sm:$0x7]  ;;  %v4357_v7 = vrot.slane %v4314_v11, 5 }
 0x67e   :  { %v8323_v26 = vrot.slane %v8317_v15, %v6498_v17  ;;  %v8334_v39 = vrot.slane %v8317_v15, %v6508_v20 }
 0x680   :  { %5911 = vmatpush3.bf16.msra.mxu1 %v6138_v27  ;;  %v4163_v58 = vmul.f32 %v8323_v26, %v8300_v62  ;;  %v4164_v52 = vmul.f32 %v8334_v39, %v8300_v62  ;;  %v4166_v21 = vmul.f32 %v8323_v26, %v8312_v30  ;;  %v4160_v8 = vmul.f32 %v8323_v26, %v8302_v63 }
 0x681   :  { %v4169_v9 = vmul.f32 %v8323_v26, %v8304_v31  ;;  %v4167_v4 = vmul.f32 %v8334_v39, %v8312_v30  ;;  %v4161_v55 = vmul.f32 %v8334_v39, %v8302_v63  ;;  %v4170_v48 = vmul.f32 %v8334_v39, %v8304_v31 }
 0x682   :  { %v4208_v18 = vrot.slane %v4163_v58, 7  ;;  %v4222_v24 = vrot.slane %v4164_v52, 7  ;;  %v4210_v1 = vrot.slane %v4166_v21, 6  ;;  %v4172_v56 = vmul.f32 %v8323_v26, %v8306_v42 }
 0x683   :  { %v4212_v47 = vrot.slane %v4169_v9, 5  ;;  %v4224_v51 = vrot.slane %v4167_v4, 6  ;;  %v4173_v29 = vmul.f32 %v8334_v39, %v8306_v42  ;;  %v4175_v33 = vmul.f32 %v8323_v26, %v8330_v40  ;;  %v8410_v9 = vpop.permute.xlu0 %4282 }
 0x684   :  { %v4209_v14 = vsel %vm170_vm1, %v4208_v18, %v4160_v8  ;;  %v4223_v23 = vsel %vm170_vm1, %v4222_v24, %v4161_v55  ;;  %v4226_v57 = vrot.slane %v4170_v48, 5  ;;  %v4214_v59 = vrot.slane %v4172_v56, 4 }
 0x685   :  { %v4211_v19 = vsel %vm173_vm2, %v4210_v1, %v4209_v14  ;;  %v4225_v43 = vsel %vm173_vm2, %v4224_v51, %v4223_v23  ;;  %v4356_v27 = vsel %vm173_vm2, %v4355_v16, %v4354_v46  ;;  %v4368_v58 = vsel %vm170_vm1, %v4367_v53, %v4306_v10 }
 0x686   :  { %v4213_v5 = vsel %vm176_vm3, %v4212_v47, %v4211_v19  ;;  %v4176_v52 = vmul.f32 %v8334_v39, %v8330_v40  ;;  %v4178_v21 = vmul.f32 %v8323_v26, %v8356_v32  ;;  %v4228_v18 = vrot.slane %v4173_v29, 4 }
 0x687   :  { %v4216_v8 = vrot.slane %v4175_v33, 3  ;;  %v4227_v4 = vsel %vm176_vm3, %v4226_v57, %v4225_v43  ;;  %v4215_v24 = vsel %vm179_vm4, %v4214_v59, %v4213_v5  ;;  %v4371_v55 = vrot.slane %v4315_v13, 5  ;;  %v8439_v59 = vld [vmem:[%s8794_s3] sm:$0x7] }
 0x688   :  { %v4370_v1 = vsel %vm173_vm2, %v4369_v34, %v4368_v58  ;;  %v4358_v14 = vsel %vm176_vm3, %v4357_v7, %v4356_v27  ;;  %v4179_v54 = vmul.f32 %v8334_v39, %v8356_v32  ;;  %v4181_v35 = vmul.f32 %v8323_v26, %v8381_v41 }
 0x689   :  { %v4230_v48 = vrot.slane %v4176_v52, 3  ;;  %v4218_v56 = vrot.slane %v4178_v21, 2  ;;  %v4321_v53 = vmul.f32 %v8344_v3, %v8396_v22  ;;  %v4323_v47 = vmul.f32 %v8340_v2, %v8410_v9 }
 0x68a   :  { %v4217_v51 = vsel %vm182_vm5, %v4216_v8, %v4215_v24  ;;  %v4229_v11 = vsel %vm179_vm4, %v4228_v18, %v4227_v4  ;;  %v4373_v23 = vrot.slane %v4318_v38, 4  ;;  %v4361_v16 = vrot.slane %v4320_v6, 3  ;;  %v8458_v38 = vld [vmem:[%s8795_s4] sm:$0x7] }
 0x68b   :  { %v4372_v19 = vsel %vm176_vm3, %v4371_v55, %v4370_v1  ;;  %v4360_v26 = vsel %vm179_vm4, %v4359_v45, %v4358_v14  ;;  %v4182_v10 = vmul.f32 %v8334_v39, %v8381_v41  ;;  %v4232_v29 = vrot.slane %v4179_v54, 2 }
 0x68c   :  { %v4220_v46 = vrot.slane %v4181_v35, 1  ;;  %v4324_v33 = vmul.f32 %v8344_v3, %v8410_v9  ;;  %v4326_v57 = vmul.f32 %v8340_v2, %v8424_v0  ;;  %v4231_v13 = vsel %vm182_vm5, %v4230_v48, %v4229_v11 }
 0x68d   :  { %v4219_v12 = vsel %vm185_vm6, %v4218_v56, %v4217_v51  ;;  %v4375_v34 = vrot.slane %v4321_v53, 3  ;;  %v4363_v5 = vrot.slane %v4323_v47, 2  ;;  %v4374_v39 = vsel %vm179_vm4, %v4373_v23, %v4372_v19 }
 0x68e   :  { %v4362_v43 = vsel %vm182_vm5, %v4361_v16, %v4360_v26  ;;  %v8447_v7 = vrot.slane %v8317_v15, %v6550_v37  ;;  %v4234_v2 = vrot.slane %v4182_v10, 1  ;;  %v4327_v27 = vmul.f32 %v8344_v3, %v8424_v0 }
 0x68f   :  { %v4088_v58 = vrot.slane %v8439_v59, %v6498_v17  ;;  %v4233_v52 = vsel %vm185_vm6, %v4232_v29, %v4231_v13  ;;  %v4377_v21 = vrot.slane %v4324_v33, 2  ;;  %v4365_v18 = vrot.slane %v4326_v57, 1 }
 0x690   :  { %v4221_v8 = vsel %vm188_vm7, %v4220_v46, %v4219_v12  ;;  %v4376_v15 = vsel %vm182_vm5, %v4375_v34, %v4374_v39  ;;  %v4364_v6 = vsel %vm185_vm6, %v4363_v5, %v4362_v43  ;;  %v8464_v3 = vrot.slane %v8328_v61, %v6550_v37 }
 0x691   :  { %v4092_v4 = vrot.slane %v8439_v59, %v6508_v20  ;;  %v4379_v24 = vrot.slane %v4327_v27, 1  ;;  %v4253_v55 = vadd.f32 %v4221_v8, %v4088_v58  ;;  %v4439_v45 = vrot.slane %v8458_v38, %v6498_v17 }
 0x692   :  { %v4235_v1 = vsel %vm188_vm7, %v4234_v2, %v4233_v52  ;;  %v4165_v14 = vmul.f32 %v8447_v7, %v8300_v62  ;;  %v4366_v54 = vsel %vm188_vm7, %v4365_v18, %v4364_v6  ;;  %v4378_v35 = vsel %vm185_vm6, %v4377_v21, %v4376_v15 }
 0x693   :  { %v4443_v61 = vrot.slane %v8458_v38, %v6508_v20  ;;  %v4254_v53 = vadd.f32 %v4235_v1, %v4092_v4  ;;  %v4168_v47 = vmul.f32 %v8447_v7, %v8312_v30  ;;  %v4398_v51 = vadd.f32 %v4366_v54, %v4253_v55 }
 0x694   :  { %v4380_v23 = vsel %vm188_vm7, %v4379_v24, %v4378_v35  ;;  %v4236_v19 = vrot.slane %v4165_v14, 7  ;;  %v4162_v26 = vmul.f32 %v8447_v7, %v8302_v63  ;;  %v4310_v10 = vmul.f32 %v8464_v3, %v8308_v36 }
 0x695   :  { %v4171_v30 = vmul.f32 %v8447_v7, %v8304_v31  ;;  %v4399_v34 = vadd.f32 %v4380_v23, %v4254_v53  ;;  %v4313_v5 = vmul.f32 %v8464_v3, %v8310_v49  ;;  %v4238_v39 = vrot.slane %v4168_v47, 6 }
 0x696   :  { %v4237_v63 = vsel %vm170_vm1, %v4236_v19, %v4162_v26  ;;  %v4381_v2 = vrot.slane %v4310_v10, 7  ;;  %v4307_v36 = vmul.f32 %v8464_v3, %v8319_v25  ;;  %v4174_v58 = vmul.f32 %v8447_v7, %v8306_v42 }
 0x697   :  { %v4240_v52 = vrot.slane %v4171_v30, 5  ;;  %v4316_v31 = vmul.f32 %v8464_v3, %v8346_v60  ;;  %v4383_v21 = vrot.slane %v4313_v5, 6  ;;  %v4239_v49 = vsel %vm173_vm2, %v4238_v39, %v4237_v63 }
 0x698   :  { %v4382_v18 = vsel %vm170_vm1, %v4381_v2, %v4307_v36  ;;  %v4177_v8 = vmul.f32 %v8447_v7, %v8330_v40  ;;  %v4242_v6 = vrot.slane %v4174_v58, 4  ;;  %v4319_v25 = vmul.f32 %v8464_v3, %v8368_v28 }
 0x699   :  { %v4241_v42 = vsel %vm176_vm3, %v4240_v52, %v4239_v49  ;;  %v4385_v4 = vrot.slane %v4316_v31, 5  ;;  %v4384_v24 = vsel %vm173_vm2, %v4383_v21, %v4382_v18  ;;  %v4180_v60 = vmul.f32 %v8447_v7, %v8356_v32 }
 0x69a   :  { %v4244_v55 = vrot.slane %v4177_v8, 3  ;;  %v4243_v40 = vsel %vm179_vm4, %v4242_v6, %v4241_v42  ;;  %v4387_v1 = vrot.slane %v4319_v25, 4  ;;  %v4183_v28 = vmul.f32 %v8447_v7, %v8381_v41  ;;  %v8543_v8 = vpop.permute.xlu1 %4783  ;;  %v8551_v42 = vpop.permute.xlu0 %4934 }
 0x69b   :  { %v4386_v14 = vsel %vm176_vm3, %v4385_v4, %v4384_v24  ;;  %v4246_v35 = vrot.slane %v4180_v60, 2  ;;  %v4096_v7 = vrot.slane %v8439_v59, %v6550_v37  ;;  %v4447_v26 = vrot.slane %v8458_v38, %v6550_v37  ;;  %v8560_v60 = vld [vmem:[%s8792_s1] ss:$2 sm:$0x7] }
 0x69c   :  { %v4245_v32 = vsel %vm182_vm5, %v4244_v55, %v4243_v40  ;;  %v4248_v47 = vrot.slane %v4183_v28, 1  ;;  %v8571_v40 = vld [vmem:[%s8792_s1 + $0x1] ss:$2 sm:$0x7] }
 0x69e   :  { %v8555_v24 = vpop.permute.xlu0 %4788 }
 0x733   :  { %v4613_v48 = vpop.f32.mrb[24].mxu0 }
 0x734   :  { %v8477_v56 = vpop.f32.mrb[24].mxu1  ;;  %v4614_v11 = vadd.f32 %v4613_v48, %v4439_v45  ;;  %v4615_v16 = vpop.f32.mrb[25].mxu0  ;;  %v4322_v45 = vmul.f32 %v8464_v3, %v8396_v22  ;;  %v4388_v22 = vsel %vm179_vm4, %v4387_v1, %v4386_v14  ;;  %v8577_v14 = vrot.slane %v8560_v60, %v6508_v20 }
 0x735   :  { %v5894_v62 = vpop.f32.mrb[25].mxu1  ;;  %v4616_v29 = vadd.f32 %v4615_v16, %v4443_v61  ;;  %v4617_v46 = vpop.f32.mrb[26].mxu0  ;;  %v4325_v61 = vmul.f32 %v8464_v3, %v8410_v9 }
 0x736   :  { %v4657_v33 = vpop.f32.mrb[26].mxu1  ;;  %v4660_v57 = vadd.f32 %v4614_v11, %v4398_v51  ;;  %v4618_v13 = vpop.f32.mrb[27].mxu0  ;;  %v4389_v48 = vrot.slane %v4322_v45, 3  ;;  %v4328_v51 = vmul.f32 %v8464_v3, %v8424_v0  ;;  %v4247_v11 = vsel %vm185_vm6, %v4246_v35, %v4245_v32 }
 0x737   :  { %v5895_v12 = vpop.f32.mrb[27].mxu1  ;;  %v4667_v27 = vadd.f32 %v4616_v29, %v4399_v34  ;;  %v4391_v23 = vrot.slane %v4325_v61, 2  ;;  %v4249_v16 = vsel %vm188_vm7, %v4248_v47, %v4247_v11  ;;  %v4655_v29 = vadd.f32 %v8477_v56, %v4447_v26  ;;  %v8573_v1 = vpop.permute.xlu0 %4803 }
 0x738   :  { %v5647_v43 = vmul.f32 -1.442695, %v4660_v57  ;;  %v4390_v41 = vsel %vm182_vm5, %v4389_v48, %v4388_v22  ;;  %v4393_v62 = vrot.slane %v4328_v51, 1  ;;  %v4255_v10 = vadd.f32 %v4249_v16, %v4096_v7 }
 0x739   :  { %v5648_v15 = vmul.f32 -1.442695, %v4667_v27  ;;  %v4392_v19 = vsel %vm185_vm6, %v4391_v23, %v4390_v41  ;;  %v8566_v45 = vrot.slane %v8560_v60, %v6498_v17  ;;  %v8587_v35 = vrot.slane %v8571_v40, %v6508_v20 }
 0x73a   :  { %6199 = vpow2.f32 %v5647_v43  ;;  %v4394_v3 = vsel %vm188_vm7, %v4393_v62, %v4392_v19  ;;  %v4836_v32 = vmul.f32 %v8577_v14, %v8543_v8  ;;  %v4839_v41 = vmul.f32 %v8577_v14, %v8555_v24 }
 0x73b   :  { %6201 = vpow2.f32 %v5648_v15  ;;  %v4400_v33 = vadd.f32 %v4394_v3, %v4255_v10  ;;  %v8545_v15 = vpop.permute.xlu1 %4778  ;;  %v4835_v28 = vmul.f32 %v8566_v45, %v8543_v8  ;;  %v4838_v48 = vmul.f32 %v8566_v45, %v8555_v24  ;;  %v8599_v51 = vpop.permute.xlu0 %4808 }
 0x73c   :  { %v4832_v22 = vmul.f32 %v8566_v45, %v8545_v15  ;;  %v4981_v11 = vmul.f32 %v8587_v35, %v8551_v42  ;;  %v4894_v7 = vrot.slane %v4836_v32, 7  ;;  %v4848_v32 = vmul.f32 %v8577_v14, %v8573_v1 }
 0x73d   :  { %v4882_v62 = vrot.slane %v4838_v48, 6  ;;  %v4850_v48 = vmul.f32 %v8566_v45, %v8599_v51 }
 0x73f   :  { %v8547_v6 = vpop.permute.xlu1 %4793 }
 0x740   :  { %v4841_v23 = vmul.f32 %v8566_v45, %v8547_v6  ;;  %v4842_v3 = vmul.f32 %v8577_v14, %v8547_v6 }
 0x743   :  { %v8549_v25 = vpop.permute.xlu1 %4798 }
 0x744   :  { %v6200_v54 = vpop.eup %6199 }
 0x745   :  { %v4664_v53 = vadd.f32 1.0, %v6200_v54  ;;  %v6202_v9 = vpop.eup %6201  ;;  %v8583_v54 = vrot.slane %v8571_v40, %v6498_v17 }
 0x746   :  { %v4671_v0 = vadd.f32 1.0, %v6202_v9  ;;  %v4833_v9 = vmul.f32 %v8577_v14, %v8545_v15 }
 0x747   :  { %6203 = vrcp.f32 %v4664_v53  ;;  %v8553_v4 = vpop.permute.xlu1 %4938  ;;  %v4880_v53 = vrot.slane %v4835_v28, 7  ;;  %v4980_v47 = vmul.f32 %v8583_v54, %v8551_v42 }
 0x748   :  { %6205 = vrcp.f32 %v4671_v0  ;;  %v4983_v16 = vmul.f32 %v8583_v54, %v8553_v4 }
 0x749   :  { %v4881_v26 = vsel %vm170_vm1, %v4880_v53, %v4832_v22  ;;  %v5025_v10 = vrot.slane %v4980_v47, 7 }
 0x74b   :  { %v8562_v55 = vpop.permute.xlu1 %4930 }
 0x74c   :  { %v4977_v0 = vmul.f32 %v8583_v54, %v8562_v55 }
 0x74f   :  { %v8589_v61 = vpop.permute.xlu1 %4942 }
 0x751   :  { %v6204_v46 = vpop.eup %6203 }
 0x752   :  { %v4674_v57 = vmul.f32 %v6204_v46, %v4655_v29  ;;  %v6206_v13 = vpop.eup %6205  ;;  %v4844_v29 = vmul.f32 %v8566_v45, %v8549_v25  ;;  %v5039_v46 = vrot.slane %v4981_v11, 7 }
 0x753   :  { %v4677_v12 = vsub.f32 1.0, %v6206_v13  ;;  %v4679_v5 = vmul.f32 %v6206_v13, %v8274_v44  ;;  %v8611_v19 = vpop.permute.xlu1 %4946  ;;  %v4986_v13 = vmul.f32 %v8583_v54, %v8589_v61 }
 0x754   :  { %v4675_v59 = vadd.f32 %v4674_v57, %v4400_v33  ;;  %v4884_v33 = vrot.slane %v4841_v23, 5  ;;  %v4984_v57 = vmul.f32 %v8587_v35, %v8553_v4  ;;  %v4990_v47 = vmul.f32 %v8587_v35, %v8611_v19 }
 0x756   :  { %6207 = vtanh.f32 %v4675_v59  ;;  %v4896_v59 = vrot.slane %v4839_v41, 6 }
 0x760   :  { %v6208_v30 = vpop.eup %6207 }
 0x761   :  { %v4678_v34 = vmul.f32 %v6208_v30, %v4677_v12  ;;  %v8624_v12 = vpop.permute.xlu0 %4813  ;;  %v4895_v30 = vsel %vm170_vm1, %v4894_v7, %v4833_v9 }
 0x763   :  { %v8530_v39 = vadd.f32 %v4679_v5, %v4678_v34  ;;  %v5027_v34 = vrot.slane %v4983_v16, 6  ;;  %v4883_v5 = vsel %vm173_vm2, %v4882_v62, %v4881_v26 }
 0x765   :  { %v4682_v38 = vcombine.high %v8530_v39, %v8530_v39  ;;  %v4689_v56 = vrot.slane %v8530_v39, %v6722_v50  ;;  %v5073_v43 = vpack.c.bf16 %v8530_v39, %v8530_v39  ;;  %v8653_v23 = vpop.permute.xlu0 %4954 }
 0x767   :  { %v4696_v63 = vrot.slane %v4682_v38, %v6722_v50  ;;  %v4697_v2 = vcombine.high %v4689_v56, %v4689_v56  ;;  %v4705_v36 = vrot.slane %v4689_v56, %v6722_v50  ;;  %5649 = vst.sshfl [vmem:[#allocation5 + $0x6] sm:$0x1 pattern:$0x73625140] %v4689_v56  ;;  %5284 = vmatmul.mubr.bf16.vlgmr.msra.gmra.mrb[28].mxu0 %v5073_v43 }
 0x768   :  { %5913 = vmatmul.mubr.bf16.vlgmr.msra.gmra.mrb[28].mxu1 %v5073_v43  ;;  %v4978_v38 = vmul.f32 %v8587_v35, %v8562_v55  ;;  %v4845_v56 = vmul.f32 %v8577_v14, %v8549_v25  ;;  %v5026_v43 = vsel %vm170_vm1, %v5025_v10, %v4977_v0  ;;  %v4851_v10 = vmul.f32 %v8577_v14, %v8599_v51 }
 0x769   :  { %v4698_v44 = vcombine.high %v4696_v63, %v4696_v63  ;;  %v4712_v27 = vrot.slane %v4696_v63, %v6722_v50  ;;  %v4719_v58 = vrot.slane %v4697_v2, %v6722_v50  ;;  %v4727_v52 = vcombine.high %v4705_v36, %v4705_v36  ;;  %5650 = vst.sshfl [vmem:[#allocation5 + $0xe] sm:$0x1 pattern:$0x73625140] %v4697_v2 }
 0x76a   :  { %5651 = vst.sshfl [vmem:[#allocation5 + $0x26] sm:$0x1 pattern:$0x73625140] %v4696_v63  ;;  %v4847_v63 = vmul.f32 %v8566_v45, %v8573_v1  ;;  %v4898_v2 = vrot.slane %v4842_v3, 5  ;;  %v4886_v36 = vrot.slane %v4844_v29, 4  ;;  %v5040_v28 = vsel %vm170_vm1, %v5039_v46, %v4978_v38 }
 0x76b   :  { %v4726_v31 = vrot.slane %v4698_v44, %v6722_v50  ;;  %v4728_v21 = vcombine.high %v4712_v27, %v4712_v27  ;;  %v4729_v49 = vcombine.high %v4719_v58, %v4719_v58  ;;  %4741 = vst [vmem:[#allocation5 + $0x16] sm:$0x1] %v4727_v52  ;;  %5652 = vst.sshfl [vmem:[#allocation5 + $0x2e] sm:$0x1 pattern:$0x73625140] %v4698_v44  ;;  %v8639_v58 = vpop.permute.xlu1 %4950 }
 0x76c   :  { %v4987_v44 = vmul.f32 %v8587_v35, %v8589_v61  ;;  %v4989_v27 = vmul.f32 %v8583_v54, %v8611_v19  ;;  %v5041_v52 = vrot.slane %v4984_v57, 6  ;;  %v4900_v53 = vrot.slane %v4845_v56, 4 }
 0x76d   :  { %v4730_v18 = vcombine.high %v4726_v31, %v4726_v31  ;;  %4742 = vst [vmem:[#allocation5 + $0x1e] sm:$0x1] %v4729_v49  ;;  %4745 = vst [vmem:[#allocation5 + $0x36] sm:$0x1] %v4728_v21  ;;  %v4885_v31 = vsel %vm176_vm3, %v4884_v33, %v4883_v5  ;;  %v4897_v21 = vsel %vm173_vm2, %v4896_v59, %v4895_v30  ;;  %v5029_v49 = vrot.slane %v4986_v13, 5 }
 0x76e   :  { %v4888_v22 = vrot.slane %v4847_v63, 3  ;;  %v4992_v11 = vmul.f32 %v8583_v54, %v8639_v58  ;;  %v4899_v41 = vsel %vm176_vm3, %v4898_v2, %v4897_v21  ;;  %v4887_v7 = vsel %vm179_vm4, %v4886_v36, %v4885_v31  ;;  %v8682_v36 = vld [vmem:[%s8794_s3] sm:$0x7] }
 0x76f   :  { %4746 = vst [vmem:[#allocation5 + $0x3e] sm:$0x1] %v4730_v18  ;;  %v5028_v18 = vsel %vm173_vm2, %v5027_v34, %v5026_v43  ;;  %v5043_v9 = vrot.slane %v4987_v44, 5  ;;  %v5031_v16 = vrot.slane %v4989_v27, 4  ;;  %v5042_v62 = vsel %vm173_vm2, %v5041_v52, %v5040_v28  ;;  %v8667_v57 = vpop.permute.xlu1 %4958 }
 0x770   :  { %v5030_v26 = vsel %vm176_vm3, %v5029_v49, %v5028_v18  ;;  %v4853_v0 = vmul.f32 %v8566_v45, %v8624_v12  ;;  %v4902_v3 = vrot.slane %v4848_v32, 3  ;;  %v4890_v29 = vrot.slane %v4850_v48, 2 }
 0x771   :  { %v4993_v46 = vmul.f32 %v8587_v35, %v8639_v58  ;;  %v4995_v33 = vmul.f32 %v8583_v54, %v8653_v23  ;;  %v4889_v59 = vsel %vm182_vm5, %v4888_v22, %v4887_v7  ;;  %v4901_v13 = vsel %vm179_vm4, %v4900_v53, %v4899_v41 }
 0x772   :  { %v5045_v30 = vrot.slane %v4990_v47, 4  ;;  %v5033_v34 = vrot.slane %v4992_v11, 3  ;;  %v5044_v5 = vsel %vm176_vm3, %v5043_v9, %v5042_v62  ;;  %v5032_v45 = vsel %vm179_vm4, %v5031_v16, %v5030_v26  ;;  %v8701_v47 = vld [vmem:[%s8795_s4] sm:$0x7]  ;;  %s6275_s4 = smov [#allocation5]  }
 0x773   :  { %v4854_v38 = vmul.f32 %v8577_v14, %v8624_v12  ;;  %v4904_v56 = vrot.slane %v4851_v10, 2  ;;  %v4892_v43 = vrot.slane %v4853_v0, 1  ;;  %v4996_v63 = vmul.f32 %v8587_v35, %v8653_v23  ;;  %s5424_s13 = sshll.u32 %s6275_s4, 4  ;;  %s5425_s13 = int_to_ptr.vmem [resolvable:$true] %s5424_s13 }
 0x774   :  { %v4998_v2 = vmul.f32 %v8583_v54, %v8667_v57  ;;  %v4903_v44 = vsel %vm182_vm5, %v4902_v3, %v4901_v13  ;;  %v4891_v27 = vsel %vm185_vm6, %v4890_v29, %v4889_v59  ;;  %v5047_v52 = vrot.slane %v4993_v46, 3  ;;  %s6241_s14 = scalar_lea.vmem %s5425_s13, 1024  ;;  %p6246_p9 = scmp.lt.s32.totalorder %s5425_s13, %s5425_s13 }
 0x775   :  { %v5035_v31 = vrot.slane %v4995_v33, 2  ;;  %v5046_v14 = vsel %vm179_vm4, %v5045_v30, %v5044_v5  ;;  %v5034_v21 = vsel %vm182_vm5, %v5033_v34, %v5032_v45  ;;  %v8690_v49 = vrot.slane %v8560_v60, %v6550_v37  ;;  %p6242_p8 = scmp.ne.s32.totalorder %s5425_s13, %s6241_s14  ;;  %p6247_p10 = scmp.lt.s32.totalorder %s6241_s14, %s6241_s14 }
 0x776   :  { %v4906_v54 = vrot.slane %v4854_v38, 1  ;;  %v4999_v18 = vmul.f32 %v8587_v35, %v8667_v57  ;;  %v4760_v28 = vrot.slane %v8682_v36, %v6498_v17  ;;  %v4905_v32 = vsel %vm185_vm6, %v4904_v56, %v4903_v44 }
 0x777   :  { %v5049_v48 = vrot.slane %v4996_v63, 2  ;;  %v5037_v53 = vrot.slane %v4998_v2, 1  ;;  %v4893_v22 = vsel %vm188_vm7, %v4892_v43, %v4891_v27  ;;  %v5048_v60 = vsel %vm182_vm5, %v5047_v52, %v5046_v14  ;;  %p6248_p11 = por %p6247_p10, %p6246_p9 }
 0x778   :  { %v5036_v11 = vsel %vm185_vm6, %v5035_v31, %v5034_v21  ;;  %v8707_v35 = vrot.slane %v8571_v40, %v6550_v37  ;;  %v4764_v41 = vrot.slane %v8682_v36, %v6508_v20  ;;  %v5051_v7 = vrot.slane %v4999_v18, 1 }
 0x779   :  { %v4925_v9 = vadd.f32 %v4893_v22, %v4760_v28  ;;  %v5111_v16 = vrot.slane %v8701_v47, %v6498_v17  ;;  %v4907_v62 = vsel %vm188_vm7, %v4906_v54, %v4905_v32  ;;  %v4837_v26 = vmul.f32 %v8690_v49, %v8543_v8  ;;  %p6249_p12 = pnand %p6248_p11, %p6242_p8 }
 0x77a   :  { %v5050_v10 = vsel %vm185_vm6, %v5049_v48, %v5048_v60  ;;  %v5038_v0 = vsel %vm188_vm7, %v5037_v53, %v5036_v11  ;;  %v5115_v40 = vrot.slane %v8701_v47, %v6508_v20  ;;  %v4926_v46 = vadd.f32 %v4907_v62, %v4764_v41 }
 0x77b   :  { %v4840_v33 = vmul.f32 %v8690_v49, %v8555_v24  ;;  %v5070_v17 = vadd.f32 %v5038_v0, %v4925_v9  ;;  %v5052_v13 = vsel %vm188_vm7, %v5051_v7, %v5050_v10  ;;  %v4908_v34 = vrot.slane %v4837_v26, 7 }
 0x77c   :  { %v4834_v5 = vmul.f32 %v8690_v49, %v8545_v15  ;;  %v4982_v20 = vmul.f32 %v8707_v35, %v8551_v42  ;;  %v4843_v24 = vmul.f32 %v8690_v49, %v8547_v6  ;;  %v5071_v44 = vadd.f32 %v5052_v13, %v4926_v46 }
 0x77d   :  { %v4985_v27 = vmul.f32 %v8707_v35, %v8553_v4  ;;  %v4910_v52 = vrot.slane %v4840_v33, 6  ;;  %v4979_v42 = vmul.f32 %v8707_v35, %v8562_v55  ;;  %v4846_v54 = vmul.f32 %v8690_v49, %v8549_v25 }
 0x77e   :  { %v4909_v15 = vsel %vm170_vm1, %v4908_v34, %v4834_v5  ;;  %v5053_v14 = vrot.slane %v4982_v20, 7  ;;  %v4912_v18 = vrot.slane %v4843_v24, 5  ;;  %v4988_v6 = vmul.f32 %v8707_v35, %v8589_v61 }
 0x77f   :  { %v5055_v28 = vrot.slane %v4985_v27, 6  ;;  %v4911_v4 = vsel %vm173_vm2, %v4910_v52, %v4909_v15  ;;  %v4849_v48 = vmul.f32 %v8690_v49, %v8573_v1  ;;  %v4914_v22 = vrot.slane %v4846_v54, 4 }
 0x780   :  { %v5054_v32 = vsel %vm170_vm1, %v5053_v14, %v4979_v42  ;;  %v4991_v55 = vmul.f32 %v8707_v35, %v8611_v19  ;;  %v4913_v25 = vsel %vm176_vm3, %v4912_v18, %v4911_v4  ;;  %v5057_v60 = vrot.slane %v4988_v6, 5 }
 0x781   :  { %v5056_v11 = vsel %vm173_vm2, %v5055_v28, %v5054_v32  ;;  %v4852_v61 = vmul.f32 %v8690_v49, %v8599_v51  ;;  %v4916_v41 = vrot.slane %v4849_v48, 3  ;;  %v4994_v7 = vmul.f32 %v8707_v35, %v8639_v58 }
 0x782   :  { %v4915_v1 = vsel %vm179_vm4, %v4914_v22, %v4913_v25  ;;  %v5059_v9 = vrot.slane %v4991_v55, 4  ;;  %v4855_v19 = vmul.f32 %v8690_v49, %v8624_v12  ;;  %v4997_v10 = vmul.f32 %v8707_v35, %v8653_v23 }
 0x783   :  { %v4918_v26 = vrot.slane %v4852_v61, 2  ;;  %v4917_v51 = vsel %vm182_vm5, %v4916_v41, %v4915_v1  ;;  %v5061_v0 = vrot.slane %v4994_v7, 3  ;;  %v5000_v46 = vmul.f32 %v8707_v35, %v8667_v57 }
 0x784   :  { %v4768_v49 = vrot.slane %v8682_v36, %v6550_v37 }
 0x785   :  { %v4919_v33 = vsel %vm185_vm6, %v4918_v26, %v4917_v51  ;;  %v5065_v13 = vrot.slane %v5000_v46, 1 }
 0x83a   :  { %v5285_v3 = vpop.f32.mrb[28].mxu0 }
 0x83b   :  { %v8720_v29 = vpop.f32.mrb[28].mxu1  ;;  %v5286_v59 = vadd.f32 %v5285_v3, %v5111_v16  ;;  %v5287_v30 = vpop.f32.mrb[29].mxu0  ;;  %v5058_v16 = vsel %vm176_vm3, %v5057_v60, %v5056_v11  ;;  %v4920_v3 = vrot.slane %v4855_v19, 1 }
 0x83c   :  { %v5914_v8 = vpop.f32.mrb[29].mxu1  ;;  %v5288_v45 = vadd.f32 %v5287_v30, %v5115_v40  ;;  %v5289_v38 = vpop.f32.mrb[30].mxu0  ;;  %v5060_v58 = vsel %vm179_vm4, %v5059_v9, %v5058_v16 }
 0x83d   :  { %v5329_v56 = vpop.f32.mrb[30].mxu1  ;;  %v5332_v43 = vadd.f32 %v5286_v59, %v5070_v17  ;;  %v5290_v63 = vpop.f32.mrb[31].mxu0  ;;  %v5063_v17 = vrot.slane %v4997_v10, 2  ;;  %v5062_v12 = vsel %vm182_vm5, %v5061_v0, %v5060_v58  ;;  %v4921_v59 = vsel %vm188_vm7, %v4920_v3, %v4919_v33 }
 0x83e   :  { %v5915_v2 = vpop.f32.mrb[31].mxu1  ;;  %v5339_v21 = vadd.f32 %v5288_v45, %v5071_v44  ;;  %v5119_v8 = vrot.slane %v8701_v47, %v6550_v37  ;;  %v4927_v34 = vadd.f32 %v4921_v59, %v4768_v49 }
 0x83f   :  { %v5678_v31 = vmul.f32 -1.442695, %v5332_v43  ;;  %v5064_v30 = vsel %vm185_vm6, %v5063_v17, %v5062_v12 }
 0x840   :  { %v5679_v53 = vmul.f32 -1.442695, %v5339_v21  ;;  %v5066_v35 = vsel %vm188_vm7, %v5065_v13, %v5064_v30  ;;  %v5327_v5 = vadd.f32 %v8720_v29, %v5119_v8 }
 0x841   :  { %6209 = vpow2.f32 %v5678_v31  ;;  %v5072_v45 = vadd.f32 %v5066_v35, %v4927_v34 }
 0x842   :  { %6211 = vpow2.f32 %v5679_v53 }
 0x84b   :  { %v6210_v62 = vpop.eup %6209 }
 0x84c   :  { %v5336_v40 = vadd.f32 1.0, %v6210_v62  ;;  %v6212_v23 = vpop.eup %6211 }
 0x84d   :  { %v5343_v57 = vadd.f32 1.0, %v6212_v23 }
 0x84e   :  { %6213 = vrcp.f32 %v5336_v40 }
 0x84f   :  { %6215 = vrcp.f32 %v5343_v57 }
 0x858   :  { %v6214_v20 = vpop.eup %6213 }
 0x859   :  { %v5346_v38 = vmul.f32 %v6214_v20, %v5327_v5  ;;  %v6216_v56 = vpop.eup %6215 }
 0x85a   :  { %v5349_v43 = vsub.f32 1.0, %v6216_v56  ;;  %v5351_v24 = vmul.f32 %v6216_v56, %v8530_v39 }
 0x85b   :  { %v5347_v36 = vadd.f32 %v5346_v38, %v5072_v45 }
 0x85d   :  { %6217 = vtanh.f32 %v5347_v36 }
 0x867   :  { %v6218_v63 = vpop.eup %6217 }
 0x868   :  { %v5350_v2 = vmul.f32 %v6218_v63, %v5349_v43 }
 0x86a   :  { %v5352_v44 = vadd.f32 %v5351_v24, %v5350_v2 }
 0x86c   :  { %v5354_v37 = vcombine.high %v5352_v44, %v5352_v44  ;;  %v5361_v47 = vrot.slane %v5352_v44, %v6722_v50 }
 0x86e   :  { %v5368_v27 = vrot.slane %v5354_v37, %v6722_v50  ;;  %v5369_v52 = vcombine.high %v5361_v47, %v5361_v47  ;;  %v5377_v29 = vrot.slane %v5361_v47, %v6722_v50  ;;  %5680 = vst.sshfl [vmem:[#allocation5 + $0x7] sm:$0x1 pattern:$0x73625140] %v5361_v47 }
 0x870   :  { %v5370_v31 = vcombine.high %v5368_v27, %v5368_v27  ;;  %v5384_v15 = vrot.slane %v5368_v27, %v6722_v50  ;;  %v5391_v14 = vrot.slane %v5369_v52, %v6722_v50  ;;  %v5399_v42 = vcombine.high %v5377_v29, %v5377_v29  ;;  %5681 = vst.sshfl [vmem:[#allocation5 + $0xf] sm:$0x1 pattern:$0x73625140] %v5369_v52 }
 0x871   :  { %5682 = vst.sshfl [vmem:[#allocation5 + $0x27] sm:$0x1 pattern:$0x73625140] %v5368_v27 }
 0x872   :  { %v5398_v39 = vrot.slane %v5370_v31, %v6722_v50  ;;  %v5400_v21 = vcombine.high %v5384_v15, %v5384_v15  ;;  %v5401_v54 = vcombine.high %v5391_v14, %v5391_v14  ;;  %5413 = vst [vmem:[#allocation5 + $0x17] sm:$0x1] %v5399_v42  ;;  %5683 = vst.sshfl [vmem:[#allocation5 + $0x2f] sm:$0x1 pattern:$0x73625140] %v5370_v31 }
 0x874   :  { %v5402_v18 = vcombine.high %v5398_v39, %v5398_v39  ;;  %5414 = vst [vmem:[#allocation5 + $0x1f] sm:$0x1] %v5401_v54  ;;  %5417 = vst [vmem:[#allocation5 + $0x37] sm:$0x1] %v5400_v21 }
 0x876   :  { %5418 = vst [vmem:[#allocation5 + $0x3f] sm:$0x1] %v5402_v18 }
 0x877   :  { %6252 = shalt.err (!%p6249_p12)
}
 0x878   :  { %s6253_s17 = scalar_lea.hbm %s8796_s5, 1024 }
 0x879   :  { %p6254_p13 = scmp.ne.s32.totalorder %s8796_s5, %s6253_s17  ;;  %p6257_p0 = scmp.lt.u32.totalorder %s6253_s17, %s8796_s5 }
 0x87b   :  { %p6259_p1 = pnand %p6257_p0, %p6254_p13 }
 0x87d   :  { %6262 = shalt.err (!%p6259_p1)
}
 0x87e   :  { %s6276_s21 = smov 128   ;;  %s6277_s22 = smov 8  }
 0x87f   :  { %5430 = dma.vmem_to_hbm [thread:$0]  %s5425_s13, 1024, %s8796_s5, [#allocation4], %s6276_s21, %s6276_s21, %s6277_s22  }
 0x880   :  { %6265 = dma.done.wait [#allocation4], 1024  }
 0x881   :  { %6266 = vsyncadd [#allocation4], 4294966272 }
 0x882   :  { %5434 = vsyncpa [#allocation3], 1 }
 0x883   :  { %5435 = vsyncpa [#allocation4], 1 }

</bundles_post_ra>
